<compile_context>
chip_gen: v7x
topology: tpu7x:2x2x1
jax: 0.10.0
libtpu: 0.0.40
codegen_flags: <defaults>
</compile_context>

<pallas_src>
import functools

import jax
import jax.numpy as jnp
from jax import lax
from jax.experimental import pallas as pl
from jax.experimental.pallas import tpu as pltpu


# ----------------------------------------------------------------------------
# Fused Inception kernel (one image per grid step)
# ----------------------------------------------------------------------------
def _inception_kernel(
    mask_ref,                        # (P_ext, 1) f32: 1.0 on real pixels, 0.0 on padding
    xp_ref,                          # (1, P_ext, Cin) zero-padded image, flat spatial
    w1_ref, s1_ref, b1_ref,          # branch1 1x1                 : (Cin, c1), (1, c1), (1, c1)
    w23r_ref, s23r_ref, b23r_ref,    # fused branch2+3 1x1 reduce  : (Cin, c23r), ...
    w23_ref, s23_ref, b23_ref,       # fused branch2+3 3x3 (blkdiag): (9, c23r, c23), (1, c23), (1, c23)
    w4_ref, s4_ref, b4_ref,          # branch4 pool-proj 1x1       : (Cin, c4), ...
    o_ref,                           # (1, M1, Ctot)  wide-layout output slab
    r23_s, xpool_s,                  # VMEM scratch: (P_ext, c23r), (P_ext, Cin)
    *, H, W,
):
    Wp = W + 2
    M1 = H * Wp                      # "wide" rows: m = h*Wp + w, columns w<W are valid

    mask = mask_ref[...]             # (P_ext, 1)
    xp = xp_ref[0]                   # (P_ext, Cin)

    def bn_relu(y, s_ref, b_ref):
        return jnp.maximum(y * s_ref[...] + b_ref[...], 0.0)

    # ---- fused 1x1 reductions (branch2 | branch3) on all padded pixels
    #      (conv -> BN -> ReLU), then zero the padding pixels so the 3x3 convs
    #      below see proper zero padding.
    r23 = bn_relu(jnp.dot(xp, w23r_ref[...], preferred_element_type=jnp.float32),
                  s23r_ref, b23r_ref)
    r23_s[...] = r23 * mask
    # -inf-style padding for the max pool (finite sentinel avoids inf*0 NaNs;
    # it only ever loses against real, finite pixel values).
    xpool_s[...] = jnp.where(mask != 0.0, xp, -1e30)

    # ---- branch1: 1x1 conv on the center-tap rows (wide layout).
    x_center = xp_ref[0, pl.ds(Wp + 1, M1), :]
    b1w = bn_relu(jnp.dot(x_center, w1_ref[...], preferred_element_type=jnp.float32),
                  s1_ref, b1_ref)

    # ---- branch2 + branch3: fused 3x3 conv (pad=1) as 9 accumulated shifted
    #      matmuls against the block-diagonal per-tap weight.  Output columns
    #      are already ordered [branch2 | branch3].
    acc = None
    for k in range(9):
        off = (k // 3) * Wp + (k % 3)              # tap (dy, dx) row offset
        a = r23_s[pl.ds(off, M1), :]
        p = jnp.dot(a, w23_ref[k], preferred_element_type=jnp.float32)
        acc = p if acc is None else acc + p
    b23w = bn_relu(acc, s23_ref, b23_ref)

    # ---- branch4: 3x3 max pool (stride 1, pad 1) fused with its 1x1 projection.
    pooled = None
    for k in range(9):
        off = (k // 3) * Wp + (k % 3)
        v = xpool_s[pl.ds(off, M1), :]
        pooled = v if pooled is None else jnp.maximum(pooled, v)
    b4w = bn_relu(jnp.dot(pooled, w4_ref[...], preferred_element_type=jnp.float32),
                  s4_ref, b4_ref)

    # ---- single lane-dense output slab (channel order matches torch.cat).
    o_ref[0] = jnp.concatenate([b1w, b23w, b4w], axis=-1).astype(o_ref.dtype)


# ----------------------------------------------------------------------------
# Wrapper: parameter folding, padding, pallas_call, layout plumbing
# ----------------------------------------------------------------------------
def _bn_fold(p, eps=1e-3):
    scale = p["gamma"] / jnp.sqrt(p["var"] + eps)
    bias = p["beta"] - p["mean"] * scale
    return scale[None, :], bias[None, :]


def _w_1x1(p):
    return p["w"][:, :, 0, 0].T                              # (Cin, Cout)


def _w_3x3(p):
    cout, cin = p["w"].shape[:2]
    # (Cout, Cin, kh, kw) -> (kh, kw, Cin, Cout) -> (9, Cin, Cout), k = dy*3 + dx
    return jnp.transpose(p["w"], (2, 3, 1, 0)).reshape(9, cin, cout)


def inception_forward(x_nchw, params):
    N, Cin, H, W = x_nchw.shape
    Wp = W + 2
    # one extra zero row at the bottom so shifted row-slices never run past the
    # scratch buffers: P_ext >= (H+2)*Wp + 2 for every tap offset.
    P_ext = (H + 3) * Wp
    M1 = H * Wp

    # NCHW -> NHWC, zero-pad spatially, flatten spatial dims (single fused XLA copy).
    x = jnp.transpose(x_nchw, (0, 2, 3, 1))
    xp = jnp.pad(x, ((0, 0), (1, 2), (1, 1), (0, 0))).reshape(N, P_ext, Cin)

    # interior mask (1 on real pixels, 0 on padding), computed once on the host
    # side so the kernel never needs vector integer div/mod.
    yy = jnp.arange(H + 3)
    xx = jnp.arange(Wp)
    m2 = ((yy >= 1) & (yy <= H))[:, None] & ((xx >= 1) & (xx <= W))[None, :]
    mask = m2.astype(jnp.float32).reshape(P_ext, 1)

    # ---- fold BN and fuse branch2/branch3 parameters (all trace-time XLA ops;
    #      in a deployed model these would be pre-folded once).
    w1, (s1, bb1) = _w_1x1(params["b1"]), _bn_fold(params["b1"])
    w4, (s4, bb4) = _w_1x1(params["b4"]), _bn_fold(params["b4"])

    w2r, (s2r, bb2r) = _w_1x1(params["b2_red"]), _bn_fold(params["b2_red"])
    w3r, (s3r, bb3r) = _w_1x1(params["b3_red"]), _bn_fold(params["b3_red"])
    w23r = jnp.concatenate([w2r, w3r], axis=1)                # (Cin, c2r+c3r)
    s23r = jnp.concatenate([s2r, s3r], axis=1)
    bb23r = jnp.concatenate([bb2r, bb3r], axis=1)

    w2k, (s2, bb2) = _w_3x3(params["b2"]), _bn_fold(params["b2"])
    w3k, (s3, bb3) = _w_3x3(params["b3"]), _bn_fold(params["b3"])
    c2r, c2 = w2k.shape[1], w2k.shape[2]
    c3r, c3 = w3k.shape[1], w3k.shape[2]
    # per-tap block-diagonal weight: rows [0:c2r] -> branch2, rows [c2r:] -> branch3
    w23 = jnp.concatenate(
        [jnp.concatenate([w2k, jnp.zeros((9, c2r, c3), jnp.float32)], axis=2),
         jnp.concatenate([jnp.zeros((9, c3r, c2), jnp.float32), w3k], axis=2)],
        axis=1)                                               # (9, c2r+c3r, c2+c3)
    s23 = jnp.concatenate([s2, s3], axis=1)
    bb23 = jnp.concatenate([bb2, bb3], axis=1)

    c1, c4 = w1.shape[1], w4.shape[1]
    c23r, c23 = c2r + c3r, c2 + c3
    Ctot = c1 + c23 + c4

    def full_spec(a):
        nd = a.ndim
        return pl.BlockSpec(a.shape, lambda n, nd=nd: (0,) * nd)

    kernel = functools.partial(_inception_kernel, H=H, W=W)

    out = pl.pallas_call(
        kernel,
        grid=(N,),
        in_specs=[
            pl.BlockSpec((P_ext, 1), lambda n: (0, 0)),
            pl.BlockSpec((1, P_ext, Cin), lambda n: (n, 0, 0)),
            full_spec(w1), full_spec(s1), full_spec(bb1),
            full_spec(w23r), full_spec(s23r), full_spec(bb23r),
            full_spec(w23), full_spec(s23), full_spec(bb23),
            full_spec(w4), full_spec(s4), full_spec(bb4),
        ],
        out_specs=pl.BlockSpec((1, M1, Ctot), lambda n: (n, 0, 0)),
        out_shape=jax.ShapeDtypeStruct((N, M1, Ctot), jnp.float32),
        scratch_shapes=[
            pltpu.VMEM((P_ext, c23r), jnp.float32),
            pltpu.VMEM((P_ext, Cin), jnp.float32),
        ],
        compiler_params=pltpu.CompilerParams(
            dimension_semantics=("parallel",),
            vmem_limit_bytes=32 * 1024 * 1024,
        ),
    )(mask, xp,
      w1, s1, bb1, w23r, s23r, bb23r, w23, s23, bb23, w4, s4, bb4)

    # drop the 2 garbage columns of the wide layout, back to NCHW
    # (reshape + slice + transpose fuse into one XLA copy).
    out = out.reshape(N, H, Wp, Ctot)[:, :, :W, :]
    return jnp.transpose(out, (0, 3, 1, 2))


# ----------------------------------------------------------------------------
# Parameter init (random weights + BN running stats)
# ----------------------------------------------------------------------------
def init_basic_conv(key, cin, cout, ksize):
    kw, kg, kb, km, kv = jax.random.split(key, 5)
    return {
        "w": 0.1 * jax.random.normal(kw, (cout, cin, ksize, ksize), jnp.float32),
        "gamma": jax.random.uniform(kg, (cout,), jnp.float32, 0.5, 1.5),
        "beta": 0.1 * jax.random.normal(kb, (cout,), jnp.float32),
        "mean": 0.1 * jax.random.normal(km, (cout,), jnp.float32),
        "var": jax.random.uniform(kv, (cout,), jnp.float32, 0.5, 1.5),
    }


def init_inception(key, in_channels, ch1x1, ch3x3red, ch3x3, ch5x5red, ch5x5, pool_proj):
    keys = jax.random.split(key, 6)
    return {
        "b1": init_basic_conv(keys[0], in_channels, ch1x1, 1),
        "b2_red": init_basic_conv(keys[1], in_channels, ch3x3red, 1),
        "b2": init_basic_conv(keys[2], ch3x3red, ch3x3, 3),
        "b3_red": init_basic_conv(keys[3], in_channels, ch5x5red, 1),
        # NB: this Inception variant uses a 3x3 conv in the "5x5" branch, as in
        # the reference PyTorch code.
        "b3": init_basic_conv(keys[4], ch5x5red, ch5x5, 3),
        "b4": init_basic_conv(keys[5], in_channels, pool_proj, 1),
    }


# ----------------------------------------------------------------------------
# Pure-JAX reference (for correctness check)
# ----------------------------------------------------------------------------
def _ref_basic_conv(x_nchw, p, padding):
    y = lax.conv_general_dilated(
        x_nchw, p["w"], window_strides=(1, 1), padding=padding,
        dimension_numbers=("NCHW", "OIHW", "NCHW"),
    )
    scale = (p["gamma"] / jnp.sqrt(p["var"] + 1e-3))[None, :, None, None]
    bias = (p["beta"] - p["mean"] * p["gamma"] / jnp.sqrt(p["var"] + 1e-3))[None, :, None, None]
    return jnp.maximum(y * scale + bias, 0.0)


def inception_reference(x_nchw, params):
    b1 = _ref_basic_conv(x_nchw, params["b1"], "VALID")
    b2 = _ref_basic_conv(_ref_basic_conv(x_nchw, params["b2_red"], "VALID"),
                         params["b2"], [(1, 1), (1, 1)])
    b3 = _ref_basic_conv(_ref_basic_conv(x_nchw, params["b3_red"], "VALID"),
                         params["b3"], [(1, 1), (1, 1)])
    pooled = lax.reduce_window(
        x_nchw, -jnp.inf, lax.max, (1, 1, 3, 3), (1, 1, 1, 1),
        ((0, 0), (0, 0), (1, 1), (1, 1)),
    )
    b4 = _ref_basic_conv(pooled, params["b4"], "VALID")
    return jnp.concatenate([b1, b2, b3, b4], axis=1)


# ----------------------------------------------------------------------------
if __name__ == "__main__":
    key = jax.random.PRNGKey(0)
    k_x, k_p = jax.random.split(key)

    # Small shapes consistent with the module: N=2, in_channels=4, H=W=16
    in_channels, ch1x1, ch3x3red, ch3x3, ch5x5red, ch5x5, pool_proj = 4, 8, 4, 8, 4, 8, 8
    x = jax.random.normal(k_x, (2, in_channels, 16, 16), jnp.float32)
    params = init_inception(k_p, in_channels, ch1x1, ch3x3red, ch3x3, ch5x5red, ch5x5, pool_proj)

    out = jax.block_until_ready(jax.jit(inception_forward)(x, params))

    ref = jax.block_until_ready(inception_reference(x, params))
    assert out.shape == (2, ch1x1 + ch3x3 + ch5x5 + pool_proj, 16, 16), out.shape
    err = float(jnp.max(jnp.abs(out - ref)))
    assert jnp.allclose(out, ref, rtol=1e-3, atol=1e-3), err

    print("KERNEL_OK")
</pallas_src>

<mosaic_0001>
module attributes {stable_mosaic.version = 11 : i64} {
  func.func @_inception_kernel(%arg0: i32, %arg1: memref<342x1xf32, #tpu.memory_space<vmem>>, %arg2: memref<1x342x4xf32, #tpu.memory_space<vmem>>, %arg3: memref<4x8xf32, #tpu.memory_space<vmem>>, %arg4: memref<1x8xf32, #tpu.memory_space<vmem>>, %arg5: memref<1x8xf32, #tpu.memory_space<vmem>>, %arg6: memref<4x8xf32, #tpu.memory_space<vmem>>, %arg7: memref<1x8xf32, #tpu.memory_space<vmem>>, %arg8: memref<1x8xf32, #tpu.memory_space<vmem>>, %arg9: memref<9x8x16xf32, #tpu.memory_space<vmem>>, %arg10: memref<1x16xf32, #tpu.memory_space<vmem>>, %arg11: memref<1x16xf32, #tpu.memory_space<vmem>>, %arg12: memref<4x8xf32, #tpu.memory_space<vmem>>, %arg13: memref<1x8xf32, #tpu.memory_space<vmem>>, %arg14: memref<1x8xf32, #tpu.memory_space<vmem>>, %arg15: memref<1x288x32xf32, #tpu.memory_space<vmem>>, %arg16: memref<342x8xf32, #tpu.memory_space<vmem>>, %arg17: memref<342x4xf32, #tpu.memory_space<vmem>>) attributes {dimension_semantics = [#tpu.dimension_semantics<parallel>], iteration_bounds = array<i64: 2>, scalar_prefetch = 0 : i64, scratch_operands = 2 : i64, tpu.core_type = #tpu.core_type<tc>, window_params = [{pipeline_mode = #tpu.pipeline_mode<synchronous>, transform_indices = @transform_0, window_bounds = array<i64: 342, 1>}, {transform_indices = @transform_1, window_bounds = array<i64: 1, 342, 4>}, {pipeline_mode = #tpu.pipeline_mode<synchronous>, transform_indices = @transform_2, window_bounds = array<i64: 4, 8>}, {pipeline_mode = #tpu.pipeline_mode<synchronous>, transform_indices = @transform_3, window_bounds = array<i64: 1, 8>}, {pipeline_mode = #tpu.pipeline_mode<synchronous>, transform_indices = @transform_4, window_bounds = array<i64: 1, 8>}, {pipeline_mode = #tpu.pipeline_mode<synchronous>, transform_indices = @transform_5, window_bounds = array<i64: 4, 8>}, {pipeline_mode = #tpu.pipeline_mode<synchronous>, transform_indices = @transform_6, window_bounds = array<i64: 1, 8>}, {pipeline_mode = #tpu.pipeline_mode<synchronous>, transform_indices = @transform_7, window_bounds = array<i64: 1, 8>}, {pipeline_mode = #tpu.pipeline_mode<synchronous>, transform_indices = @transform_8, window_bounds = array<i64: 9, 8, 16>}, {pipeline_mode = #tpu.pipeline_mode<synchronous>, transform_indices = @transform_9, window_bounds = array<i64: 1, 16>}, {pipeline_mode = #tpu.pipeline_mode<synchronous>, transform_indices = @transform_10, window_bounds = array<i64: 1, 16>}, {pipeline_mode = #tpu.pipeline_mode<synchronous>, transform_indices = @transform_11, window_bounds = array<i64: 4, 8>}, {pipeline_mode = #tpu.pipeline_mode<synchronous>, transform_indices = @transform_12, window_bounds = array<i64: 1, 8>}, {pipeline_mode = #tpu.pipeline_mode<synchronous>, transform_indices = @transform_13, window_bounds = array<i64: 1, 8>}, {transform_indices = @transform_14, window_bounds = array<i64: 1, 288, 32>}]} {
    %c0 = arith.constant 0 : index
    %c0_0 = arith.constant 0 : index
    %0 = vector.load %arg1[%c0, %c0_0] : memref<342x1xf32, #tpu.memory_space<vmem>>, vector<342x1xf32>
    %c0_1 = arith.constant 0 : index
    %c0_2 = arith.constant 0 : index
    %c0_3 = arith.constant 0 : index
    %1 = vector.load %arg2[%c0_1, %c0_2, %c0_3] : memref<1x342x4xf32, #tpu.memory_space<vmem>>, vector<1x342x4xf32>
    %2 = vector.shape_cast %1 : vector<1x342x4xf32> to vector<342x4xf32>
    %c0_4 = arith.constant 0 : index
    %c0_5 = arith.constant 0 : index
    %3 = vector.load %arg6[%c0_4, %c0_5] : memref<4x8xf32, #tpu.memory_space<vmem>>, vector<4x8xf32>
    %cst = arith.constant dense<0.000000e+00> : vector<342x8xf32>
    %4 = tpu.matmul %2, %3, %cst {dimension_numbers = #tpu.dot_dimension_numbers<[1], [0], [0], [1], [0, 0, 1, 1], [], []>} : vector<342x4xf32>, vector<4x8xf32>, vector<342x8xf32> -> vector<342x8xf32>
    %c0_6 = arith.constant 0 : index
    %c0_7 = arith.constant 0 : index
    %5 = vector.load %arg7[%c0_6, %c0_7] : memref<1x8xf32, #tpu.memory_space<vmem>>, vector<1x8xf32>
    %6 = vector.broadcast %5 : vector<1x8xf32> to vector<342x8xf32>
    %7 = arith.mulf %4, %6 : vector<342x8xf32>
    %c0_8 = arith.constant 0 : index
    %c0_9 = arith.constant 0 : index
    %8 = vector.load %arg8[%c0_8, %c0_9] : memref<1x8xf32, #tpu.memory_space<vmem>>, vector<1x8xf32>
    %9 = vector.broadcast %8 : vector<1x8xf32> to vector<342x8xf32>
    %10 = arith.addf %7, %9 : vector<342x8xf32>
    %cst_10 = arith.constant 0.000000e+00 : f32
    %11 = vector.broadcast %cst_10 : f32 to vector<342x8xf32>
    %12 = arith.maximumf %10, %11 : vector<342x8xf32>
    %13 = vector.broadcast %0 : vector<342x1xf32> to vector<342x8xf32>
    %14 = arith.mulf %12, %13 : vector<342x8xf32>
    %c0_11 = arith.constant 0 : index
    %c0_12 = arith.constant 0 : index
    %15 = vector.load %arg16[%c0_11, %c0_12] : memref<342x8xf32, #tpu.memory_space<vmem>>, vector<342x8xf32>
    tpu.vector_store %arg16[%c0_11, %c0_12], %14 {strides = array<i32>} : memref<342x8xf32, #tpu.memory_space<vmem>>, vector<342x8xf32>,
    %cst_13 = arith.constant 0.000000e+00 : f32
    %16 = vector.broadcast %cst_13 : f32 to vector<342x1xf32>
    %17 = arith.cmpf one, %0, %16 : vector<342x1xf32>
    %cst_14 = arith.constant -1.000000e+30 : f32
    %18 = vector.shape_cast %17 : vector<342x1xi1> to vector<342x1xi1>
    %19 = vector.broadcast %18 : vector<342x1xi1> to vector<342x4xi1>
    %20 = vector.broadcast %cst_14 : f32 to vector<342x4xf32>
    %21 = arith.select %19, %2, %20 : vector<342x4xi1>, vector<342x4xf32>
    %c0_15 = arith.constant 0 : index
    %c0_16 = arith.constant 0 : index
    %22 = vector.load %arg17[%c0_15, %c0_16] : memref<342x4xf32, #tpu.memory_space<vmem>>, vector<342x4xf32>
    tpu.vector_store %arg17[%c0_15, %c0_16], %21 {strides = array<i32>} : memref<342x4xf32, #tpu.memory_space<vmem>>, vector<342x4xf32>,
    %c0_17 = arith.constant 0 : index
    %c19 = arith.constant 19 : index
    %c0_18 = arith.constant 0 : index
    %23 = vector.load %arg2[%c0_17, %c19, %c0_18] : memref<1x342x4xf32, #tpu.memory_space<vmem>>, vector<1x288x4xf32>
    %24 = vector.shape_cast %23 : vector<1x288x4xf32> to vector<288x4xf32>
    %c0_19 = arith.constant 0 : index
    %c0_20 = arith.constant 0 : index
    %25 = vector.load %arg3[%c0_19, %c0_20] : memref<4x8xf32, #tpu.memory_space<vmem>>, vector<4x8xf32>
    %cst_21 = arith.constant dense<0.000000e+00> : vector<288x8xf32>
    %26 = tpu.matmul %24, %25, %cst_21 {dimension_numbers = #tpu.dot_dimension_numbers<[1], [0], [0], [1], [0, 0, 1, 1], [], []>} : vector<288x4xf32>, vector<4x8xf32>, vector<288x8xf32> -> vector<288x8xf32>
    %c0_22 = arith.constant 0 : index
    %c0_23 = arith.constant 0 : index
    %27 = vector.load %arg4[%c0_22, %c0_23] : memref<1x8xf32, #tpu.memory_space<vmem>>, vector<1x8xf32>
    %28 = vector.broadcast %27 : vector<1x8xf32> to vector<288x8xf32>
    %29 = arith.mulf %26, %28 : vector<288x8xf32>
    %c0_24 = arith.constant 0 : index
    %c0_25 = arith.constant 0 : index
    %30 = vector.load %arg5[%c0_24, %c0_25] : memref<1x8xf32, #tpu.memory_space<vmem>>, vector<1x8xf32>
    %31 = vector.broadcast %30 : vector<1x8xf32> to vector<288x8xf32>
    %32 = arith.addf %29, %31 : vector<288x8xf32>
    %cst_26 = arith.constant 0.000000e+00 : f32
    %33 = vector.broadcast %cst_26 : f32 to vector<288x8xf32>
    %34 = arith.maximumf %32, %33 : vector<288x8xf32>
    %c0_27 = arith.constant 0 : index
    %c0_28 = arith.constant 0 : index
    %35 = vector.load %arg16[%c0_27, %c0_28] : memref<342x8xf32, #tpu.memory_space<vmem>>, vector<288x8xf32>
    %c0_29 = arith.constant 0 : index
    %c0_30 = arith.constant 0 : index
    %c0_31 = arith.constant 0 : index
    %36 = vector.load %arg9[%c0_29, %c0_30, %c0_31] : memref<9x8x16xf32, #tpu.memory_space<vmem>>, vector<1x8x16xf32>
    %37 = vector.shape_cast %36 : vector<1x8x16xf32> to vector<8x16xf32>
    %cst_32 = arith.constant dense<0.000000e+00> : vector<288x16xf32>
    %38 = tpu.matmul %35, %37, %cst_32 {dimension_numbers = #tpu.dot_dimension_numbers<[1], [0], [0], [1], [0, 0, 1, 1], [], []>} : vector<288x8xf32>, vector<8x16xf32>, vector<288x16xf32> -> vector<288x16xf32>
    %c1 = arith.constant 1 : index
    %c0_33 = arith.constant 0 : index
    %39 = vector.load %arg16[%c1, %c0_33] : memref<342x8xf32, #tpu.memory_space<vmem>>, vector<288x8xf32>
    %c1_34 = arith.constant 1 : index
    %c0_35 = arith.constant 0 : index
    %c0_36 = arith.constant 0 : index
    %40 = vector.load %arg9[%c1_34, %c0_35, %c0_36] : memref<9x8x16xf32, #tpu.memory_space<vmem>>, vector<1x8x16xf32>
    %41 = vector.shape_cast %40 : vector<1x8x16xf32> to vector<8x16xf32>
    %cst_37 = arith.constant dense<0.000000e+00> : vector<288x16xf32>
    %42 = tpu.matmul %39, %41, %cst_37 {dimension_numbers = #tpu.dot_dimension_numbers<[1], [0], [0], [1], [0, 0, 1, 1], [], []>} : vector<288x8xf32>, vector<8x16xf32>, vector<288x16xf32> -> vector<288x16xf32>
    %43 = arith.addf %38, %42 : vector<288x16xf32>
    %c2 = arith.constant 2 : index
    %c0_38 = arith.constant 0 : index
    %44 = vector.load %arg16[%c2, %c0_38] : memref<342x8xf32, #tpu.memory_space<vmem>>, vector<288x8xf32>
    %c2_39 = arith.constant 2 : index
    %c0_40 = arith.constant 0 : index
    %c0_41 = arith.constant 0 : index
    %45 = vector.load %arg9[%c2_39, %c0_40, %c0_41] : memref<9x8x16xf32, #tpu.memory_space<vmem>>, vector<1x8x16xf32>
    %46 = vector.shape_cast %45 : vector<1x8x16xf32> to vector<8x16xf32>
    %cst_42 = arith.constant dense<0.000000e+00> : vector<288x16xf32>
    %47 = tpu.matmul %44, %46, %cst_42 {dimension_numbers = #tpu.dot_dimension_numbers<[1], [0], [0], [1], [0, 0, 1, 1], [], []>} : vector<288x8xf32>, vector<8x16xf32>, vector<288x16xf32> -> vector<288x16xf32>
    %48 = arith.addf %43, %47 : vector<288x16xf32>
    %c18 = arith.constant 18 : index
    %c0_43 = arith.constant 0 : index
    %49 = vector.load %arg16[%c18, %c0_43] : memref<342x8xf32, #tpu.memory_space<vmem>>, vector<288x8xf32>
    %c3 = arith.constant 3 : index
    %c0_44 = arith.constant 0 : index
    %c0_45 = arith.constant 0 : index
    %50 = vector.load %arg9[%c3, %c0_44, %c0_45] : memref<9x8x16xf32, #tpu.memory_space<vmem>>, vector<1x8x16xf32>
    %51 = vector.shape_cast %50 : vector<1x8x16xf32> to vector<8x16xf32>
    %cst_46 = arith.constant dense<0.000000e+00> : vector<288x16xf32>
    %52 = tpu.matmul %49, %51, %cst_46 {dimension_numbers = #tpu.dot_dimension_numbers<[1], [0], [0], [1], [0, 0, 1, 1], [], []>} : vector<288x8xf32>, vector<8x16xf32>, vector<288x16xf32> -> vector<288x16xf32>
    %53 = arith.addf %48, %52 : vector<288x16xf32>
    %c19_47 = arith.constant 19 : index
    %c0_48 = arith.constant 0 : index
    %54 = vector.load %arg16[%c19_47, %c0_48] : memref<342x8xf32, #tpu.memory_space<vmem>>, vector<288x8xf32>
    %c4 = arith.constant 4 : index
    %c0_49 = arith.constant 0 : index
    %c0_50 = arith.constant 0 : index
    %55 = vector.load %arg9[%c4, %c0_49, %c0_50] : memref<9x8x16xf32, #tpu.memory_space<vmem>>, vector<1x8x16xf32>
    %56 = vector.shape_cast %55 : vector<1x8x16xf32> to vector<8x16xf32>
    %cst_51 = arith.constant dense<0.000000e+00> : vector<288x16xf32>
    %57 = tpu.matmul %54, %56, %cst_51 {dimension_numbers = #tpu.dot_dimension_numbers<[1], [0], [0], [1], [0, 0, 1, 1], [], []>} : vector<288x8xf32>, vector<8x16xf32>, vector<288x16xf32> -> vector<288x16xf32>
    %58 = arith.addf %53, %57 : vector<288x16xf32>
    %c20 = arith.constant 20 : index
    %c0_52 = arith.constant 0 : index
    %59 = vector.load %arg16[%c20, %c0_52] : memref<342x8xf32, #tpu.memory_space<vmem>>, vector<288x8xf32>
    %c5 = arith.constant 5 : index
    %c0_53 = arith.constant 0 : index
    %c0_54 = arith.constant 0 : index
    %60 = vector.load %arg9[%c5, %c0_53, %c0_54] : memref<9x8x16xf32, #tpu.memory_space<vmem>>, vector<1x8x16xf32>
    %61 = vector.shape_cast %60 : vector<1x8x16xf32> to vector<8x16xf32>
    %cst_55 = arith.constant dense<0.000000e+00> : vector<288x16xf32>
    %62 = tpu.matmul %59, %61, %cst_55 {dimension_numbers = #tpu.dot_dimension_numbers<[1], [0], [0], [1], [0, 0, 1, 1], [], []>} : vector<288x8xf32>, vector<8x16xf32>, vector<288x16xf32> -> vector<288x16xf32>
    %63 = arith.addf %58, %62 : vector<288x16xf32>
    %c36 = arith.constant 36 : index
    %c0_56 = arith.constant 0 : index
    %64 = vector.load %arg16[%c36, %c0_56] : memref<342x8xf32, #tpu.memory_space<vmem>>, vector<288x8xf32>
    %c6 = arith.constant 6 : index
    %c0_57 = arith.constant 0 : index
    %c0_58 = arith.constant 0 : index
    %65 = vector.load %arg9[%c6, %c0_57, %c0_58] : memref<9x8x16xf32, #tpu.memory_space<vmem>>, vector<1x8x16xf32>
    %66 = vector.shape_cast %65 : vector<1x8x16xf32> to vector<8x16xf32>
    %cst_59 = arith.constant dense<0.000000e+00> : vector<288x16xf32>
    %67 = tpu.matmul %64, %66, %cst_59 {dimension_numbers = #tpu.dot_dimension_numbers<[1], [0], [0], [1], [0, 0, 1, 1], [], []>} : vector<288x8xf32>, vector<8x16xf32>, vector<288x16xf32> -> vector<288x16xf32>
    %68 = arith.addf %63, %67 : vector<288x16xf32>
    %c37 = arith.constant 37 : index
    %c0_60 = arith.constant 0 : index
    %69 = vector.load %arg16[%c37, %c0_60] : memref<342x8xf32, #tpu.memory_space<vmem>>, vector<288x8xf32>
    %c7 = arith.constant 7 : index
    %c0_61 = arith.constant 0 : index
    %c0_62 = arith.constant 0 : index
    %70 = vector.load %arg9[%c7, %c0_61, %c0_62] : memref<9x8x16xf32, #tpu.memory_space<vmem>>, vector<1x8x16xf32>
    %71 = vector.shape_cast %70 : vector<1x8x16xf32> to vector<8x16xf32>
    %cst_63 = arith.constant dense<0.000000e+00> : vector<288x16xf32>
    %72 = tpu.matmul %69, %71, %cst_63 {dimension_numbers = #tpu.dot_dimension_numbers<[1], [0], [0], [1], [0, 0, 1, 1], [], []>} : vector<288x8xf32>, vector<8x16xf32>, vector<288x16xf32> -> vector<288x16xf32>
    %73 = arith.addf %68, %72 : vector<288x16xf32>
    %c38 = arith.constant 38 : index
    %c0_64 = arith.constant 0 : index
    %74 = vector.load %arg16[%c38, %c0_64] : memref<342x8xf32, #tpu.memory_space<vmem>>, vector<288x8xf32>
    %c8 = arith.constant 8 : index
    %c0_65 = arith.constant 0 : index
    %c0_66 = arith.constant 0 : index
    %75 = vector.load %arg9[%c8, %c0_65, %c0_66] : memref<9x8x16xf32, #tpu.memory_space<vmem>>, vector<1x8x16xf32>
    %76 = vector.shape_cast %75 : vector<1x8x16xf32> to vector<8x16xf32>
    %cst_67 = arith.constant dense<0.000000e+00> : vector<288x16xf32>
    %77 = tpu.matmul %74, %76, %cst_67 {dimension_numbers = #tpu.dot_dimension_numbers<[1], [0], [0], [1], [0, 0, 1, 1], [], []>} : vector<288x8xf32>, vector<8x16xf32>, vector<288x16xf32> -> vector<288x16xf32>
    %78 = arith.addf %73, %77 : vector<288x16xf32>
    %c0_68 = arith.constant 0 : index
    %c0_69 = arith.constant 0 : index
    %79 = vector.load %arg10[%c0_68, %c0_69] : memref<1x16xf32, #tpu.memory_space<vmem>>, vector<1x16xf32>
    %80 = vector.broadcast %79 : vector<1x16xf32> to vector<288x16xf32>
    %81 = arith.mulf %78, %80 : vector<288x16xf32>
    %c0_70 = arith.constant 0 : index
    %c0_71 = arith.constant 0 : index
    %82 = vector.load %arg11[%c0_70, %c0_71] : memref<1x16xf32, #tpu.memory_space<vmem>>, vector<1x16xf32>
    %83 = vector.broadcast %82 : vector<1x16xf32> to vector<288x16xf32>
    %84 = arith.addf %81, %83 : vector<288x16xf32>
    %cst_72 = arith.constant 0.000000e+00 : f32
    %85 = vector.broadcast %cst_72 : f32 to vector<288x16xf32>
    %86 = arith.maximumf %84, %85 : vector<288x16xf32>
    %c0_73 = arith.constant 0 : index
    %c0_74 = arith.constant 0 : index
    %87 = vector.load %arg17[%c0_73, %c0_74] : memref<342x4xf32, #tpu.memory_space<vmem>>, vector<288x4xf32>
    %c1_75 = arith.constant 1 : index
    %c0_76 = arith.constant 0 : index
    %88 = vector.load %arg17[%c1_75, %c0_76] : memref<342x4xf32, #tpu.memory_space<vmem>>, vector<288x4xf32>
    %89 = arith.maximumf %87, %88 : vector<288x4xf32>
    %c2_77 = arith.constant 2 : index
    %c0_78 = arith.constant 0 : index
    %90 = vector.load %arg17[%c2_77, %c0_78] : memref<342x4xf32, #tpu.memory_space<vmem>>, vector<288x4xf32>
    %91 = arith.maximumf %89, %90 : vector<288x4xf32>
    %c18_79 = arith.constant 18 : index
    %c0_80 = arith.constant 0 : index
    %92 = vector.load %arg17[%c18_79, %c0_80] : memref<342x4xf32, #tpu.memory_space<vmem>>, vector<288x4xf32>
    %93 = arith.maximumf %91, %92 : vector<288x4xf32>
    %c19_81 = arith.constant 19 : index
    %c0_82 = arith.constant 0 : index
    %94 = vector.load %arg17[%c19_81, %c0_82] : memref<342x4xf32, #tpu.memory_space<vmem>>, vector<288x4xf32>
    %95 = arith.maximumf %93, %94 : vector<288x4xf32>
    %c20_83 = arith.constant 20 : index
    %c0_84 = arith.constant 0 : index
    %96 = vector.load %arg17[%c20_83, %c0_84] : memref<342x4xf32, #tpu.memory_space<vmem>>, vector<288x4xf32>
    %97 = arith.maximumf %95, %96 : vector<288x4xf32>
    %c36_85 = arith.constant 36 : index
    %c0_86 = arith.constant 0 : index
    %98 = vector.load %arg17[%c36_85, %c0_86] : memref<342x4xf32, #tpu.memory_space<vmem>>, vector<288x4xf32>
    %99 = arith.maximumf %97, %98 : vector<288x4xf32>
    %c37_87 = arith.constant 37 : index
    %c0_88 = arith.constant 0 : index
    %100 = vector.load %arg17[%c37_87, %c0_88] : memref<342x4xf32, #tpu.memory_space<vmem>>, vector<288x4xf32>
    %101 = arith.maximumf %99, %100 : vector<288x4xf32>
    %c38_89 = arith.constant 38 : index
    %c0_90 = arith.constant 0 : index
    %102 = vector.load %arg17[%c38_89, %c0_90] : memref<342x4xf32, #tpu.memory_space<vmem>>, vector<288x4xf32>
    %103 = arith.maximumf %101, %102 : vector<288x4xf32>
    %c0_91 = arith.constant 0 : index
    %c0_92 = arith.constant 0 : index
    %104 = vector.load %arg12[%c0_91, %c0_92] : memref<4x8xf32, #tpu.memory_space<vmem>>, vector<4x8xf32>
    %cst_93 = arith.constant dense<0.000000e+00> : vector<288x8xf32>
    %105 = tpu.matmul %103, %104, %cst_93 {dimension_numbers = #tpu.dot_dimension_numbers<[1], [0], [0], [1], [0, 0, 1, 1], [], []>} : vector<288x4xf32>, vector<4x8xf32>, vector<288x8xf32> -> vector<288x8xf32>
    %c0_94 = arith.constant 0 : index
    %c0_95 = arith.constant 0 : index
    %106 = vector.load %arg13[%c0_94, %c0_95] : memref<1x8xf32, #tpu.memory_space<vmem>>, vector<1x8xf32>
    %107 = vector.broadcast %106 : vector<1x8xf32> to vector<288x8xf32>
    %108 = arith.mulf %105, %107 : vector<288x8xf32>
    %c0_96 = arith.constant 0 : index
    %c0_97 = arith.constant 0 : index
    %109 = vector.load %arg14[%c0_96, %c0_97] : memref<1x8xf32, #tpu.memory_space<vmem>>, vector<1x8xf32>
    %110 = vector.broadcast %109 : vector<1x8xf32> to vector<288x8xf32>
    %111 = arith.addf %108, %110 : vector<288x8xf32>
    %cst_98 = arith.constant 0.000000e+00 : f32
    %112 = vector.broadcast %cst_98 : f32 to vector<288x8xf32>
    %113 = arith.maximumf %111, %112 : vector<288x8xf32>
    %114 = tpu.concatenate %34, %86, %113 in 1 : vector<288x8xf32>, vector<288x16xf32>, vector<288x8xf32> -> vector<288x32xf32>
    %c0_99 = arith.constant 0 : index
    %c0_100 = arith.constant 0 : index
    %c0_101 = arith.constant 0 : index
    %115 = vector.load %arg15[%c0_99, %c0_100, %c0_101] : memref<1x288x32xf32, #tpu.memory_space<vmem>>, vector<1x288x32xf32>
    %116 = vector.shape_cast %115 : vector<1x288x32xf32> to vector<288x32xf32>
    %117 = vector.shape_cast %114 : vector<288x32xf32> to vector<1x288x32xf32>
    tpu.vector_store %arg15[%c0_99, %c0_100, %c0_101], %117 {strides = array<i32>} : memref<1x288x32xf32, #tpu.memory_space<vmem>>, vector<1x288x32xf32>,
    return
  }
  func.func @transform_0(%arg0: i32) -> (i32, i32) {
    %c0_i32 = arith.constant 0 : i32
    %c0_i32_0 = arith.constant 0 : i32
    %c0_i32_1 = arith.constant 0 : i32
    return %c0_i32, %c0_i32_0 : i32, i32
  }
  func.func @transform_1(%arg0: i32) -> (i32, i32, i32) {
    %c0_i32 = arith.constant 0 : i32
    %c0_i32_0 = arith.constant 0 : i32
    %c0_i32_1 = arith.constant 0 : i32
    return %arg0, %c0_i32, %c0_i32_0 : i32, i32, i32
  }
  func.func @transform_2(%arg0: i32) -> (i32, i32) {
    %c0_i32 = arith.constant 0 : i32
    %c0_i32_0 = arith.constant 0 : i32
    %c0_i32_1 = arith.constant 0 : i32
    return %c0_i32, %c0_i32_0 : i32, i32
  }
  func.func @transform_3(%arg0: i32) -> (i32, i32) {
    %c0_i32 = arith.constant 0 : i32
    %c0_i32_0 = arith.constant 0 : i32
    %c0_i32_1 = arith.constant 0 : i32
    return %c0_i32, %c0_i32_0 : i32, i32
  }
  func.func @transform_4(%arg0: i32) -> (i32, i32) {
    %c0_i32 = arith.constant 0 : i32
    %c0_i32_0 = arith.constant 0 : i32
    %c0_i32_1 = arith.constant 0 : i32
    return %c0_i32, %c0_i32_0 : i32, i32
  }
  func.func @transform_5(%arg0: i32) -> (i32, i32) {
    %c0_i32 = arith.constant 0 : i32
    %c0_i32_0 = arith.constant 0 : i32
    %c0_i32_1 = arith.constant 0 : i32
    return %c0_i32, %c0_i32_0 : i32, i32
  }
  func.func @transform_6(%arg0: i32) -> (i32, i32) {
    %c0_i32 = arith.constant 0 : i32
    %c0_i32_0 = arith.constant 0 : i32
    %c0_i32_1 = arith.constant 0 : i32
    return %c0_i32, %c0_i32_0 : i32, i32
  }
  func.func @transform_7(%arg0: i32) -> (i32, i32) {
    %c0_i32 = arith.constant 0 : i32
    %c0_i32_0 = arith.constant 0 : i32
    %c0_i32_1 = arith.constant 0 : i32
    return %c0_i32, %c0_i32_0 : i32, i32
  }
  func.func @transform_8(%arg0: i32) -> (i32, i32, i32) {
    %c0_i32 = arith.constant 0 : i32
    %c0_i32_0 = arith.constant 0 : i32
    %c0_i32_1 = arith.constant 0 : i32
    %c0_i32_2 = arith.constant 0 : i32
    return %c0_i32, %c0_i32_0, %c0_i32_1 : i32, i32, i32
  }
  func.func @transform_9(%arg0: i32) -> (i32, i32) {
    %c0_i32 = arith.constant 0 : i32
    %c0_i32_0 = arith.constant 0 : i32
    %c0_i32_1 = arith.constant 0 : i32
    return %c0_i32, %c0_i32_0 : i32, i32
  }
  func.func @transform_10(%arg0: i32) -> (i32, i32) {
    %c0_i32 = arith.constant 0 : i32
    %c0_i32_0 = arith.constant 0 : i32
    %c0_i32_1 = arith.constant 0 : i32
    return %c0_i32, %c0_i32_0 : i32, i32
  }
  func.func @transform_11(%arg0: i32) -> (i32, i32) {
    %c0_i32 = arith.constant 0 : i32
    %c0_i32_0 = arith.constant 0 : i32
    %c0_i32_1 = arith.constant 0 : i32
    return %c0_i32, %c0_i32_0 : i32, i32
  }
  func.func @transform_12(%arg0: i32) -> (i32, i32) {
    %c0_i32 = arith.constant 0 : i32
    %c0_i32_0 = arith.constant 0 : i32
    %c0_i32_1 = arith.constant 0 : i32
    return %c0_i32, %c0_i32_0 : i32, i32
  }
  func.func @transform_13(%arg0: i32) -> (i32, i32) {
    %c0_i32 = arith.constant 0 : i32
    %c0_i32_0 = arith.constant 0 : i32
    %c0_i32_1 = arith.constant 0 : i32
    return %c0_i32, %c0_i32_0 : i32, i32
  }
  func.func @transform_14(%arg0: i32) -> (i32, i32, i32) {
    %c0_i32 = arith.constant 0 : i32
    %c0_i32_0 = arith.constant 0 : i32
    %c0_i32_1 = arith.constant 0 : i32
    return %arg0, %c0_i32, %c0_i32_0 : i32, i32, i32
  }
}

</mosaic_0001>

<bundles_post_ra>
// kernel: inception_forward.1
= control target key start
LH: loop header
LB: loop body
LE: loop exit
PB: predicated region body
PF: predicated region fallthrough
CT: control target
= control target key end

     0   :  { %s9711_s29 = smov 0   ;;  %s12695_s0 = inlined_call_operand.vmem [shape: f32[342,1], index: 0, kind: input, shape index: {}]   ;;  %s12696_s1 = inlined_call_operand.vmem [shape: f32[2,342,4], index: 1, kind: input, shape index: {}]   ;;  %s12697_s2 = inlined_call_operand.vmem [shape: f32[4,8], index: 2, kind: input, shape index: {}]   ;;  %s12698_s3 = inlined_call_operand.vmem [shape: f32[1,8], index: 3, kind: input, shape index: {}]   ;;  %s12699_s4 = inlined_call_operand.vmem [shape: f32[1,8], index: 4, kind: input, shape index: {}]   ;;  %s12700_s5 = inlined_call_operand.vmem [shape: f32[4,8], index: 5, kind: input, shape index: {}]   ;;  %s12701_s6 = inlined_call_operand.vmem [shape: f32[1,8], index: 6, kind: input, shape index: {}]   ;;  %s12702_s7 = inlined_call_operand.vmem [shape: f32[1,8], index: 7, kind: input, shape index: {}]   ;;  %s12703_s8 = inlined_call_operand.vmem [shape: f32[9,8,16], index: 8, kind: input, shape index: {}]   ;;  %s12704_s9 = inlined_call_operand.vmem [shape: f32[1,16], index: 9, kind: input, shape index: {}]   ;;  %s12705_s10 = inlined_call_operand.vmem [shape: f32[1,16], index: 10, kind: input, shape index: {}]   ;;  %s12706_s11 = inlined_call_operand.vmem [shape: f32[4,8], index: 11, kind: input, shape index: {}]   ;;  %s12707_s12 = inlined_call_operand.vmem [shape: f32[1,8], index: 12, kind: input, shape index: {}]   ;;  %s12708_s13 = inlined_call_operand.vmem [shape: f32[1,8], index: 13, kind: input, shape index: {}]   ;;  %s12709_s14 = inlined_call_operand.vmem [shape: f32[2,288,32], index: 14, kind: output, shape index: {}]  }
   0x1 LB: > { %s7643_s30 = sadd.s32 4294967295, %s9629_s29   ;;  %p7647_p0 = scmp.ge.s32.totalorder %s9629_s29, 1  ;;  %s9629_s29 = sphi %s9711_s29, %s24_s29  }
   0x2   : > { %p412_p1 = scmp.lt.s32.totalorder %s9629_s29, 3 }
   0x4   : > { %p413_p2 = pnand %p7647_p0, %p412_p1 }
   0x6   : > { %416 = sbr.rel (%p413_p2) target bundleno = 1173 (0x495), region = 76 }
   0xd   : > { %v554_v0 = vld [vmem:[%s12700_s5] sm:$0xf]  ;;  %vm685_vm0 = vcmask 1043456   ;;  %p458_p3 = scmp.lt.s32.totalorder %s7643_s30, 1  ;;  %v12715_v1 = vmov 0.0   ;;  %vm9632_vm1 = vmmov 0  }
   0xe   : > { %8561 = vmatprep.subr.mxu0 %v12715_v1  ;;  %8563 = vmatprep.mubr.msk.f32.mxu0 %vm9632_vm1, %v12715_v1  ;;  %v478_v2 = vld [vmem:[%s12695_s0 + $0x50] sm:$0xff]  ;;  %v480_v3 = vld [vmem:[%s12695_s0 + $0x60] sm:$0xff]  ;;  %v12710_v4 = vmov 0   ;;  %v479_v5 = vld [vmem:[%s12695_s0 + $0x58] sm:$0xff]  ;;  %vm555_vm6 = vcmask 31744   ;;  %s9634_s28 = smov 24  }
   0xf   : > { %8562 = vmatpush3.msk.msra.mxu0 %vm685_vm0, %v554_v0  ;;  %s12835_s30 = smov (!%p458_p3, %s7643_s30), 1  ;;  %9613 = vset.pattern.permute.xlu0 %v12710_v4  ;;  %vm1425_vm2 = vcmp.ne.f32.partialorder %v478_v2, 0.0  ;;  %vm1427_vm3 = vcmp.ne.f32.partialorder %v480_v3, 0.0  ;;  %v481_v6 = vld [vmem:[%s12695_s0 + $0x68] sm:$0xff]  ;;  %vm1426_vm4 = vcmp.ne.f32.partialorder %v479_v5, 0.0  ;;  %v482_v9 = vld [vmem:[%s12695_s0 + $0x70] sm:$0xff] }
  0x10   : > { %9614 = vset.pattern.permute.xlu1 %v12710_v4  ;;  %1164 = vperm.xlu0 %9613, %v478_v2   ;;  %v9743_v7 = vsel %vm1425_vm2, 1, %v12710_v4  ;;  %v9746_v8 = vsel %vm1427_vm3, 1, %v12710_v4  ;;  %s9598_s25 = smul.u32 344, %s12835_s30  ;;  %v483_v10 = vld [vmem:[%s12695_s0 + $0x78] sm:$0xff]  ;;  %v9756_v11 = vsel %vm1426_vm4, 1, %v12710_v4  ;;  %vm1428_vm5 = vcmp.ne.f32.partialorder %v481_v6, 0.0 }
  0x11   : > { %1174 = vperm.xlu1 %9614, %v480_v3   ;;  %v484_v12 = vld [vmem:[%s12695_s0 + $0x80] sm:$0xff]  ;;  %v9762_v13 = vsel %vm1428_vm5, 1, %v12710_v4  ;;  %vm1429_vm7 = vcmp.ne.f32.partialorder %v482_v9, 0.0  ;;  %vm1430_vm8 = vcmp.ne.f32.partialorder %v483_v10, 0.0  ;;  %v485_v14 = vld [vmem:[%s12695_s0 + $0x88] sm:$0xff]  ;;  %v486_v18 = vld [vmem:[%s12695_s0 + $0x90] sm:$0xff] }
  0x12   : > { %s9767_s20 = scalar_lea.vmem %s12696_s1, %s9598_s25  ;;  %v9773_v15 = vsel %vm1429_vm7, 1, %v12710_v4  ;;  %v9776_v16 = vsel %vm1430_vm8, 1, %v12710_v4  ;;  %vm1431_vm9 = vcmp.ne.f32.partialorder %v484_v12, 0.0  ;;  %vm1432_vm10 = vcmp.ne.f32.partialorder %v485_v14, 0.0  ;;  %v487_v23 = vld [vmem:[%s12695_s0 + $0x98] sm:$0xff]  ;;  %v488_v24 = vld [vmem:[%s12695_s0 + $0xa0] sm:$0xff] }
  0x13   : > { %v9779_v17 = vld [vmem:[%s9767_s20] sm:$0xff]  ;;  %v9785_v19 = vsel %vm1431_vm9, 1, %v12710_v4  ;;  %v9790_v20 = vsel %vm1432_vm10, 1, %v12710_v4  ;;  %vm1433_vm11 = vcmp.ne.f32.partialorder %v486_v18, 0.0  ;;  %v9795_v21 = vld [vmem:[%s9767_s20 + $0x8] sm:$0xff]  ;;  %vm1434_vm12 = vcmp.ne.f32.partialorder %v487_v23, 0.0 }
  0x14   : > { %1169 = vperm.xlu0 %9613, %v479_v5   ;;  %8564 = vmatmul.mubr.msk.f32.vlgmr.msra.gmra.mrb[0].mxu0 %vm555_vm6, %v9779_v17  ;;  %v9798_v22 = vsel %vm1433_vm11, 1, %v12710_v4  ;;  %v9809_v25 = vsel %vm1434_vm12, 1, %v12710_v4  ;;  %vm1435_vm13 = vcmp.ne.f32.partialorder %v488_v24, 0.0  ;;  %v9814_v26 = vld [vmem:[%s9767_s20 + $0x10] sm:$0xff]  ;;  %v489_v28 = vld [vmem:[%s12695_s0 + $0xa8] sm:$0xff]  ;;  %v9830_v30 = vld [vmem:[%s9767_s20 + $0x18] sm:$0xff] }
  0x15   : > { %1179 = vperm.xlu1 %9614, %v481_v6   ;;  %8566 = vmatprep.mubr.msk.f32.mxu0 %vm9632_vm1, %v12715_v1  ;;  %v9817_v27 = vsel %vm1435_vm13, 1, %v12710_v4  ;;  %vm1436_vm14 = vcmp.ne.f32.partialorder %v489_v28, 0.0  ;;  %v490_v31 = vld [vmem:[%s12695_s0 + $0xb0] sm:$0xff]  ;;  %v9840_v32 = vld [vmem:[%s9767_s20 + $0x20] sm:$0xff]  ;;  %v491_v33 = vld [vmem:[%s12695_s0 + $0xb8] sm:$0xff]  ;;  %s9635_s19 = smov 8  }
  0x16   : > { %v9825_v29 = vsel %vm1436_vm14, 1, %v12710_v4  ;;  %vm1437_vm15 = vcmp.ne.f32.partialorder %v490_v31, 0.0  ;;  %v492_v34 = vld [vmem:[%s12695_s0 + $0xc0] sm:$0xff]  ;;  %v493_v35 = vld [vmem:[%s12695_s0 + $0xc8] sm:$0xff]  ;;  %vm1438_vm2 = vcmp.ne.f32.partialorder %v491_v33, 0.0  ;;  %v494_v37 = vld [vmem:[%s12695_s0 + $0xd0] sm:$0xff] }
  0x17   : > { %v9852_v36 = vsel %vm1437_vm15, 1, %v12710_v4  ;;  %v9860_v38 = vsel %vm1438_vm2, 1, %v12710_v4  ;;  %vm1439_vm3 = vcmp.ne.f32.partialorder %v492_v34, 0.0  ;;  %vm1440_vm4 = vcmp.ne.f32.partialorder %v493_v35, 0.0  ;;  %v9865_v39 = vld [vmem:[%s9767_s20 + $0x28] sm:$0xff]  ;;  %v495_v42 = vld [vmem:[%s12695_s0 + $0xd8] sm:$0xff] }
  0x18   : > { %1184 = vperm.xlu0 %9613, %v482_v9   ;;  %8567 = vmatmul.mubr.msk.f32.gmra.mrb[2].mxu0 %vm555_vm6, %v9795_v21  ;;  %v9868_v40 = vsel %vm1439_vm3, 1, %v12710_v4  ;;  %v9871_v41 = vsel %vm1440_vm4, 1, %v12710_v4  ;;  %vm1441_vm5 = vcmp.ne.f32.partialorder %v494_v37, 0.0  ;;  %v496_v44 = vld [vmem:[%s12695_s0 + $0xe0] sm:$0xff]  ;;  %vm1442_vm7 = vcmp.ne.f32.partialorder %v495_v42, 0.0  ;;  %v9890_v46 = vld [vmem:[%s9767_s20 + $0x30] sm:$0xff] }
  0x19   : > { %1189 = vperm.xlu1 %9614, %v483_v10   ;;  %8569 = vmatprep.mubr.msk.f32.mxu0 %vm9632_vm1, %v12715_v1  ;;  %v9877_v43 = vsel %vm1441_vm5, 1, %v12710_v4  ;;  %v9885_v45 = vsel %vm1442_vm7, 1, %v12710_v4  ;;  %vm1443_vm8 = vcmp.ne.f32.partialorder %v496_v44, 0.0  ;;  %v497_v48 = vld [vmem:[%s12695_s0 + $0xe8] sm:$0xff]  ;;  %v498_v49 = vld [vmem:[%s12695_s0 + $0xf0] sm:$0xff]  ;;  %v9909_v51 = vld [vmem:[%s9767_s20 + $0x38] sm:$0xff] }
  0x1a   : > { %v9893_v47 = vsel %vm1443_vm8, 1, %v12710_v4  ;;  %vm1444_vm9 = vcmp.ne.f32.partialorder %v497_v48, 0.0  ;;  %vm1445_vm10 = vcmp.ne.f32.partialorder %v498_v49, 0.0  ;;  %v499_v53 = vld [vmem:[%s12695_s0 + $0xf8] sm:$0xff]  ;;  %v500_v54 = vld [vmem:[%s12695_s0 + $0x100] sm:$0xff]  ;;  %v501_v58 = vld [vmem:[%s12695_s0 + $0x108] sm:$0xff] }
  0x1b   : > { %v9904_v50 = vsel %vm1444_vm9, 1, %v12710_v4  ;;  %v9912_v52 = vsel %vm1445_vm10, 1, %v12710_v4  ;;  %vm1446_vm11 = vcmp.ne.f32.partialorder %v499_v53, 0.0  ;;  %vm1447_vm12 = vcmp.ne.f32.partialorder %v500_v54, 0.0  ;;  %v9928_v56 = vld [vmem:[%s9767_s20 + $0x40] sm:$0xff]  ;;  %v502_v59 = vld [vmem:[%s12695_s0 + $0x110] sm:$0xff] }
  0x1c   : > { %1194 = vperm.xlu0 %9613, %v484_v12   ;;  %8570 = vmatmul.mubr.msk.f32.gmra.mrb[4].mxu0 %vm555_vm6, %v9814_v26  ;;  %v9923_v55 = vsel %vm1446_vm11, 1, %v12710_v4  ;;  %v9931_v57 = vsel %vm1447_vm12, 1, %v12710_v4  ;;  %vm1448_vm13 = vcmp.ne.f32.partialorder %v501_v58, 0.0  ;;  %vm1449_vm14 = vcmp.ne.f32.partialorder %v502_v59, 0.0  ;;  %v9947_v61 = vld [vmem:[%s9767_s20 + $0x48] sm:$0xff]  ;;  %v503_v63 = vld [vmem:[%s12695_s0 + $0x118] sm:$0xff] }
  0x1d   : > { %1199 = vperm.xlu1 %9614, %v485_v14   ;;  %8572 = vmatprep.mubr.msk.f32.mxu0 %vm9632_vm1, %v12715_v1  ;;  %v9942_v60 = vsel %vm1448_vm13, 1, %v12710_v4  ;;  %v9950_v62 = vsel %vm1449_vm14, 1, %v12710_v4  ;;  %v504_v0 = vld [vmem:[%s12695_s0 + $0x120] sm:$0xff]  ;;  %vm1450_vm15 = vcmp.ne.f32.partialorder %v503_v63, 0.0  ;;  %v9966_v3 = vld [vmem:[%s9767_s20 + $0x50] sm:$0xff]  ;;  %v505_v6 = vld [vmem:[%s12695_s0 + $0x128] sm:$0xff] }
  0x1e   : > { %v9961_v2 = vsel %vm1450_vm15, 1, %v12710_v4  ;;  %vm1451_vm2 = vcmp.ne.f32.partialorder %v504_v0, 0.0  ;;  %v506_v9 = vld [vmem:[%s12695_s0 + $0x130] sm:$0xff]  ;;  %vm1452_vm3 = vcmp.ne.f32.partialorder %v505_v6, 0.0  ;;  %v1796_v12 = vld [vmem:[%s12697_s2] sm:$0xf] }
  0x1f   : > { %v9969_v5 = vsel %vm1451_vm2, 1, %v12710_v4  ;;  %v9980_v10 = vsel %vm1452_vm3, 1, %v12710_v4  ;;  %vm1453_vm4 = vcmp.ne.f32.partialorder %v506_v9, 0.0  ;;  %v9988_v14 = vld [vmem:[%s9767_s20 + $0x58] sm:$0xff]  ;;  %8692 = vmatprep.subr.msk.mxu0 %vm685_vm0, %v1796_v12 }
  0x20   : > { %1204 = vperm.xlu0 %9613, %v486_v18   ;;  %8573 = vmatmul.mubr.msk.f32.gmra.mrb[6].mxu0 %vm555_vm6, %v9830_v30  ;;  %v9992_v18 = vsel %vm1453_vm4, 1, %v12710_v4 }
  0x21   : > { %1209 = vperm.xlu1 %9614, %v487_v23   ;;  %8575 = vmatprep.mubr.msk.f32.mxu0 %vm9632_vm1, %v12715_v1  ;;  %v507_v23 = vld [vmem:[%s12695_s0 + $0x138] sm:$0xff] }
  0x22   : > { %8693 = vmatpush3.msk.msra.mxu0 %vm685_vm0, %v1796_v12  ;;  %vm1454_vm5 = vcmp.ne.f32.partialorder %v507_v23, 0.0  ;;  %v468_v12 = vld [vmem:[%s12695_s0] sm:$0xff] }
  0x23   : > { %vm1415_vm8 = vcmp.ne.f32.partialorder %v468_v12, 0.0 }
  0x24   : > { %1214 = vperm.xlu0 %9613, %v488_v24   ;;  %8576 = vmatmul.mubr.msk.f32.gmra.mrb[8].mxu0 %vm555_vm6, %v9840_v32  ;;  %v508_v24 = vld [vmem:[%s12695_s0 + $0x140] sm:$0xff] }
  0x25   : > { %1219 = vperm.xlu1 %9614, %v489_v28   ;;  %8578 = vmatprep.mubr.msk.f32.mxu0 %vm9632_vm1, %v12715_v1  ;;  %v10004_v28 = vsel %vm1454_vm5, 1, %v12710_v4  ;;  %vm1455_vm7 = vcmp.ne.f32.partialorder %v508_v24, 0.0 }
  0x28   : > { %1224 = vperm.xlu0 %9613, %v490_v31   ;;  %8579 = vmatmul.mubr.msk.f32.gmra.mrb[10].mxu0 %vm555_vm6, %v9865_v39  ;;  %v10009_v31 = vld [vmem:[%s9767_s20 + $0x60] sm:$0xff] }
  0x29   : > { %1229 = vperm.xlu1 %9614, %v491_v33   ;;  %8581 = vmatprep.mubr.msk.f32.mxu0 %vm9632_vm1, %v12715_v1  ;;  %v470_v33 = vld [vmem:[%s12695_s0 + $0x10] sm:$0xff] }
  0x2a   : > { %vm1417_vm10 = vcmp.ne.f32.partialorder %v470_v33, 0.0 }
  0x2c   : > { %1234 = vperm.xlu0 %9613, %v492_v34   ;;  %8582 = vmatmul.mubr.msk.f32.gmra.mrb[12].mxu0 %vm555_vm6, %v9890_v46  ;;  %v10015_v34 = vsel %vm1455_vm7, 1, %v12710_v4  ;;  %v469_v4 = vld [vmem:[%s12695_s0 + $0x8] sm:$0xff] }
  0x2d   : > { %1239 = vperm.xlu1 %9614, %v493_v35   ;;  %8584 = vmatprep.mubr.msk.f32.mxu0 %vm9632_vm1, %v12715_v1  ;;  %v471_v35 = vld [vmem:[%s12695_s0 + $0x18] sm:$0xff]  ;;  %vm1416_vm9 = vcmp.ne.f32.partialorder %v469_v4, 0.0 }
  0x2e   : > { %vm1418_vm11 = vcmp.ne.f32.partialorder %v471_v35, 0.0 }
  0x30   : > { %1244 = vperm.xlu0 %9613, %v494_v37   ;;  %8585 = vmatmul.mubr.msk.f32.gmra.mrb[14].mxu0 %vm555_vm6, %v9909_v51  ;;  %v10025_v37 = vld [vmem:[%s9767_s20 + $0x68] sm:$0xff] }
  0x31   : > { %1249 = vperm.xlu1 %9614, %v495_v42   ;;  %8587 = vmatprep.mubr.msk.f32.mxu0 %vm9632_vm1, %v12715_v1  ;;  %v472_v42 = vld [vmem:[%s12695_s0 + $0x20] sm:$0xff] }
  0x32   : > { %vm1419_vm12 = vcmp.ne.f32.partialorder %v472_v42, 0.0 }
  0x34   : > { %1254 = vperm.xlu0 %9613, %v496_v44   ;;  %8588 = vmatmul.mubr.msk.f32.gmra.mrb[16].mxu0 %vm555_vm6, %v9928_v56  ;;  %v473_v44 = vld [vmem:[%s12695_s0 + $0x28] sm:$0xff] }
  0x35   : > { %1259 = vperm.xlu1 %9614, %v497_v48   ;;  %8590 = vmatprep.mubr.msk.f32.mxu0 %vm9632_vm1, %v12715_v1  ;;  %v10038_v48 = vld [vmem:[%s9767_s20 + $0x70] sm:$0xff]  ;;  %vm1420_vm13 = vcmp.ne.f32.partialorder %v473_v44, 0.0 }
  0x38   : > { %1264 = vperm.xlu0 %9613, %v498_v49   ;;  %8591 = vmatmul.mubr.msk.f32.gmra.mrb[18].mxu0 %vm555_vm6, %v9947_v61  ;;  %v474_v49 = vld [vmem:[%s12695_s0 + $0x30] sm:$0xff] }
  0x39   : > { %1269 = vperm.xlu1 %9614, %v499_v53   ;;  %8593 = vmatprep.mubr.msk.f32.mxu0 %vm9632_vm1, %v12715_v1  ;;  %v475_v53 = vld [vmem:[%s12695_s0 + $0x38] sm:$0xff]  ;;  %vm1421_vm14 = vcmp.ne.f32.partialorder %v474_v49, 0.0 }
  0x3a   : > { %vm1422_vm15 = vcmp.ne.f32.partialorder %v475_v53, 0.0 }
  0x3c   : > { %1274 = vperm.xlu0 %9613, %v500_v54   ;;  %8594 = vmatmul.mubr.msk.f32.gmra.mrb[20].mxu0 %vm555_vm6, %v9966_v3  ;;  %v10051_v54 = vld [vmem:[%s9767_s20 + $0x78] sm:$0xff] }
  0x3d   : > { %1279 = vperm.xlu1 %9614, %v501_v58   ;;  %8596 = vmatprep.mubr.msk.f32.mxu0 %vm9632_vm1, %v12715_v1  ;;  %v476_v58 = vld [vmem:[%s12695_s0 + $0x40] sm:$0xff] }
  0x3e   : > { %vm1423_vm2 = vcmp.ne.f32.partialorder %v476_v58, 0.0 }
  0x40   : > { %1284 = vperm.xlu0 %9613, %v502_v59   ;;  %8597 = vmatmul.mubr.msk.f32.gmra.mrb[22].mxu0 %vm555_vm6, %v9988_v14  ;;  %v10061_v59 = vld [vmem:[%s12695_s0 + $0x48] sm:$0xff] }
  0x41   : > { %1289 = vperm.xlu1 %9614, %v503_v63   ;;  %8599 = vmatprep.mubr.msk.f32.mxu0 %vm9632_vm1, %v12715_v1  ;;  %v10066_v63 = vld [vmem:[%s9767_s20 + $0x80] sm:$0xff]  ;;  %vm1424_vm3 = vcmp.ne.f32.partialorder %v10061_v59, 0.0 }
  0x42   : > { %12719 = vst [vmem:[#allocation4_spill] sm:$0xff] %v10066_v63 }
  0x44   : > { %1294 = vperm.xlu0 %9613, %v504_v0   ;;  %8600 = vmatmul.mubr.msk.f32.gmra.mrb[24].mxu0 %vm555_vm6, %v10009_v31  ;;  %v10074_v0 = vld [vmem:[%s9767_s20 + $0x88] sm:$0xff] }
  0x45   : > { %1124 = vperm.xlu1 %9614, %v470_v33   ;;  %8602 = vmatprep.mubr.msk.f32.mxu0 %vm9632_vm1, %v12715_v1  ;;  %12720 = vst [vmem:[#allocation5_spill] sm:$0xff] %v10074_v0 }
  0x48   : > { %1129 = vperm.xlu0 %9613, %v471_v35   ;;  %8603 = vmatmul.mubr.msk.f32.gmra.mrb[26].mxu0 %vm555_vm6, %v10025_v37 }
  0x49   : > { %1134 = vperm.xlu1 %9614, %v472_v42   ;;  %8605 = vmatprep.mubr.msk.f32.mxu0 %vm9632_vm1, %v12715_v1  ;;  %v10121_v42 = vld [vmem:[%s9767_s20 + $0xb0] sm:$0xff] }
  0x4c   : > { %1139 = vperm.xlu0 %9613, %v473_v44   ;;  %8606 = vmatmul.mubr.msk.f32.gmra.mrb[28].mxu0 %vm555_vm6, %v10038_v48 }
  0x4d   : > { %1144 = vperm.xlu1 %9614, %v474_v49   ;;  %8608 = vmatprep.mubr.msk.f32.mxu0 %vm9632_vm1, %v12715_v1  ;;  %v10130_v49 = vld [vmem:[%s9767_s20 + $0xb8] sm:$0xff] }
  0x50   : > { %1149 = vperm.xlu0 %9613, %v475_v53   ;;  %8609 = vmatmul.mubr.msk.f32.gmra.mrb[30].mxu0 %vm555_vm6, %v10051_v54 }
  0x51   : > { %1154 = vperm.xlu1 %9614, %v476_v58   ;;  %8611 = vmatprep.mubr.msk.f32.mxu0 %vm9632_vm1, %v12715_v1  ;;  %v10140_v58 = vld [vmem:[%s9767_s20 + $0xc0] sm:$0xff] }
  0x54   : > { %1159 = vperm.xlu0 %9613, %v10061_v59   ;;  %8612 = vmatmul.mubr.msk.f32.gmra.mrb[32].mxu0 %vm555_vm6, %v10066_v63  ;;  %v10148_v59 = vld [vmem:[%s9767_s20 + $0xc8] sm:$0xff] }
  0x55   : > { %1299 = vperm.xlu1 %9614, %v505_v6   ;;  %8614 = vmatprep.mubr.msk.f32.mxu0 %vm9632_vm1, %v12715_v1  ;;  %v10087_v6 = vld [vmem:[%s9767_s20 + $0x90] sm:$0xff] }
  0x56   : > { %12721 = vst [vmem:[#allocation6_spill] sm:$0xff] %v10087_v6 }
  0x58   : > { %1304 = vperm.xlu0 %9613, %v506_v9   ;;  %8615 = vmatmul.mubr.msk.f32.gmra.mrb[34].mxu0 %vm555_vm6, %v10074_v0  ;;  %v10094_v9 = vld [vmem:[%s9767_s20 + $0x98] sm:$0xff]  ;;  %v12722_v0 = vmov 0  }
  0x59   : > { %1114 = vperm.xlu1 %9614, %v468_v12   ;;  %8617 = vmatprep.mubr.msk.f32.mxu0 %vm9632_vm1, %v12715_v1  ;;  %v1458_v63 = vsel %vm1415_vm8, 1, %v12722_v0  ;;  %v1459_v12 = vsel %vm1416_vm9, 1, %v12722_v0  ;;  %v1462_v33 = vsel %vm1419_vm12, 1, %v12722_v0  ;;  %v1463_v35 = vsel %vm1420_vm13, 1, %v12722_v0 }
  0x5a   : > { %v1465_v44 = vsel %vm1422_vm15, 1, %v12722_v0  ;;  %v1467_v53 = vsel %vm1424_vm3, 1, %v12722_v0  ;;  %vm1370_vm13 = vcmask 64512  }
  0x5c   : > { %1119 = vperm.xlu0 %9613, %v469_v4   ;;  %8618 = vmatmul.mubr.msk.f32.gmra.mrb[36].mxu0 %vm555_vm6, %v10087_v6  ;;  %v1460_v6 = vsel %vm1417_vm10, 1, %v12722_v0  ;;  %v1461_v4 = vsel %vm1418_vm11, 1, %v12722_v0 }
  0x5d   : > { %1309 = vperm.xlu1 %9614, %v507_v23   ;;  %8620 = vmatprep.mubr.msk.f32.mxu0 %vm9632_vm1, %v12715_v1  ;;  %v10103_v23 = vld [vmem:[%s9767_s20 + $0xa0] sm:$0xff] }
  0x60   : > { %1314 = vperm.xlu0 %9613, %v508_v24   ;;  %8621 = vmatmul.mubr.msk.f32.gmra.mrb[38].mxu0 %vm555_vm6, %v10094_v9  ;;  %v10112_v24 = vld [vmem:[%s9767_s20 + $0xa8] sm:$0xff] }
  0x61   : > { %1502 = vperm.xlu1 %9614, %v1458_v63   ;;  %8623 = vmatprep.mubr.msk.f32.mxu0 %vm9632_vm1, %v12715_v1  ;;  %v1464_v63 = vsel %vm1421_vm14, 1, %v12722_v0 }
  0x64   : > { %1505 = vperm.xlu0 %9613, %v1459_v12   ;;  %8624 = vmatmul.mubr.msk.f32.gmra.mrb[40].mxu0 %vm555_vm6, %v10103_v23  ;;  %v10157_v12 = vld [vmem:[%s9767_s20 + $0xd0] sm:$0xff] }
  0x65   : > { %1508 = vperm.xlu1 %9614, %v1460_v6   ;;  %8626 = vmatprep.mubr.msk.f32.mxu0 %vm9632_vm1, %v12715_v1  ;;  %v1466_v6 = vsel %vm1423_vm2, 1, %v12722_v0 }
  0x68   : > { %1511 = vperm.xlu0 %9613, %v1461_v4   ;;  %8627 = vmatmul.mubr.msk.f32.gmra.mrb[42].mxu0 %vm555_vm6, %v10112_v24 }
  0x69   : > { %1514 = vperm.xlu1 %9614, %v1462_v33   ;;  %8629 = vmatprep.mubr.msk.f32.mxu0 %vm9632_vm1, %v12715_v1 }
  0x6c   : > { %1517 = vperm.xlu0 %9613, %v1463_v35   ;;  %8630 = vmatmul.mubr.msk.f32.gmra.mrb[44].mxu0 %vm555_vm6, %v10121_v42 }
  0x6d   : > { %1520 = vperm.xlu1 %9614, %v1464_v63   ;;  %8632 = vmatprep.mubr.msk.f32.mxu0 %vm9632_vm1, %v12715_v1 }
  0x70   : > { %1523 = vperm.xlu0 %9613, %v1465_v44   ;;  %8633 = vmatmul.mubr.msk.f32.gmra.mrb[46].mxu0 %vm555_vm6, %v10130_v49 }
  0x71   : > { %1526 = vperm.xlu1 %9614, %v1466_v6   ;;  %8635 = vmatprep.mubr.msk.f32.mxu0 %vm9632_vm1, %v12715_v1 }
  0x74   : > { %1529 = vperm.xlu0 %9613, %v1467_v53   ;;  %8636 = vmatmul.mubr.msk.f32.gmra.mrb[48].mxu0 %vm555_vm6, %v10140_v58  ;;  %v510_v53 = vld [vmem:[%s12695_s0 + $0x150] sm:$0x3f] }
  0x75   : > { %1532 = vperm.xlu1 %9614, %v9743_v7   ;;  %8638 = vmatprep.mubr.msk.f32.mxu0 %vm9632_vm1, %v12715_v1  ;;  %v10166_v7 = vld [vmem:[%s9767_s20 + $0xd8] sm:$0xff]  ;;  %vm1457_vm5 = vcmp.ne.f32.partialorder %v510_v53, 0.0 }
  0x78   : > { %1535 = vperm.xlu0 %9613, %v9756_v11   ;;  %8639 = vmatmul.mubr.msk.f32.gmra.mrb[50].mxu0 %vm555_vm6, %v10148_v59  ;;  %v10184_v11 = vld [vmem:[%s9767_s20 + $0xe8] sm:$0xff] }
  0x79   : > { %1538 = vperm.xlu1 %9614, %v9746_v8   ;;  %8641 = vmatprep.mubr.msk.f32.mxu0 %vm9632_vm1, %v12715_v1  ;;  %v10175_v8 = vld [vmem:[%s9767_s20 + $0xe0] sm:$0xff] }
  0x7c   : > { %1541 = vperm.xlu0 %9613, %v9762_v13   ;;  %8642 = vmatmul.mubr.msk.f32.gmra.mrb[52].mxu0 %vm555_vm6, %v10157_v12  ;;  %v10189_v13 = vld [vmem:[%s12703_s8 + $0x8] sm:$0xff] }
  0x7d   : > { %1544 = vperm.xlu1 %9614, %v9773_v15   ;;  %8644 = vmatprep.mubr.msk.f32.mxu0 %vm9632_vm1, %v12715_v1  ;;  %v10199_v15 = vld [vmem:[%s9767_s20 + $0xf0] sm:$0xff] }
  0x7e   : > { %8748 = vmatprep.subr.mxu0 %v10189_v13 }
  0x80   : > { %1547 = vperm.xlu0 %9613, %v9776_v16   ;;  %8645 = vmatmul.mubr.msk.f32.gmra.mrb[54].mxu0 %vm555_vm6, %v10166_v7  ;;  %v10208_v16 = vld [vmem:[%s9767_s20 + $0xf8] sm:$0xff] }
  0x81   : > { %1550 = vperm.xlu1 %9614, %v9785_v19   ;;  %8647 = vmatprep.mubr.msk.f32.mxu0 %vm9632_vm1, %v12715_v1 }
  0x84   : > { %1553 = vperm.xlu0 %9613, %v9790_v20   ;;  %8648 = vmatmul.mubr.msk.f32.gmra.mrb[56].mxu0 %vm555_vm6, %v10175_v8 }
  0x85   : > { %1556 = vperm.xlu1 %9614, %v9798_v22   ;;  %8650 = vmatprep.mubr.msk.f32.mxu0 %vm9632_vm1, %v12715_v1  ;;  %v10221_v22 = vld [vmem:[%s9767_s20 + $0x100] sm:$0xff] }
  0x88   : > { %1559 = vperm.xlu0 %9613, %v9809_v25   ;;  %8651 = vmatmul.mubr.msk.f32.gmra.mrb[58].mxu0 %vm555_vm6, %v10184_v11 }
  0x89   : > { %1562 = vperm.xlu1 %9614, %v9817_v27   ;;  %8653 = vmatprep.mubr.msk.f32.mxu0 %vm9632_vm1, %v12715_v1 }
  0x8c   : > { %1565 = vperm.xlu0 %9613, %v9825_v29   ;;  %8654 = vmatmul.mubr.msk.f32.gmra.mrb[60].mxu0 %vm555_vm6, %v10199_v15  ;;  %v10234_v29 = vld [vmem:[%s9767_s20 + $0x108] sm:$0xff] }
  0x8d   : > { %1568 = vperm.xlu1 %9614, %v9852_v36   ;;  %8656 = vmatprep.mubr.msk.f32.mxu0 %vm9632_vm1, %v12715_v1 }
  0x8f   : > { %v10210_v19 = vpop.permute.xlu0 %1164 }
  0x90   : > { %v10212_v20 = vpop.permute.xlu1 %1174  ;;  %1571 = vperm.xlu0 %9613, %v9860_v38   ;;  %8657 = vmatmul.mubr.msk.f32.gmra.mrb[62].mxu0 %vm555_vm6, %v10208_v16 }
  0x91   : > { %1574 = vperm.xlu1 %9614, %v9868_v40   ;;  %8659 = vmatprep.mubr.msk.f32.mxu0 %vm9632_vm1, %v12715_v1  ;;  %v10247_v40 = vld [vmem:[%s9767_s20 + $0x110] sm:$0xff] }
  0x93   : > { %v10223_v25 = vpop.permute.xlu0 %1169 }
  0x94   : > { %v10225_v27 = vpop.permute.xlu1 %1179  ;;  %1577 = vperm.xlu0 %9613, %v9871_v41   ;;  %8660 = vmatmul.mubr.msk.f32.gmra.mrb[64].mxu0 %vm555_vm6, %v10221_v22 }
  0x95   : > { %1580 = vperm.xlu1 %9614, %v9877_v43   ;;  %8662 = vmatprep.mubr.msk.f32.mxu0 %vm9632_vm1, %v12715_v1 }
  0x97   : > { %v10236_v36 = vpop.permute.xlu0 %1184 }
  0x98   : > { %v10238_v38 = vpop.permute.xlu1 %1189  ;;  %1583 = vperm.xlu0 %9613, %v9885_v45   ;;  %8663 = vmatmul.mubr.msk.f32.gmra.mrb[66].mxu0 %vm555_vm6, %v10234_v29  ;;  %v10260_v45 = vld [vmem:[%s9767_s20 + $0x118] sm:$0xff] }
  0x99   : > { %1586 = vperm.xlu1 %9614, %v9893_v47   ;;  %8665 = vmatprep.mubr.msk.f32.mxu0 %vm9632_vm1, %v12715_v1 }
  0x9b   : > { %v10249_v41 = vpop.permute.xlu0 %1194 }
  0x9c   : > { %12723 = vst [vmem:[#allocation7_spill] sm:$0xff] %v10249_v41  ;;  %v10251_v43 = vpop.permute.xlu1 %1199  ;;  %1589 = vperm.xlu0 %9613, %v9904_v50   ;;  %8666 = vmatmul.mubr.msk.f32.gmra.mrb[68].mxu0 %vm555_vm6, %v10247_v40  ;;  %v10273_v50 = vld [vmem:[%s9767_s20 + $0x120] sm:$0xff] }
  0x9d   : > { %12724 = vst [vmem:[#allocation8_spill] sm:$0xff] %v10251_v43  ;;  %1592 = vperm.xlu1 %9614, %v9912_v52   ;;  %8668 = vmatprep.mubr.msk.f32.mxu0 %vm9632_vm1, %v12715_v1 }
  0x9f   : > { %v10262_v47 = vpop.permute.xlu0 %1204 }
  0xa0   : > { %12725 = vst [vmem:[#allocation9_spill] sm:$0xff] %v10262_v47  ;;  %v10264_v4 = vpop.permute.xlu1 %1209  ;;  %1595 = vperm.xlu0 %9613, %v9923_v55   ;;  %8669 = vmatmul.mubr.msk.f32.gmra.mrb[70].mxu0 %vm555_vm6, %v10260_v45  ;;  %v10286_v55 = vld [vmem:[%s9767_s20 + $0x128] sm:$0xff] }
  0xa1   : > { %12726 = vst [vmem:[#allocation10_spill] sm:$0xff] %v10264_v4  ;;  %1598 = vperm.xlu1 %9614, %v9931_v57   ;;  %8671 = vmatprep.mubr.msk.f32.mxu0 %vm9632_vm1, %v12715_v1  ;;  %v10291_v57 = vld [vmem:[%s12703_s8 + $0x10] sm:$0xff] }
  0xa2   : > { %9308 = vmatprep.subr.mxu1 %v10291_v57 }
  0xa3   : > { %v10275_v52 = vpop.permute.xlu0 %1214  ;;  %9309 = vmatpush3.msra.mxu1 %v10291_v57 }
  0xa4   : > { %12727 = vst [vmem:[#allocation11_spill] sm:$0xff] %v10275_v52  ;;  %v10277_v33 = vpop.permute.xlu1 %1219  ;;  %1601 = vperm.xlu0 %9613, %v9942_v60   ;;  %8672 = vmatmul.mubr.msk.f32.gmra.mrb[72].mxu0 %vm555_vm6, %v10273_v50  ;;  %v1774_v52 = vld [vmem:[%s9767_s20 + $0x83] sm:$0xff] }
  0xa5   : > { %12728 = vst [vmem:[#allocation12_spill] sm:$0xff] %v10277_v33  ;;  %1604 = vperm.xlu1 %9614, %v9950_v62   ;;  %8674 = vmatprep.mubr.msk.f32.mxu0 %vm9632_vm1, %v12715_v1  ;;  %v10306_v62 = vld [vmem:[%s9767_s20 + $0x130] sm:$0xff] }
  0xa7   : > { %v10293_v35 = vpop.permute.xlu0 %1224 }
  0xa8   : > { %12729 = vst [vmem:[#allocation13_spill] sm:$0xff] %v10293_v35  ;;  %v10296_v60 = vpop.permute.xlu1 %1229  ;;  %1607 = vperm.xlu0 %9613, %v9961_v2   ;;  %8675 = vmatmul.mubr.msk.f32.gmra.mrb[74].mxu0 %vm555_vm6, %v10286_v55  ;;  %v10319_v2 = vld [vmem:[%s9767_s20 + $0x138] sm:$0xff] }
  0xa9   : > { %12730 = vst [vmem:[#allocation14_spill] sm:$0xff] %v10296_v60  ;;  %1610 = vperm.xlu1 %9614, %v9969_v5   ;;  %8677 = vmatprep.mubr.msk.f32.mxu0 %vm9632_vm1, %v12715_v1  ;;  %12733 = vst [vmem:[#allocation17_spill] sm:$0xff] %v10319_v2  ;;  %v1772_v35 = vld [vmem:[%s9767_s20 + $0x73] sm:$0xff] }
  0xab   : > { %v10308_v63 = vpop.permute.xlu0 %1234 }
  0xac   : > { %12731 = vst [vmem:[#allocation15_spill] sm:$0xff] %v10308_v63  ;;  %v10310_v44 = vpop.permute.xlu1 %1239  ;;  %1613 = vperm.xlu0 %9613, %v9980_v10   ;;  %8678 = vmatmul.mubr.msk.f32.gmra.mrb[76].mxu0 %vm555_vm6, %v10306_v62  ;;  %v509_v10 = vld [vmem:[%s12695_s0 + $0x148] sm:$0xff] }
  0xad   : > { %12732 = vst [vmem:[#allocation16_spill] sm:$0xff] %v10310_v44  ;;  %1616 = vperm.xlu1 %9614, %v9992_v18   ;;  %8680 = vmatprep.mubr.msk.f32.mxu0 %vm9632_vm1, %v12715_v1  ;;  %v10335_v18 = vld [vmem:[%s9767_s20 + $0x140] sm:$0xff]  ;;  %vm1456_vm4 = vcmp.ne.f32.partialorder %v509_v10, 0.0 }
  0xae   : > { %12736 = vst [vmem:[#allocation20_spill] sm:$0xff] %v10335_v18 }
  0xaf   : > { %v10321_v5 = vpop.permute.xlu0 %1244 }
  0xb0   : > { %12734 = vst [vmem:[#allocation18_spill] sm:$0xff] %v10321_v5  ;;  %v10323_v6 = vpop.permute.xlu1 %1249  ;;  %1619 = vperm.xlu0 %9613, %v10004_v28   ;;  %8681 = vmatmul.mubr.msk.f32.gmra.mrb[78].mxu0 %vm555_vm6, %v10319_v2  ;;  %v552_v5 = vld [vmem:[%s9767_s20 + $0x148] sm:$0xff] }
  0xb1   : > { %12735 = vst [vmem:[#allocation19_spill] sm:$0xff] %v10323_v6  ;;  %1622 = vperm.xlu1 %9614, %v10015_v34   ;;  %8683 = vmatprep.mubr.msk.f32.mxu0 %vm9632_vm1, %v12715_v1  ;;  %v1499_v1 = vsel %vm1456_vm4, 1, %v12722_v0  ;;  %v12739_v6 = vmov 0.0  }
  0xb3   : > { %v10340_v28 = vpop.permute.xlu0 %1254 }
  0xb4   : > { %12737 = vst [vmem:[#allocation21_spill] sm:$0xff] %v10340_v28  ;;  %v10342_v34 = vpop.permute.xlu1 %1259  ;;  %1319 = vperm.xlu0 %9613, %v509_v10   ;;  %8684 = vmatmul.mubr.msk.f32.gmra.mrb[80].mxu0 %vm555_vm6, %v10335_v18  ;;  %v1500_v28 = vsel %vm1457_vm5, 1, %v12722_v0  ;;  %v553_v10 = vld [vmem:[%s9767_s20 + $0x150] sm:$0x3f]  ;;  %v1762_v0 = vld [vmem:[%s9767_s20 + $0x23] sm:$0xff] }
  0xb5   : > { %12738 = vst [vmem:[#allocation22_spill] sm:$0xff] %v10342_v34  ;;  %1324 = vperm.xlu1 %9614, %v510_v53   ;;  %8686 = vmatprep.mubr.msk.f32.mxu0 %vm9632_vm1, %v12739_v6  ;;  %v1760_v53 = vld [vmem:[%s9767_s20 + $0x13] sm:$0xff] }
  0xb7   : > { %v10351_v44 = vpop.permute.xlu0 %1264 }
  0xb8   : > { %12740 = vst [vmem:[#allocation23_spill] sm:$0xff] %v10351_v44  ;;  %v10353_v63 = vpop.permute.xlu1 %1269  ;;  %1625 = vperm.xlu0 %9613, %v1499_v1   ;;  %8687 = vmatmul.mubr.msk.f32.gmra.mrb[82].mxu0 %vm555_vm6, %v552_v5  ;;  %v1761_v1 = vld [vmem:[%s9767_s20 + $0x1b] sm:$0xff] }
  0xb9   : > { %12741 = vst [vmem:[#allocation24_spill] sm:$0xff] %v10353_v63  ;;  %1628 = vperm.xlu1 %9614, %v1500_v28   ;;  %8689 = vmatprep.mubr.msk.f32.mxu0 %vm9632_vm1, %v12739_v6  ;;  %v1763_v6 = vld [vmem:[%s9767_s20 + $0x2b] sm:$0xff]  ;;  %v1770_v63 = vld [vmem:[%s9767_s20 + $0x63] sm:$0xff] }
  0xbb   : > { %v10360_v34 = vpop.permute.xlu0 %1274 }
  0xbc   : > { %12742 = vst [vmem:[#allocation25_spill] sm:$0xff] %v10360_v34  ;;  %v10362_v60 = vpop.permute.xlu1 %1279  ;;  %8690 = vmatmul.mubr.msk.f32.gmra.mrb[84].mxu0 %vm555_vm6, %v553_v10 }
  0xbd   : > { %12743 = vst [vmem:[#allocation26_spill] sm:$0xff] %v10362_v60  ;;  %8694 = vmatprep.mubr.msk.f32.mxu0 %vm555_vm6, %v1760_v53  ;;  %v1764_v60 = vld [vmem:[%s9767_s20 + $0x33] sm:$0xff] }
  0xbf   : > { %v10368_v5 = vpop.permute.xlu0 %1284 }
  0xc0   : > { %12744 = vst [vmem:[#allocation27_spill] sm:$0xff] %v10368_v5  ;;  %v10370_v28 = vpop.permute.xlu1 %1289  ;;  %8695 = vmatmul.mubr.msk.f32.vlgmr.msra.gmra.mrb[86].mxu0 %vm555_vm6, %v1761_v1  ;;  %v1766_v5 = vld [vmem:[%s9767_s20 + $0x43] sm:$0xff] }
  0xc1   : > { %12745 = vst [vmem:[#allocation28_spill] sm:$0xff] %v10370_v28  ;;  %8697 = vmatprep.mubr.msk.f32.mxu0 %vm555_vm6, %v1762_v0  ;;  %8749 = vmatpush3.msra.mxu0 %v10189_v13  ;;  %v1765_v28 = vld [vmem:[%s9767_s20 + $0x3b] sm:$0xff]  ;;  %v1767_v13 = vld [vmem:[%s9767_s20 + $0x4b] sm:$0xff] }
  0xc3   : > { %v10377_v10 = vpop.permute.xlu0 %1294 }
  0xc4   : > { %12746 = vst [vmem:[#allocation29_spill] sm:$0xff] %v10377_v10  ;;  %v10379_v53 = vpop.permute.xlu1 %1124  ;;  %8698 = vmatmul.mubr.msk.f32.gmra.mrb[88].mxu0 %vm555_vm6, %v1763_v6  ;;  %v1768_v10 = vld [vmem:[%s9767_s20 + $0x53] sm:$0xff] }
  0xc5   : > { %8700 = vmatprep.mubr.msk.f32.mxu0 %vm555_vm6, %v1764_v60  ;;  %v1769_v60 = vld [vmem:[%s9767_s20 + $0x5b] sm:$0xff] }
  0xc7   : > { %v10385_v1 = vpop.permute.xlu0 %1129 }
  0xc8   : > { %v10387_v0 = vpop.permute.xlu1 %1134  ;;  %8701 = vmatmul.mubr.msk.f32.gmra.mrb[90].mxu0 %vm555_vm6, %v1765_v28 }
  0xc9   : > { %8703 = vmatprep.mubr.msk.f32.mxu0 %vm555_vm6, %v1766_v5  ;;  %v1771_v5 = vld [vmem:[%s9767_s20 + $0x6b] sm:$0xff] }
  0xcb   : > { %v10393_v34 = vpop.permute.xlu0 %1139 }
  0xcc   : > { %v10395_v6 = vpop.permute.xlu1 %1144  ;;  %8704 = vmatmul.mubr.msk.f32.gmra.mrb[92].mxu0 %vm555_vm6, %v1767_v13 }
  0xcd   : > { %8706 = vmatprep.mubr.msk.f32.mxu0 %vm555_vm6, %v1768_v10  ;;  %v1773_v10 = vld [vmem:[%s9767_s20 + $0x7b] sm:$0xff] }
  0xcf   : > { %v10401_v44 = vpop.permute.xlu0 %1149 }
  0xd0   : > { %v10403_v28 = vpop.permute.xlu1 %1154  ;;  %8707 = vmatmul.mubr.msk.f32.gmra.mrb[94].mxu0 %vm555_vm6, %v1769_v60  ;;  %v1776_v60 = vld [vmem:[%s9767_s20 + $0x93] sm:$0xff] }
  0xd1   : > { %8709 = vmatprep.mubr.msk.f32.mxu0 %vm555_vm6, %v1770_v63  ;;  %v1775_v63 = vld [vmem:[%s9767_s20 + $0x8b] sm:$0xff] }
  0xd3   : > { %v10409_v33 = vpop.permute.xlu0 %1159 }
  0xd4   : > { %v10411_v13 = vpop.permute.xlu1 %1299  ;;  %8710 = vmatmul.mubr.msk.f32.gmra.mrb[96].mxu0 %vm555_vm6, %v1771_v5  ;;  %v1778_v5 = vld [vmem:[%s9767_s20 + $0xa3] sm:$0xff] }
  0xd5   : > { %12747 = vst [vmem:[#allocation30_spill] sm:$0xff] %v10411_v13  ;;  %8712 = vmatprep.mubr.msk.f32.mxu0 %vm555_vm6, %v1772_v35  ;;  %v1777_v35 = vld [vmem:[%s9767_s20 + $0x9b] sm:$0xff] }
  0xd7   : > { %v10417_v4 = vpop.permute.xlu0 %1304 }
  0xd8   : > { %12748 = vst [vmem:[#allocation31_spill] sm:$0xff] %v10417_v4  ;;  %v10419_v47 = vpop.permute.xlu1 %1114  ;;  %8713 = vmatmul.mubr.msk.f32.gmra.mrb[98].mxu0 %vm555_vm6, %v1773_v10  ;;  %v1779_v10 = vld [vmem:[%s9767_s20 + $0xab] sm:$0xff] }
  0xd9   : > { %8715 = vmatprep.mubr.msk.f32.mxu0 %vm555_vm6, %v1774_v52  ;;  %v10439_v52 = vld [vmem:[%s12703_s8 + $0x18] sm:$0xff] }
  0xda   : > { %8916 = vmatprep.subr.mxu1 %v10439_v52 }
  0xdb   : > { %v10425_v13 = vpop.permute.xlu0 %1119 }
  0xdc   : > { %v10427_v43 = vpop.permute.xlu1 %1309  ;;  %8716 = vmatmul.mubr.msk.f32.gmra.mrb[100].mxu0 %vm555_vm6, %v1775_v63 }
  0xdd   : > { %12749 = vst [vmem:[#allocation32_spill] sm:$0xff] %v10427_v43  ;;  %8718 = vmatprep.mubr.msk.f32.mxu0 %vm555_vm6, %v1776_v60  ;;  %v1780_v60 = vld [vmem:[%s9767_s20 + $0xb3] sm:$0xff] }
  0xdf   : > { %v10433_v4 = vpop.permute.xlu0 %1314 }
  0xe0   : > { %12750 = vst [vmem:[#allocation33_spill] sm:$0xff] %v10433_v4  ;;  %v1503_v18 = vpop.permute.xlu1 %1502  ;;  %8719 = vmatmul.mubr.msk.f32.gmra.mrb[102].mxu0 %vm555_vm6, %v1777_v35 }
  0xe1   : > { %vm1630_vm1 = vcmp.eq.s32.totalorder %v1503_v18, 1  ;;  %8721 = vmatprep.mubr.msk.f32.mxu0 %vm555_vm6, %v1778_v5  ;;  %v10452_v5 = vld [vmem:[%s12701_s6] ss:$0 sm:$0xff] }
  0xe2   : > { %v1673_v63 = vsel %vm1630_vm1, %v9779_v17, -1e+30  ;;  %v1781_v17 = vld [vmem:[%s9767_s20 + $0xbb] sm:$0xff] }
  0xe3   : > { %1716 = vst.msk [vmem:[#allocation3] sm:$0xff] %vm555_vm6, %v1673_v63  ;;  %v1506_v4 = vpop.permute.xlu0 %1505 }
  0xe4   : > { %vm1631_vm7 = vcmp.eq.s32.totalorder %v1506_v4, 1  ;;  %v1509_v18 = vpop.permute.xlu1 %1508  ;;  %8722 = vmatmul.mubr.msk.f32.gmra.mrb[104].mxu0 %vm555_vm6, %v1779_v10  ;;  %v1782_v4 = vld [vmem:[%s9767_s20 + $0xc3] sm:$0xff] }
  0xe5   : > { %v1674_v35 = vsel %vm1631_vm7, %v9795_v21, -1e+30  ;;  %vm1632_vm8 = vcmp.eq.s32.totalorder %v1509_v18, 1  ;;  %8724 = vmatprep.mubr.msk.f32.mxu0 %vm555_vm6, %v1780_v60  ;;  %v10463_v18 = vld [vmem:[%s12702_s7] ss:$0 sm:$0xff] }
  0xe6   : > { %1717 = vst.msk [vmem:[#allocation3 + $0x8] sm:$0xff] %vm555_vm6, %v1674_v35  ;;  %v1675_v63 = vsel %vm1632_vm8, %v9814_v26, -1e+30  ;;  %v1783_v35 = vld [vmem:[%s9767_s20 + $0xcb] sm:$0xff] }
  0xe7   : > { %1718 = vst.msk [vmem:[#allocation3 + $0x10] sm:$0xff] %vm555_vm6, %v1675_v63  ;;  %v1512_v10 = vpop.permute.xlu0 %1511  ;;  %v755_v21 = vpop.f32.mrb[0].mxu0 }
  0xe8   : > { %vm1633_vm9 = vcmp.eq.s32.totalorder %v1512_v10, 1  ;;  %v1515_v43 = vpop.permute.xlu1 %1514  ;;  %v976_v60 = vmul.f32 %v10452_v5, %v755_v21  ;;  %v8565_v2 = vpop.f32.mrb[1].mxu0  ;;  %8725 = vmatmul.mubr.msk.f32.gmra.mrb[106].mxu0 %vm555_vm6, %v1781_v17  ;;  %v1784_v10 = vld [vmem:[%s9767_s20 + $0xd3] sm:$0xff] }
  0xe9   : > { %v1676_v26 = vsel %vm1633_vm9, %v9830_v30, -1e+30  ;;  %vm1634_vm10 = vcmp.eq.s32.totalorder %v1515_v43, 1  ;;  %8727 = vmatprep.mubr.msk.f32.mxu0 %vm555_vm6, %v1782_v4 }
  0xea   : > { %1719 = vst.msk [vmem:[#allocation3 + $0x18] sm:$0xff] %vm555_vm6, %v1676_v26  ;;  %v1677_v63 = vsel %vm1634_vm10, %v9840_v32, -1e+30  ;;  %v1026_v41 = vadd.f32 %v10463_v18, %v976_v60  ;;  %v1785_v32 = vld [vmem:[%s9767_s20 + $0xdb] sm:$0xff] }
  0xeb   : > { %1720 = vst.msk [vmem:[#allocation3 + $0x20] sm:$0xff] %vm555_vm6, %v1677_v63  ;;  %v1518_v21 = vpop.permute.xlu0 %1517  ;;  %v760_v2 = vpop.f32.mrb[2].mxu0 }
  0xec   : > { %vm1635_vm11 = vcmp.eq.s32.totalorder %v1518_v21, 1  ;;  %v1521_v17 = vpop.permute.xlu1 %1520  ;;  %v1069_v30 = vmax.f32 %v1026_v41, 0.0  ;;  %v977_v43 = vmul.f32 %v10452_v5, %v760_v2  ;;  %v8568_v4 = vpop.f32.mrb[3].mxu0  ;;  %8728 = vmatmul.mubr.msk.f32.gmra.mrb[108].mxu0 %vm555_vm6, %v1783_v35  ;;  %v1786_v21 = vld [vmem:[%s9767_s20 + $0xe3] sm:$0xff] }
  0xed   : > { %v1678_v26 = vsel %vm1635_vm11, %v9865_v39, -1e+30  ;;  %vm1636_vm12 = vcmp.eq.s32.totalorder %v1521_v17, 1  ;;  %8730 = vmatprep.mubr.msk.f32.mxu0 %vm555_vm6, %v1784_v10 }
  0xee   : > { %1721 = vst.msk [vmem:[#allocation3 + $0x28] sm:$0xff] %vm555_vm6, %v1678_v26  ;;  %v1679_v60 = vsel %vm1636_vm12, %v9890_v46, -1e+30  ;;  %v1327_v63 = vmul.f32 %v10419_v47, %v1069_v30  ;;  %v1027_v41 = vadd.f32 %v10463_v18, %v977_v43  ;;  %v1787_v47 = vld [vmem:[%s9767_s20 + $0xeb] sm:$0xff] }
  0xef   : > { %1722 = vst.msk [vmem:[#allocation3 + $0x30] sm:$0xff] %vm555_vm6, %v1679_v60  ;;  %v1524_v35 = vpop.permute.xlu0 %1523  ;;  %v765_v2 = vpop.f32.mrb[4].mxu0  ;;  %v1788_v60 = vld [vmem:[%s9767_s20 + $0xf3] sm:$0xff] }
  0xf0   : > { %vm1637_vm14 = vcmp.eq.s32.totalorder %v1524_v35, 1  ;;  %v1527_v39 = vpop.permute.xlu1 %1526  ;;  %1371 = vst.msk [vmem:[#allocation2] sm:$0xff] %vm1370_vm13, %v1327_v63  ;;  %v1070_v10 = vmax.f32 %v1027_v41, 0.0  ;;  %v978_v17 = vmul.f32 %v10452_v5, %v765_v2  ;;  %v8571_v4 = vpop.f32.mrb[5].mxu0  ;;  %8731 = vmatmul.mubr.msk.f32.gmra.mrb[110].mxu0 %vm555_vm6, %v1785_v32 }
  0xf1   : > { %v1680_v46 = vsel %vm1637_vm14, %v9909_v51, -1e+30  ;;  %vm1638_vm15 = vcmp.eq.s32.totalorder %v1527_v39, 1  ;;  %8733 = vmatprep.mubr.msk.f32.mxu0 %vm555_vm6, %v1786_v21 }
  0xf2   : > { %1723 = vst.msk [vmem:[#allocation3 + $0x38] sm:$0xff] %vm555_vm6, %v1680_v46  ;;  %v1681_v30 = vsel %vm1638_vm15, %v9928_v56, -1e+30  ;;  %v1328_v43 = vmul.f32 %v10425_v13, %v1070_v10  ;;  %v1028_v26 = vadd.f32 %v10463_v18, %v978_v17  ;;  %v1789_v13 = vld [vmem:[%s9767_s20 + $0xfb] sm:$0xff]  ;;  %v1790_v17 = vld [vmem:[%s9767_s20 + $0x103] sm:$0xff] }
  0xf3   : > { %1724 = vst.msk [vmem:[#allocation3 + $0x40] sm:$0xff] %vm555_vm6, %v1681_v30  ;;  %v1530_v63 = vpop.permute.xlu0 %1529  ;;  %v770_v32 = vpop.f32.mrb[6].mxu0 }
  0xf4   : > { %vm1639_vm2 = vcmp.eq.s32.totalorder %v1530_v63, 1  ;;  %v1533_v51 = vpop.permute.xlu1 %1532  ;;  %1372 = vst.msk [vmem:[#allocation2 + $0x8] sm:$0xff] %vm1370_vm13, %v1328_v43  ;;  %v1071_v41 = vmax.f32 %v1028_v26, 0.0  ;;  %v979_v21 = vmul.f32 %v10452_v5, %v770_v32  ;;  %v8574_v35 = vpop.f32.mrb[7].mxu0  ;;  %8734 = vmatmul.mubr.msk.f32.gmra.mrb[112].mxu0 %vm555_vm6, %v1787_v47  ;;  %v1792_v32 = vld [vmem:[%s9767_s20 + $0x113] sm:$0xff] }
  0xf5   : > { %v1682_v56 = vsel %vm1639_vm2, %v9947_v61, -1e+30  ;;  %vm1640_vm3 = vcmp.eq.s32.totalorder %v1533_v51, 1  ;;  %8736 = vmatprep.mubr.msk.f32.mxu0 %vm555_vm6, %v1788_v60 }
  0xf6   : > { %1725 = vst.msk [vmem:[#allocation3 + $0x48] sm:$0xff] %vm555_vm6, %v1682_v56  ;;  %v1683_v2 = vsel %vm1640_vm3, %v9966_v3, -1e+30  ;;  %v1329_v39 = vmul.f32 %v10379_v53, %v1071_v41  ;;  %v1029_v10 = vadd.f32 %v10463_v18, %v979_v21  ;;  %v1791_v53 = vld [vmem:[%s9767_s20 + $0x10b] sm:$0xff] }
  0xf7   : > { %1726 = vst.msk [vmem:[#allocation3 + $0x50] sm:$0xff] %vm555_vm6, %v1683_v2  ;;  %v1536_v4 = vpop.permute.xlu0 %1535  ;;  %v775_v46 = vpop.f32.mrb[8].mxu0 }
  0xf8   : > { %vm1641_vm4 = vcmp.eq.s32.totalorder %v1536_v4, 1  ;;  %v1539_v61 = vpop.permute.xlu1 %1538  ;;  %1373 = vst.msk [vmem:[#allocation2 + $0x10] sm:$0xff] %vm1370_vm13, %v1329_v39  ;;  %v1072_v47 = vmax.f32 %v1029_v10, 0.0  ;;  %v980_v30 = vmul.f32 %v10452_v5, %v775_v46  ;;  %v8577_v43 = vpop.f32.mrb[9].mxu0  ;;  %8737 = vmatmul.mubr.msk.f32.gmra.mrb[114].mxu0 %vm555_vm6, %v1789_v13  ;;  %v1794_v10 = vld [vmem:[%s9767_s20 + $0x123] sm:$0xff] }
  0xf9   : > { %v1684_v3 = vsel %vm1641_vm4, %v9988_v14, -1e+30  ;;  %vm1642_vm5 = vcmp.eq.s32.totalorder %v1539_v61, 1  ;;  %8739 = vmatprep.mubr.msk.f32.mxu0 %vm555_vm6, %v1790_v17 }
  0xfa   : > { %1727 = vst.msk [vmem:[#allocation3 + $0x58] sm:$0xff] %vm555_vm6, %v1684_v3  ;;  %v1685_v26 = vsel %vm1642_vm5, %v10009_v31, -1e+30  ;;  %v1330_v60 = vmul.f32 %v10385_v1, %v1072_v47  ;;  %v1030_v63 = vadd.f32 %v10463_v18, %v980_v30  ;;  %v1793_v1 = vld [vmem:[%s9767_s20 + $0x11b] sm:$0xff]  ;;  %v12751_v30 = vld [vmem:[#allocation4_spill] sm:$0xff] }
  0xfb   : > { %1728 = vst.msk [vmem:[#allocation3 + $0x60] sm:$0xff] %vm555_vm6, %v1685_v26  ;;  %v1542_v51 = vpop.permute.xlu0 %1541  ;;  %v780_v41 = vpop.f32.mrb[10].mxu0 }
  0xfc   : > { %vm1643_vm1 = vcmp.eq.s32.totalorder %v1542_v51, 1  ;;  %v1545_v14 = vpop.permute.xlu1 %1544  ;;  %1374 = vst.msk [vmem:[#allocation2 + $0x18] sm:$0xff] %vm1370_vm13, %v1330_v60  ;;  %v1073_v21 = vmax.f32 %v1030_v63, 0.0  ;;  %v981_v35 = vmul.f32 %v10452_v5, %v780_v41  ;;  %v8580_v56 = vpop.f32.mrb[11].mxu0  ;;  %8740 = vmatmul.mubr.msk.f32.gmra.mrb[116].mxu0 %vm555_vm6, %v1791_v53  ;;  %v2312_v41 = vld [vmem:[#allocation2 + $0x1] sm:$0xff] }
  0xfd   : > { %v1686_v31 = vsel %vm1643_vm1, %v10025_v37, -1e+30  ;;  %vm1644_vm7 = vcmp.eq.s32.totalorder %v1545_v14, 1  ;;  %8742 = vmatprep.mubr.msk.f32.mxu0 %vm555_vm6, %v1792_v32  ;;  %v12752_v14 = vld [vmem:[#allocation5_spill] sm:$0xff] }
  0xfe   : > { %1729 = vst.msk [vmem:[#allocation3 + $0x68] sm:$0xff] %vm555_vm6, %v1686_v31  ;;  %v1687_v13 = vsel %vm1644_vm7, %v10038_v48, -1e+30  ;;  %v1331_v2 = vmul.f32 %v10387_v0, %v1073_v21  ;;  %v1031_v39 = vadd.f32 %v10463_v18, %v981_v35  ;;  %v1795_v0 = vld [vmem:[%s9767_s20 + $0x12b] sm:$0xff] }
  0xff   : > { %1730 = vst.msk [vmem:[#allocation3 + $0x70] sm:$0xff] %vm555_vm6, %v1687_v13  ;;  %v1548_v17 = vpop.permute.xlu0 %1547  ;;  %v785_v4 = vpop.f32.mrb[12].mxu0 }
 0x100   : > { %vm1645_vm8 = vcmp.eq.s32.totalorder %v1548_v17, 1  ;;  %v1551_v37 = vpop.permute.xlu1 %1550  ;;  %1375 = vst.msk [vmem:[#allocation2 + $0x20] sm:$0xff] %vm1370_vm13, %v1331_v2  ;;  %v1074_v46 = vmax.f32 %v1031_v39, 0.0  ;;  %v982_v61 = vmul.f32 %v10452_v5, %v785_v4  ;;  %v8583_v47 = vpop.f32.mrb[13].mxu0  ;;  %8743 = vmatmul.mubr.msk.f32.gmra.mrb[118].mxu0 %vm555_vm6, %v1793_v1  ;;  %v2313_v2 = vld [vmem:[#allocation2 + $0x9] sm:$0xff] }
 0x101   : > { %v1688_v48 = vsel %vm1645_vm8, %v10051_v54, -1e+30  ;;  %vm1646_vm9 = vcmp.eq.s32.totalorder %v1551_v37, 1  ;;  %8745 = vmatprep.mubr.msk.f32.mxu0 %vm555_vm6, %v1794_v10 }
 0x102   : > { %1731 = vst.msk [vmem:[#allocation3 + $0x78] sm:$0xff] %vm555_vm6, %v1688_v48  ;;  %v1689_v43 = vsel %vm1646_vm9, %v12751_v30, -1e+30  ;;  %v1332_v3 = vmul.f32 %v10393_v34, %v1074_v46  ;;  %v1032_v53 = vadd.f32 %v10463_v18, %v982_v61  ;;  %v12753_v34 = vld [vmem:[#allocation6_spill] sm:$0xff] }
 0x103   : > { %1732 = vst.msk [vmem:[#allocation3 + $0x80] sm:$0xff] %vm555_vm6, %v1689_v43  ;;  %v1554_v26 = vpop.permute.xlu0 %1553  ;;  %v790_v60 = vpop.f32.mrb[14].mxu0  ;;  %v2314_v37 = vld [vmem:[#allocation2 + $0x11] sm:$0xff]  ;;  %v2311_v61 = vld [vmem:[%s12703_s8] sm:$0xff] }
 0x104   : > { %vm1647_vm10 = vcmp.eq.s32.totalorder %v1554_v26, 1  ;;  %v1557_v63 = vpop.permute.xlu1 %1556  ;;  %1376 = vst.msk [vmem:[#allocation2 + $0x28] sm:$0xff] %vm1370_vm13, %v1332_v3  ;;  %v1075_v54 = vmax.f32 %v1032_v53, 0.0  ;;  %v983_v32 = vmul.f32 %v10452_v5, %v790_v60  ;;  %v8586_v51 = vpop.f32.mrb[15].mxu0  ;;  %8746 = vmatmul.mubr.msk.f32.gmra.mrb[120].mxu0 %vm555_vm6, %v1795_v0  ;;  %8804 = vmatprep.subr.mxu0 %v2311_v61 }
 0x105   : > { %v1690_v21 = vsel %vm1647_vm10, %v12752_v14, -1e+30  ;;  %vm1648_vm11 = vcmp.eq.s32.totalorder %v1557_v63, 1  ;;  %8750 = vmatprep.mubr.msk.f32.mxu0 %vm1370_vm13, %v2312_v41 }
 0x106   : > { %1733 = vst.msk [vmem:[#allocation3 + $0x88] sm:$0xff] %vm555_vm6, %v1690_v21  ;;  %v1691_v35 = vsel %vm1648_vm11, %v12753_v34, -1e+30  ;;  %v1333_v56 = vmul.f32 %v10395_v6, %v1075_v54  ;;  %v1033_v31 = vadd.f32 %v10463_v18, %v983_v32 }
 0x107   : > { %1734 = vst.msk [vmem:[#allocation3 + $0x90] sm:$0xff] %vm555_vm6, %v1691_v35  ;;  %v1560_v1 = vpop.permute.xlu0 %1559  ;;  %v795_v13 = vpop.f32.mrb[16].mxu0  ;;  %v2315_v30 = vld [vmem:[#allocation2 + $0x19] sm:$0xff] }
 0x108   : > { %vm1649_vm12 = vcmp.eq.s32.totalorder %v1560_v1, 1  ;;  %v1563_v39 = vpop.permute.xlu1 %1562  ;;  %1377 = vst.msk [vmem:[#allocation2 + $0x30] sm:$0xff] %vm1370_vm13, %v1333_v56  ;;  %v1076_v10 = vmax.f32 %v1033_v31, 0.0  ;;  %v984_v17 = vmul.f32 %v10452_v5, %v795_v13  ;;  %v8589_v4 = vpop.f32.mrb[17].mxu0  ;;  %8751 = vmatmul.mubr.msk.f32.vlgmr.msra.gmra.mrb[122].mxu0 %vm1370_vm13, %v2313_v2 }
 0x109   : > { %v1692_v6 = vsel %vm1649_vm12, %v10094_v9, -1e+30  ;;  %vm1650_vm14 = vcmp.eq.s32.totalorder %v1563_v39, 1  ;;  %8753 = vmatprep.mubr.msk.f32.mxu0 %vm1370_vm13, %v2314_v37  ;;  %8805 = vmatpush3.msra.mxu0 %v2311_v61 }
 0x10a   : > { %1735 = vst.msk [vmem:[#allocation3 + $0x98] sm:$0xff] %vm555_vm6, %v1692_v6  ;;  %v1693_v46 = vsel %vm1650_vm14, %v10103_v23, -1e+30  ;;  %v1334_v47 = vmul.f32 %v10401_v44, %v1076_v10  ;;  %v1034_v48 = vadd.f32 %v10463_v18, %v984_v17  ;;  %8860 = vmatprep.subr.mxu0 %v10291_v57 }
 0x10b   : > { %1736 = vst.msk [vmem:[#allocation3 + $0xa0] sm:$0xff] %vm555_vm6, %v1693_v46  ;;  %v1566_v0 = vpop.permute.xlu0 %1565  ;;  %v800_v9 = vpop.f32.mrb[18].mxu0  ;;  %v2316_v43 = vld [vmem:[#allocation2 + $0x21] sm:$0xff] }
 0x10c   : > { %vm1651_vm15 = vcmp.eq.s32.totalorder %v1566_v0, 1  ;;  %v1569_v3 = vpop.permute.xlu1 %1568  ;;  %1378 = vst.msk [vmem:[#allocation2 + $0x38] sm:$0xff] %vm1370_vm13, %v1334_v47  ;;  %v1077_v23 = vmax.f32 %v1034_v48, 0.0  ;;  %v985_v53 = vmul.f32 %v10452_v5, %v800_v9  ;;  %v8592_v26 = vpop.f32.mrb[19].mxu0  ;;  %8754 = vmatmul.mubr.msk.f32.gmra.mrb[124].mxu0 %vm1370_vm13, %v2315_v30 }
 0x10d   : > { %v1694_v44 = vsel %vm1651_vm15, %v10112_v24, -1e+30  ;;  %vm1652_vm2 = vcmp.eq.s32.totalorder %v1569_v3, 1  ;;  %8756 = vmatprep.mubr.msk.f32.mxu0 %vm1370_vm13, %v2316_v43 }
 0x10e   : > { %1737 = vst.msk [vmem:[#allocation3 + $0xa8] sm:$0xff] %vm555_vm6, %v1694_v44  ;;  %v1695_v60 = vsel %vm1652_vm2, %v10121_v42, -1e+30  ;;  %v1335_v63 = vmul.f32 %v10403_v28, %v1077_v23  ;;  %v1035_v54 = vadd.f32 %v10463_v18, %v985_v53 }
 0x10f   : > { %1738 = vst.msk [vmem:[#allocation3 + $0xb0] sm:$0xff] %vm555_vm6, %v1695_v60  ;;  %v1572_v32 = vpop.permute.xlu0 %1571  ;;  %v805_v51 = vpop.f32.mrb[20].mxu0  ;;  %v2317_v41 = vld [vmem:[#allocation2 + $0x29] sm:$0xff] }
 0x110   : > { %vm1653_vm3 = vcmp.eq.s32.totalorder %v1572_v32, 1  ;;  %v1575_v24 = vpop.permute.xlu1 %1574  ;;  %1379 = vst.msk [vmem:[#allocation2 + $0x40] sm:$0xff] %vm1370_vm13, %v1335_v63  ;;  %v1078_v57 = vmax.f32 %v1035_v54, 0.0  ;;  %v986_v14 = vmul.f32 %v10452_v5, %v805_v51  ;;  %v8595_v21 = vpop.f32.mrb[21].mxu0  ;;  %8757 = vmatmul.mubr.msk.f32.gmra.mrb[126].mxu0 %vm1370_vm13, %v2317_v41 }
 0x111   : > { %v1696_v42 = vsel %vm1653_vm3, %v10130_v49, -1e+30  ;;  %vm1654_vm4 = vcmp.eq.s32.totalorder %v1575_v24, 1 }
 0x112   : > { %1739 = vst.msk [vmem:[#allocation3 + $0xb8] sm:$0xff] %vm555_vm6, %v1696_v42  ;;  %v1697_v28 = vsel %vm1654_vm4, %v10140_v58, -1e+30  ;;  %v1336_v34 = vmul.f32 %v10409_v33, %v1078_v57  ;;  %v1036_v35 = vadd.f32 %v10463_v18, %v986_v14 }
 0x113   : > { %1740 = vst.msk [vmem:[#allocation3 + $0xc0] sm:$0xff] %vm555_vm6, %v1697_v28  ;;  %v1578_v56 = vpop.permute.xlu0 %1577  ;;  %v810_v31 = vpop.f32.mrb[22].mxu0  ;;  %v2318_v1 = vld [vmem:[#allocation2 + $0x31] sm:$0xff] }
 0x114   : > { %vm1655_vm5 = vcmp.eq.s32.totalorder %v1578_v56, 1  ;;  %v1581_v13 = vpop.permute.xlu1 %1580  ;;  %1380 = vst.msk [vmem:[#allocation2 + $0x48] sm:$0xff] %vm1370_vm13, %v1336_v34  ;;  %v1079_v2 = vmax.f32 %v1036_v35, 0.0  ;;  %v987_v49 = vmul.f32 %v10452_v5, %v810_v31  ;;  %v8598_v39 = vpop.f32.mrb[23].mxu0  ;;  %8759 = vmatprep.mubr.msk.f32.mxu0 %vm1370_vm13, %v2318_v1 }
 0x115   : > { %v1698_v58 = vsel %vm1655_vm5, %v10148_v59, -1e+30  ;;  %vm1656_vm1 = vcmp.eq.s32.totalorder %v1581_v13, 1 }
 0x116   : > { %1741 = vst.msk [vmem:[#allocation3 + $0xc8] sm:$0xff] %vm555_vm6, %v1698_v58  ;;  %v1699_v33 = vsel %vm1656_vm1, %v10157_v12, -1e+30  ;;  %v1337_v10 = vmul.f32 %v10210_v19, %v1079_v2  ;;  %v1037_v17 = vadd.f32 %v10463_v18, %v987_v49 }
 0x117   : > { %1742 = vst.msk [vmem:[#allocation3 + $0xd0] sm:$0xff] %vm555_vm6, %v1699_v33  ;;  %v1584_v4 = vpop.permute.xlu0 %1583  ;;  %v815_v37 = vpop.f32.mrb[24].mxu0  ;;  %v2319_v6 = vld [vmem:[#allocation2 + $0x39] sm:$0xff] }
 0x118   : > { %vm1657_vm7 = vcmp.eq.s32.totalorder %v1584_v4, 1  ;;  %v1587_v46 = vpop.permute.xlu1 %1586  ;;  %1381 = vst.msk [vmem:[#allocation2 + $0x50] sm:$0xff] %vm1370_vm13, %v1337_v10  ;;  %v1080_v61 = vmax.f32 %v1037_v17, 0.0  ;;  %v988_v59 = vmul.f32 %v10452_v5, %v815_v37  ;;  %v8601_v47 = vpop.f32.mrb[25].mxu0  ;;  %8760 = vmatmul.mubr.msk.f32.gmra.mrb[128].mxu0 %vm1370_vm13, %v2319_v6 }
 0x119   : > { %v1700_v12 = vsel %vm1657_vm7, %v10166_v7, -1e+30  ;;  %vm1658_vm8 = vcmp.eq.s32.totalorder %v1587_v46, 1 }
 0x11a   : > { %1743 = vst.msk [vmem:[#allocation3 + $0xd8] sm:$0xff] %vm555_vm6, %v1700_v12  ;;  %v1701_v19 = vsel %vm1658_vm8, %v10175_v8, -1e+30  ;;  %v1338_v48 = vmul.f32 %v10223_v25, %v1080_v61  ;;  %v1038_v0 = vadd.f32 %v10463_v18, %v988_v59 }
 0x11b   : > { %1744 = vst.msk [vmem:[#allocation3 + $0xe0] sm:$0xff] %vm555_vm6, %v1701_v19  ;;  %v1590_v9 = vpop.permute.xlu0 %1589  ;;  %v820_v30 = vpop.f32.mrb[26].mxu0  ;;  %v2320_v43 = vld [vmem:[#allocation2 + $0x41] sm:$0xff] }
 0x11c   : > { %vm1659_vm9 = vcmp.eq.s32.totalorder %v1590_v9, 1  ;;  %v1593_v3 = vpop.permute.xlu1 %1592  ;;  %1382 = vst.msk [vmem:[#allocation2 + $0x58] sm:$0xff] %vm1370_vm13, %v1338_v48  ;;  %v1081_v23 = vmax.f32 %v1038_v0, 0.0  ;;  %v989_v7 = vmul.f32 %v10452_v5, %v820_v30  ;;  %v8604_v53 = vpop.f32.mrb[27].mxu0  ;;  %8762 = vmatprep.mubr.msk.f32.mxu0 %vm1370_vm13, %v2320_v43  ;;  %v12754_v19 = vld [vmem:[#allocation7_spill] sm:$0xff] }
 0x11d   : > { %v1702_v8 = vsel %vm1659_vm9, %v10184_v11, -1e+30  ;;  %vm1660_vm10 = vcmp.eq.s32.totalorder %v1593_v3, 1 }
 0x11e   : > { %1745 = vst.msk [vmem:[#allocation3 + $0xe8] sm:$0xff] %vm555_vm6, %v1702_v8  ;;  %v1703_v25 = vsel %vm1660_vm10, %v10199_v15, -1e+30  ;;  %v1339_v26 = vmul.f32 %v10212_v20, %v1081_v23  ;;  %v1039_v44 = vadd.f32 %v10463_v18, %v989_v7 }
 0x11f   : > { %1746 = vst.msk [vmem:[#allocation3 + $0xf0] sm:$0xff] %vm555_vm6, %v1703_v25  ;;  %v1596_v60 = vpop.permute.xlu0 %1595  ;;  %v825_v63 = vpop.f32.mrb[28].mxu0  ;;  %v2321_v54 = vld [vmem:[#allocation2 + $0x49] sm:$0xff] }
 0x120   : > { %vm1661_vm11 = vcmp.eq.s32.totalorder %v1596_v60, 1  ;;  %v1599_v32 = vpop.permute.xlu1 %1598  ;;  %1383 = vst.msk [vmem:[#allocation2 + $0x60] sm:$0xff] %vm1370_vm13, %v1339_v26  ;;  %v1082_v51 = vmax.f32 %v1039_v44, 0.0  ;;  %v990_v11 = vmul.f32 %v10452_v5, %v825_v63  ;;  %v8607_v41 = vpop.f32.mrb[29].mxu0  ;;  %8763 = vmatmul.mubr.msk.f32.gmra.mrb[130].mxu0 %vm1370_vm13, %v2321_v54  ;;  %v12756_v25 = vld [vmem:[#allocation20_spill] sm:$0xff] }
 0x121   : > { %v1704_v15 = vsel %vm1661_vm11, %v10208_v16, -1e+30  ;;  %vm1662_vm12 = vcmp.eq.s32.totalorder %v1599_v32, 1  ;;  %v12757_v44 = vld [vmem:[#allocation8_spill] sm:$0xff] }
 0x122   : > { %1747 = vst.msk [vmem:[#allocation3 + $0xf8] sm:$0xff] %vm555_vm6, %v1704_v15  ;;  %v1705_v20 = vsel %vm1662_vm12, %v10221_v22, -1e+30  ;;  %v1340_v24 = vmul.f32 %v10225_v27, %v1082_v51  ;;  %v1040_v57 = vadd.f32 %v10463_v18, %v990_v11 }
 0x123   : > { %1748 = vst.msk [vmem:[#allocation3 + $0x100] sm:$0xff] %vm555_vm6, %v1705_v20  ;;  %v1602_v14 = vpop.permute.xlu0 %1601  ;;  %v830_v21 = vpop.f32.mrb[30].mxu0  ;;  %v2322_v42 = vld [vmem:[#allocation2 + $0x51] sm:$0xff] }
 0x124   : > { %v10624_v28 = vld [vmem:[#allocation2 + $0x52] sm:$0xff]  ;;  %vm1663_vm14 = vcmp.eq.s32.totalorder %v1602_v14, 1  ;;  %v1605_v34 = vpop.permute.xlu1 %1604  ;;  %1384 = vst.msk [vmem:[#allocation2 + $0x68] sm:$0xff] %vm1370_vm13, %v1340_v24  ;;  %v1083_v16 = vmax.f32 %v1040_v57, 0.0  ;;  %v991_v35 = vmul.f32 %v10452_v5, %v830_v21  ;;  %v8610_v56 = vpop.f32.mrb[31].mxu0  ;;  %8765 = vmatprep.mubr.msk.f32.mxu0 %vm1370_vm13, %v2322_v42 }
 0x125   : > { %8877 = vmatprep.mubr.msk.f32.mxu1 %vm1370_vm13, %v10624_v28  ;;  %v1706_v22 = vsel %vm1663_vm14, %v10234_v29, -1e+30  ;;  %vm1664_vm15 = vcmp.eq.s32.totalorder %v1605_v34, 1  ;;  %v10642_v29 = vld [vmem:[%s12703_s8 + $0x20] sm:$0xff]  ;;  %v12758_v57 = vld [vmem:[#allocation9_spill] sm:$0xff] }
 0x126   : > { %1749 = vst.msk [vmem:[#allocation3 + $0x108] sm:$0xff] %vm555_vm6, %v1706_v22  ;;  %v1707_v27 = vsel %vm1664_vm15, %v10247_v40, -1e+30  ;;  %v1341_v31 = vmul.f32 %v10236_v36, %v1083_v16  ;;  %v1041_v1 = vadd.f32 %v10463_v18, %v991_v35 }
 0x127   : > { %1750 = vst.msk [vmem:[#allocation3 + $0x110] sm:$0xff] %vm555_vm6, %v1707_v27  ;;  %v1608_v13 = vpop.permute.xlu0 %1607  ;;  %v835_v2 = vpop.f32.mrb[32].mxu0  ;;  %v2323_v49 = vld [vmem:[#allocation2 + $0x59] sm:$0xff] }
 0x128   : > { %v10637_v39 = vld [vmem:[#allocation2 + $0x5a] sm:$0xff]  ;;  %vm1665_vm2 = vcmp.eq.s32.totalorder %v1608_v13, 1  ;;  %v1611_v58 = vpop.permute.xlu1 %1610  ;;  %1385 = vst.msk [vmem:[#allocation2 + $0x70] sm:$0xff] %vm1370_vm13, %v1341_v31  ;;  %v1084_v40 = vmax.f32 %v1041_v1, 0.0  ;;  %v992_v36 = vmul.f32 %v10452_v5, %v835_v2  ;;  %v8613_v33 = vpop.f32.mrb[33].mxu0  ;;  %8766 = vmatmul.mubr.msk.f32.gmra.mrb[132].mxu0 %vm1370_vm13, %v2323_v49 }
 0x129   : > { %8878 = vmatmul.mubr.msk.f32.vlgmr.msra.gmra.mrb[0].mxu1 %vm1370_vm13, %v10637_v39  ;;  %v1708_v10 = vsel %vm1665_vm2, %v10260_v45, -1e+30  ;;  %vm1666_vm3 = vcmp.eq.s32.totalorder %v1611_v58, 1  ;;  %v12759_v1 = vld [vmem:[#allocation10_spill] sm:$0xff] }
 0x12a   : > { %1751 = vst.msk [vmem:[#allocation3 + $0x118] sm:$0xff] %vm555_vm6, %v1708_v10  ;;  %v1709_v17 = vsel %vm1666_vm3, %v10273_v50, -1e+30  ;;  %8917 = vmatpush3.msra.mxu1 %v10439_v52  ;;  %v1342_v4 = vmul.f32 %v10238_v38, %v1084_v40  ;;  %v1042_v37 = vadd.f32 %v10463_v18, %v992_v36 }
 0x12b   : > { %1752 = vst.msk [vmem:[#allocation3 + $0x120] sm:$0xff] %vm555_vm6, %v1709_v17  ;;  %v1614_v6 = vpop.permute.xlu0 %1613  ;;  %8972 = vmatprep.subr.mxu1 %v10642_v29  ;;  %v840_v46 = vpop.f32.mrb[34].mxu0  ;;  %v2324_v61 = vld [vmem:[#allocation2 + $0x61] sm:$0xff] }
 0x12c   : > { %v10657_v59 = vld [vmem:[#allocation2 + $0x62] sm:$0xff]  ;;  %vm1667_vm4 = vcmp.eq.s32.totalorder %v1614_v6, 1  ;;  %v1617_v45 = vpop.permute.xlu1 %1616  ;;  %1386 = vst.msk [vmem:[#allocation2 + $0x78] sm:$0xff] %vm1370_vm13, %v1342_v4  ;;  %v1085_v50 = vmax.f32 %v1042_v37, 0.0  ;;  %v993_v52 = vmul.f32 %v10452_v5, %v840_v46  ;;  %v8616_v47 = vpop.f32.mrb[35].mxu0  ;;  %8768 = vmatprep.mubr.msk.f32.mxu0 %vm1370_vm13, %v2324_v61 }
 0x12d   : > { %8880 = vmatprep.mubr.msk.f32.mxu1 %vm1370_vm13, %v10657_v59  ;;  %v1710_v38 = vsel %vm1667_vm4, %v10286_v55, -1e+30  ;;  %vm1668_vm5 = vcmp.eq.s32.totalorder %v1617_v45, 1  ;;  %v12760_v17 = vld [vmem:[#allocation11_spill] sm:$0xff]  ;;  %v12761_v47 = vld [vmem:[#allocation12_spill] sm:$0xff] }
 0x12e   : > { %1753 = vst.msk [vmem:[#allocation3 + $0x128] sm:$0xff] %vm555_vm6, %v1710_v38  ;;  %v1711_v12 = vsel %vm1668_vm5, %v10306_v62, -1e+30  ;;  %v1343_v48 = vmul.f32 %v12754_v19, %v1085_v50  ;;  %v1043_v0 = vadd.f32 %v10463_v18, %v993_v52  ;;  %v12755_v62 = vld [vmem:[#allocation17_spill] sm:$0xff] }
 0x12f   : > { %1754 = vst.msk [vmem:[#allocation3 + $0x130] sm:$0xff] %vm555_vm6, %v1711_v12  ;;  %v1620_v9 = vpop.permute.xlu0 %1619  ;;  %v845_v30 = vpop.f32.mrb[36].mxu0  ;;  %v2325_v43 = vld [vmem:[#allocation2 + $0x69] sm:$0xff] }
 0x130   : > { %v10670_v3 = vld [vmem:[#allocation2 + $0x6a] sm:$0xff]  ;;  %vm1669_vm1 = vcmp.eq.s32.totalorder %v1620_v9, 1  ;;  %v1623_v23 = vpop.permute.xlu1 %1622  ;;  %1387 = vst.msk [vmem:[#allocation2 + $0x80] sm:$0xff] %vm1370_vm13, %v1343_v48  ;;  %v1086_v55 = vmax.f32 %v1043_v0, 0.0  ;;  %v994_v7 = vmul.f32 %v10452_v5, %v845_v30  ;;  %v8619_v53 = vpop.f32.mrb[37].mxu0  ;;  %8769 = vmatmul.mubr.msk.f32.gmra.mrb[134].mxu0 %vm1370_vm13, %v2325_v43 }
 0x131   : > { %8881 = vmatmul.mubr.msk.f32.gmra.mrb[2].mxu1 %vm1370_vm13, %v10670_v3  ;;  %v1712_v8 = vsel %vm1669_vm1, %v12755_v62, -1e+30  ;;  %vm1670_vm7 = vcmp.eq.s32.totalorder %v1623_v23, 1  ;;  %v12762_v23 = vld [vmem:[#allocation13_spill] sm:$0xff] }
 0x132   : > { %1755 = vst.msk [vmem:[#allocation3 + $0x138] sm:$0xff] %vm555_vm6, %v1712_v8  ;;  %v1713_v26 = vsel %vm1670_vm7, %v12756_v25, -1e+30  ;;  %v1344_v60 = vmul.f32 %v12757_v44, %v1086_v55  ;;  %v1044_v63 = vadd.f32 %v10463_v18, %v994_v7 }
 0x133   : > { %1756 = vst.msk [vmem:[#allocation3 + $0x140] sm:$0xff] %vm555_vm6, %v1713_v26  ;;  %v1320_v54 = vpop.permute.xlu0 %1319  ;;  %v850_v32 = vpop.f32.mrb[38].mxu0  ;;  %v2326_v51 = vld [vmem:[#allocation2 + $0x71] sm:$0xff] }
 0x134   : > { %v10683_v11 = vld [vmem:[#allocation2 + $0x72] sm:$0xff]  ;;  %v1325_v41 = vpop.permute.xlu1 %1324  ;;  %1388 = vst.msk [vmem:[#allocation2 + $0x88] sm:$0xff] %vm1370_vm13, %v1344_v60  ;;  %v1087_v15 = vmax.f32 %v1044_v63, 0.0  ;;  %v995_v20 = vmul.f32 %v10452_v5, %v850_v32  ;;  %v8622_v24 = vpop.f32.mrb[39].mxu0  ;;  %8771 = vmatprep.mubr.msk.f32.mxu0 %vm1370_vm13, %v2326_v51  ;;  %v12763_v60 = vld [vmem:[#allocation14_spill] sm:$0xff] }
 0x135   : > { %8883 = vmatprep.mubr.msk.f32.mxu1 %vm1370_vm13, %v10683_v11 }
 0x136   : > { %v1345_v14 = vmul.f32 %v12758_v57, %v1087_v15  ;;  %v1045_v21 = vadd.f32 %v10463_v18, %v995_v20  ;;  %v12764_v57 = vld [vmem:[#allocation15_spill] sm:$0xff] }
 0x137   : > { %v1626_v42 = vpop.permute.xlu0 %1625  ;;  %v855_v34 = vpop.f32.mrb[40].mxu0  ;;  %v2327_v16 = vld [vmem:[#allocation2 + $0x79] sm:$0xff] }
 0x138   : > { %v10692_v35 = vld [vmem:[#allocation2 + $0x7a] sm:$0xff]  ;;  %v1629_v56 = vpop.permute.xlu1 %1628  ;;  %1389 = vst.msk [vmem:[#allocation2 + $0x90] sm:$0xff] %vm1370_vm13, %v1345_v14  ;;  %v1088_v22 = vmax.f32 %v1045_v21, 0.0  ;;  %v996_v27 = vmul.f32 %v10452_v5, %v855_v34  ;;  %v8625_v31 = vpop.f32.mrb[41].mxu0  ;;  %8772 = vmatmul.mubr.msk.f32.gmra.mrb[136].mxu0 %vm1370_vm13, %v2327_v16 }
 0x139   : > { %8884 = vmatmul.mubr.msk.f32.gmra.mrb[4].mxu1 %vm1370_vm13, %v10692_v35  ;;  %v12765_v31 = vld [vmem:[#allocation16_spill] sm:$0xff] }
 0x13a   : > { %v1346_v13 = vmul.f32 %v12759_v1, %v1088_v22  ;;  %v1046_v2 = vadd.f32 %v10463_v18, %v996_v27 }
 0x13b   : > { %v860_v49 = vpop.f32.mrb[42].mxu0  ;;  %v2328_v58 = vld [vmem:[#allocation2 + $0x81] sm:$0xff] }
 0x13c   : > { %v10701_v40 = vld [vmem:[#allocation2 + $0x82] sm:$0xff]  ;;  %1390 = vst.msk [vmem:[#allocation2 + $0x98] sm:$0xff] %vm1370_vm13, %v1346_v13  ;;  %v1089_v36 = vmax.f32 %v1046_v2, 0.0  ;;  %v997_v33 = vmul.f32 %v10452_v5, %v860_v49  ;;  %v8628_v10 = vpop.f32.mrb[43].mxu0  ;;  %8774 = vmatprep.mubr.msk.f32.mxu0 %vm1370_vm13, %v2328_v58 }
 0x13d   : > { %8886 = vmatprep.mubr.msk.f32.mxu1 %vm1370_vm13, %v10701_v40 }
 0x13e   : > { %v1347_v4 = vmul.f32 %v12760_v17, %v1089_v36  ;;  %v1047_v37 = vadd.f32 %v10463_v18, %v997_v33  ;;  %v12766_v17 = vld [vmem:[#allocation18_spill] sm:$0xff] }
 0x13f   : > { %v865_v6 = vpop.f32.mrb[44].mxu0  ;;  %v2329_v46 = vld [vmem:[#allocation2 + $0x89] sm:$0xff] }
 0x140   : > { %v10710_v61 = vld [vmem:[#allocation2 + $0x8a] sm:$0xff]  ;;  %1391 = vst.msk [vmem:[#allocation2 + $0xa0] sm:$0xff] %vm1370_vm13, %v1347_v4  ;;  %v1090_v45 = vmax.f32 %v1047_v37, 0.0  ;;  %v998_v50 = vmul.f32 %v10452_v5, %v865_v6  ;;  %v8631_v52 = vpop.f32.mrb[45].mxu0  ;;  %8775 = vmatmul.mubr.msk.f32.gmra.mrb[138].mxu0 %vm1370_vm13, %v2329_v46 }
 0x141   : > { %8887 = vmatmul.mubr.msk.f32.gmra.mrb[6].mxu1 %vm1370_vm13, %v10710_v61 }
 0x142   : > { %v1348_v38 = vmul.f32 %v12761_v47, %v1090_v45  ;;  %v1048_v12 = vadd.f32 %v10463_v18, %v998_v50 }
 0x143   : > { %v870_v19 = vpop.f32.mrb[46].mxu0  ;;  %v2330_v48 = vld [vmem:[#allocation2 + $0x91] sm:$0xff] }
 0x144   : > { %v10719_v0 = vld [vmem:[#allocation2 + $0x92] sm:$0xff]  ;;  %1392 = vst.msk [vmem:[#allocation2 + $0xa8] sm:$0xff] %vm1370_vm13, %v1348_v38  ;;  %v1091_v9 = vmax.f32 %v1048_v12, 0.0  ;;  %v999_v30 = vmul.f32 %v10452_v5, %v870_v19  ;;  %v8634_v43 = vpop.f32.mrb[47].mxu0  ;;  %8777 = vmatprep.mubr.msk.f32.mxu0 %vm1370_vm13, %v2330_v48  ;;  %v12767_v38 = vld [vmem:[#allocation19_spill] sm:$0xff] }
 0x145   : > { %8889 = vmatprep.mubr.msk.f32.mxu1 %vm1370_vm13, %v10719_v0 }
 0x146   : > { %v1349_v55 = vmul.f32 %v12762_v23, %v1091_v9  ;;  %v1049_v7 = vadd.f32 %v10463_v18, %v999_v30 }
 0x147   : > { %v875_v53 = vpop.f32.mrb[48].mxu0  ;;  %v2331_v62 = vld [vmem:[#allocation2 + $0x99] sm:$0xff] }
 0x148   : > { %v10728_v8 = vld [vmem:[#allocation2 + $0x9a] sm:$0xff]  ;;  %1393 = vst.msk [vmem:[#allocation2 + $0xb0] sm:$0xff] %vm1370_vm13, %v1349_v55  ;;  %v1092_v25 = vmax.f32 %v1049_v7, 0.0  ;;  %v1000_v26 = vmul.f32 %v10452_v5, %v875_v53  ;;  %v8637_v44 = vpop.f32.mrb[49].mxu0  ;;  %8778 = vmatmul.mubr.msk.f32.gmra.mrb[140].mxu0 %vm1370_vm13, %v2331_v62 }
 0x149   : > { %8890 = vmatmul.mubr.msk.f32.gmra.mrb[8].mxu1 %vm1370_vm13, %v10728_v8  ;;  %v12768_v7 = vld [vmem:[#allocation21_spill] sm:$0xff] }
 0x14a   : > { %v1350_v63 = vmul.f32 %v12763_v60, %v1092_v25  ;;  %v1050_v54 = vadd.f32 %v10463_v18, %v1000_v26 }
 0x14b   : > { %v880_v32 = vpop.f32.mrb[50].mxu0  ;;  %v2332_v51 = vld [vmem:[#allocation2 + $0xa1] sm:$0xff] }
 0x14c   : > { %v10737_v41 = vld [vmem:[#allocation2 + $0xa2] sm:$0xff]  ;;  %1394 = vst.msk [vmem:[#allocation2 + $0xb8] sm:$0xff] %vm1370_vm13, %v1350_v63  ;;  %v1093_v15 = vmax.f32 %v1050_v54, 0.0  ;;  %v1001_v20 = vmul.f32 %v10452_v5, %v880_v32  ;;  %v8640_v24 = vpop.f32.mrb[51].mxu0  ;;  %8780 = vmatprep.mubr.msk.f32.mxu0 %vm1370_vm13, %v2332_v51 }
 0x14d   : > { %8892 = vmatprep.mubr.msk.f32.mxu1 %vm1370_vm13, %v10737_v41  ;;  %v12769_v32 = vld [vmem:[#allocation22_spill] sm:$0xff] }
 0x14e   : > { %v1351_v14 = vmul.f32 %v12764_v57, %v1093_v15  ;;  %v1051_v21 = vadd.f32 %v10463_v18, %v1001_v20 }
 0x14f   : > { %v885_v42 = vpop.f32.mrb[52].mxu0  ;;  %v2333_v34 = vld [vmem:[#allocation2 + $0xa9] sm:$0xff] }
 0x150   : > { %v10746_v16 = vld [vmem:[#allocation2 + $0xaa] sm:$0xff]  ;;  %1395 = vst.msk [vmem:[#allocation2 + $0xc0] sm:$0xff] %vm1370_vm13, %v1351_v14  ;;  %v1094_v56 = vmax.f32 %v1051_v21, 0.0  ;;  %v1002_v22 = vmul.f32 %v10452_v5, %v885_v42  ;;  %v8643_v27 = vpop.f32.mrb[53].mxu0  ;;  %8781 = vmatmul.mubr.msk.f32.gmra.mrb[142].mxu0 %vm1370_vm13, %v2333_v34 }
 0x151   : > { %8893 = vmatmul.mubr.msk.f32.gmra.mrb[10].mxu1 %vm1370_vm13, %v10746_v16  ;;  %v12770_v34 = vld [vmem:[#allocation23_spill] sm:$0xff] }
 0x152   : > { %v1352_v1 = vmul.f32 %v12765_v31, %v1094_v56  ;;  %v1052_v13 = vadd.f32 %v10463_v18, %v1002_v22 }
 0x153   : > { %v890_v2 = vpop.f32.mrb[54].mxu0  ;;  %v2334_v49 = vld [vmem:[#allocation2 + $0xb1] sm:$0xff] }
 0x154   : > { %v10755_v58 = vld [vmem:[#allocation2 + $0xb2] sm:$0xff]  ;;  %1396 = vst.msk [vmem:[#allocation2 + $0xc8] sm:$0xff] %vm1370_vm13, %v1352_v1  ;;  %v1095_v36 = vmax.f32 %v1052_v13, 0.0  ;;  %v1003_v33 = vmul.f32 %v10452_v5, %v890_v2  ;;  %v8646_v10 = vpop.f32.mrb[55].mxu0  ;;  %8783 = vmatprep.mubr.msk.f32.mxu0 %vm1370_vm13, %v2334_v49 }
 0x155   : > { %8895 = vmatprep.mubr.msk.f32.mxu1 %vm1370_vm13, %v10755_v58 }
 0x156   : > { %v1353_v4 = vmul.f32 %v12766_v17, %v1095_v36  ;;  %v1053_v37 = vadd.f32 %v10463_v18, %v1003_v33  ;;  %v10816_v33 = vld [vmem:[%s12702_s7] ss:$0 sm:$0xff] }
 0x157   : > { %v895_v6 = vpop.f32.mrb[56].mxu0  ;;  %v2335_v46 = vld [vmem:[#allocation2 + $0xb9] sm:$0xff] }
 0x158   : > { %v10764_v45 = vld [vmem:[#allocation2 + $0xba] sm:$0xff]  ;;  %1397 = vst.msk [vmem:[#allocation2 + $0xd0] sm:$0xff] %vm1370_vm13, %v1353_v4  ;;  %v1096_v50 = vmax.f32 %v1053_v37, 0.0  ;;  %v1004_v52 = vmul.f32 %v10452_v5, %v895_v6  ;;  %v8649_v47 = vpop.f32.mrb[57].mxu0  ;;  %8784 = vmatmul.mubr.msk.f32.gmra.mrb[144].mxu0 %vm1370_vm13, %v2335_v46 }
 0x159   : > { %8896 = vmatmul.mubr.msk.f32.gmra.mrb[12].mxu1 %vm1370_vm13, %v10764_v45 }
 0x15a   : > { %v1354_v12 = vmul.f32 %v12767_v38, %v1096_v50  ;;  %v1054_v19 = vadd.f32 %v10463_v18, %v1004_v52  ;;  %v12772_v52 = vld [vmem:[#allocation25_spill] sm:$0xff] }
 0x15b   : > { %v900_v48 = vpop.f32.mrb[58].mxu0  ;;  %v2336_v9 = vld [vmem:[#allocation2 + $0xc1] sm:$0xff] }
 0x15c   : > { %v10773_v30 = vld [vmem:[#allocation2 + $0xc2] sm:$0xff]  ;;  %1398 = vst.msk [vmem:[#allocation2 + $0xd8] sm:$0xff] %vm1370_vm13, %v1354_v12  ;;  %v1097_v43 = vmax.f32 %v1054_v19, 0.0  ;;  %v1005_v23 = vmul.f32 %v10452_v5, %v900_v48  ;;  %v8652_v55 = vpop.f32.mrb[59].mxu0  ;;  %8786 = vmatprep.mubr.msk.f32.mxu0 %vm1370_vm13, %v2336_v9 }
 0x15d   : > { %8898 = vmatprep.mubr.msk.f32.mxu1 %vm1370_vm13, %v10773_v30  ;;  %v12773_v55 = vld [vmem:[#allocation26_spill] sm:$0xff] }
 0x15e   : > { %v1355_v53 = vmul.f32 %v12768_v7, %v1097_v43  ;;  %v1055_v62 = vadd.f32 %v10463_v18, %v1005_v23 }
 0x15f   : > { %v905_v25 = vpop.f32.mrb[60].mxu0  ;;  %v2337_v26 = vld [vmem:[#allocation2 + $0xc9] sm:$0xff] }
 0x160   : > { %v10782_v44 = vld [vmem:[#allocation2 + $0xca] sm:$0xff]  ;;  %1399 = vst.msk [vmem:[#allocation2 + $0xe0] sm:$0xff] %vm1370_vm13, %v1355_v53  ;;  %v1098_v60 = vmax.f32 %v1055_v62, 0.0  ;;  %v1006_v63 = vmul.f32 %v10452_v5, %v905_v25  ;;  %v8655_v54 = vpop.f32.mrb[61].mxu0  ;;  %8787 = vmatmul.mubr.msk.f32.gmra.mrb[146].mxu0 %vm1370_vm13, %v2337_v26 }
 0x161   : > { %8899 = vmatmul.mubr.msk.f32.gmra.mrb[14].mxu1 %vm1370_vm13, %v10782_v44 }
 0x162   : > { %v1356_v51 = vmul.f32 %v12769_v32, %v1098_v60  ;;  %v1056_v15 = vadd.f32 %v10463_v18, %v1006_v63  ;;  %v12774_v32 = vld [vmem:[#allocation27_spill] sm:$0xff] }
 0x163   : > { %v910_v20 = vpop.f32.mrb[62].mxu0  ;;  %v2338_v24 = vld [vmem:[#allocation2 + $0xd1] sm:$0xff] }
 0x164   : > { %v10791_v57 = vld [vmem:[#allocation2 + $0xd2] sm:$0xff]  ;;  %1400 = vst.msk [vmem:[#allocation2 + $0xe8] sm:$0xff] %vm1370_vm13, %v1356_v51  ;;  %v1099_v14 = vmax.f32 %v1056_v15, 0.0  ;;  %v1007_v21 = vmul.f32 %v10452_v5, %v910_v20  ;;  %v8658_v42 = vpop.f32.mrb[63].mxu0  ;;  %8789 = vmatprep.mubr.msk.f32.mxu0 %vm1370_vm13, %v2338_v24  ;;  %v10806_v5 = vld [vmem:[%s12701_s6] ss:$0 sm:$0xff] }
 0x165   : > { %8901 = vmatprep.mubr.msk.f32.mxu1 %vm1370_vm13, %v10791_v57 }
 0x166   : > { %v1357_v56 = vmul.f32 %v12770_v34, %v1099_v14  ;;  %v1057_v22 = vadd.f32 %v10463_v18, %v1007_v21  ;;  %v12771_v18 = vld [vmem:[#allocation24_spill] sm:$0xff] }
 0x167   : > { %v915_v27 = vpop.f32.mrb[64].mxu0  ;;  %v2339_v31 = vld [vmem:[#allocation2 + $0xd9] sm:$0xff] }
 0x168   : > { %v10800_v1 = vld [vmem:[#allocation2 + $0xda] sm:$0xff]  ;;  %1401 = vst.msk [vmem:[#allocation2 + $0xf0] sm:$0xff] %vm1370_vm13, %v1357_v56  ;;  %v1100_v13 = vmax.f32 %v1057_v22, 0.0  ;;  %v1008_v2 = vmul.f32 %v10806_v5, %v915_v27  ;;  %v8661_v49 = vpop.f32.mrb[65].mxu0  ;;  %8790 = vmatmul.mubr.msk.f32.gmra.mrb[148].mxu0 %vm1370_vm13, %v2339_v31  ;;  %v12775_v56 = vld [vmem:[#allocation28_spill] sm:$0xff] }
 0x169   : > { %8902 = vmatmul.mubr.msk.f32.gmra.mrb[16].mxu1 %vm1370_vm13, %v10800_v1 }
 0x16a   : > { %v1358_v36 = vmul.f32 %v12771_v18, %v1100_v13  ;;  %v1058_v10 = vadd.f32 %v10816_v33, %v1008_v2 }
 0x16b   : > { %v920_v17 = vpop.f32.mrb[66].mxu0  ;;  %v2340_v4 = vld [vmem:[#allocation2 + $0xe1] sm:$0xff] }
 0x16c   : > { %v10819_v37 = vld [vmem:[#allocation2 + $0xe2] sm:$0xff]  ;;  %1402 = vst.msk [vmem:[#allocation2 + $0xf8] sm:$0xff] %vm1370_vm13, %v1358_v36  ;;  %v1101_v6 = vmax.f32 %v1058_v10, 0.0  ;;  %v1009_v46 = vmul.f32 %v10806_v5, %v920_v17  ;;  %v8664_v50 = vpop.f32.mrb[67].mxu0  ;;  %8792 = vmatprep.mubr.msk.f32.mxu0 %vm1370_vm13, %v2340_v4  ;;  %v12776_v10 = vld [vmem:[#allocation29_spill] sm:$0xff] }
 0x16d   : > { %8904 = vmatprep.mubr.msk.f32.mxu1 %vm1370_vm13, %v10819_v37 }
 0x16e   : > { %v1359_v47 = vmul.f32 %v12772_v52, %v1101_v6  ;;  %v1059_v38 = vadd.f32 %v10816_v33, %v1009_v46 }
 0x16f   : > { %v925_v12 = vpop.f32.mrb[68].mxu0  ;;  %v2341_v19 = vld [vmem:[#allocation2 + $0xe9] sm:$0xff] }
 0x170   : > { %v10828_v48 = vld [vmem:[#allocation2 + $0xea] sm:$0xff]  ;;  %1403 = vst.msk [vmem:[#allocation2 + $0x100] sm:$0xff] %vm1370_vm13, %v1359_v47  ;;  %v1102_v9 = vmax.f32 %v1059_v38, 0.0  ;;  %v1010_v43 = vmul.f32 %v10806_v5, %v925_v12  ;;  %v8667_v23 = vpop.f32.mrb[69].mxu0  ;;  %8793 = vmatmul.mubr.msk.f32.gmra.mrb[150].mxu0 %vm1370_vm13, %v2341_v19  ;;  %v12777_v12 = vld [vmem:[#allocation30_spill] sm:$0xff] }
 0x171   : > { %8905 = vmatmul.mubr.msk.f32.gmra.mrb[18].mxu1 %vm1370_vm13, %v10828_v48 }
 0x172   : > { %v1360_v7 = vmul.f32 %v12773_v55, %v1102_v9  ;;  %v1060_v53 = vadd.f32 %v10816_v33, %v1010_v43 }
 0x173   : > { %v930_v62 = vpop.f32.mrb[70].mxu0  ;;  %v2342_v25 = vld [vmem:[#allocation2 + $0xf1] sm:$0xff] }
 0x174   : > { %v10837_v26 = vld [vmem:[#allocation2 + $0xf2] sm:$0xff]  ;;  %1404 = vst.msk [vmem:[#allocation2 + $0x108] sm:$0xff] %vm1370_vm13, %v1360_v7  ;;  %v1103_v60 = vmax.f32 %v1060_v53, 0.0  ;;  %v1011_v63 = vmul.f32 %v10806_v5, %v930_v62  ;;  %v8670_v54 = vpop.f32.mrb[71].mxu0  ;;  %8795 = vmatprep.mubr.msk.f32.mxu0 %vm1370_vm13, %v2342_v25  ;;  %v12778_v25 = vld [vmem:[#allocation31_spill] sm:$0xff] }
 0x175   : > { %8907 = vmatprep.mubr.msk.f32.mxu1 %vm1370_vm13, %v10837_v26 }
 0x176   : > { %v1361_v51 = vmul.f32 %v12774_v32, %v1103_v60  ;;  %v1061_v15 = vadd.f32 %v10816_v33, %v1011_v63 }
 0x177   : > { %v935_v20 = vpop.f32.mrb[72].mxu0  ;;  %v2343_v24 = vld [vmem:[#allocation2 + $0xf9] sm:$0xff] }
 0x178   : > { %v10846_v14 = vld [vmem:[#allocation2 + $0xfa] sm:$0xff]  ;;  %1405 = vst.msk [vmem:[#allocation2 + $0x110] sm:$0xff] %vm1370_vm13, %v1361_v51  ;;  %v1104_v21 = vmax.f32 %v1061_v15, 0.0  ;;  %v1012_v42 = vmul.f32 %v10806_v5, %v935_v20  ;;  %v8673_v34 = vpop.f32.mrb[73].mxu0  ;;  %8796 = vmatmul.mubr.msk.f32.gmra.mrb[152].mxu0 %vm1370_vm13, %v2343_v24 }
 0x179   : > { %8908 = vmatmul.mubr.msk.f32.gmra.mrb[20].mxu1 %vm1370_vm13, %v10846_v14  ;;  %v2275_v24 = vld [vmem:[#allocation2] sm:$0xff]  ;;  %v12779_v34 = vld [vmem:[#allocation32_spill] sm:$0xff] }
 0x17a   : > { %v1362_v22 = vmul.f32 %v12775_v56, %v1104_v21  ;;  %v1062_v27 = vadd.f32 %v10816_v33, %v1012_v42  ;;  %v10889_v21 = vld [vmem:[#allocation2 + $0x12] sm:$0xff] }
 0x17b   : > { %v940_v31 = vpop.f32.mrb[74].mxu0  ;;  %v2344_v13 = vld [vmem:[#allocation2 + $0x101] sm:$0xff] }
 0x17c   : > { %v10855_v2 = vld [vmem:[#allocation2 + $0x102] sm:$0xff]  ;;  %1406 = vst.msk [vmem:[#allocation2 + $0x118] sm:$0xff] %vm1370_vm13, %v1362_v22  ;;  %v1105_v49 = vmax.f32 %v1062_v27, 0.0  ;;  %v1013_v18 = vmul.f32 %v10806_v5, %v940_v31  ;;  %8798 = vmatprep.mubr.msk.f32.mxu0 %vm1370_vm13, %v2344_v13  ;;  %v8676_v36 = vpop.f32.mrb[75].mxu0  ;;  %v10896_v31 = vld [vmem:[#allocation2 + $0x1a] sm:$0xff] }
 0x17d   : > { %8910 = vmatprep.mubr.msk.f32.mxu1 %vm1370_vm13, %v10855_v2  ;;  %v10905_v36 = vld [vmem:[%s12703_s8 + $0x28] sm:$0xff] }
 0x17e   : > { %v1363_v17 = vmul.f32 %v12776_v10, %v1105_v49  ;;  %v1063_v4 = vadd.f32 %v10816_v33, %v1013_v18  ;;  %v2277_v49 = vld [vmem:[#allocation2 + $0x10] sm:$0xff]  ;;  %v10914_v10 = vld [vmem:[#allocation2 + $0x22] sm:$0xff] }
 0x17f   : > { %v945_v6 = vpop.f32.mrb[76].mxu0  ;;  %v2345_v46 = vld [vmem:[#allocation2 + $0x109] sm:$0xff] }
 0x180   : > { %v10864_v50 = vld [vmem:[#allocation2 + $0x10a] sm:$0xff]  ;;  %1407 = vst.msk [vmem:[#allocation2 + $0x120] sm:$0xff] %vm1370_vm13, %v1363_v17  ;;  %v1106_v52 = vmax.f32 %v1063_v4, 0.0  ;;  %v1014_v47 = vmul.f32 %v10806_v5, %v945_v6  ;;  %8799 = vmatmul.mubr.msk.f32.gmra.mrb[154].mxu0 %vm1370_vm13, %v2345_v46  ;;  %v8679_v38 = vpop.f32.mrb[77].mxu0  ;;  %v12780_v17 = vld [vmem:[#allocation33_spill] sm:$0xff] }
 0x181   : > { %8911 = vmatmul.mubr.msk.f32.gmra.mrb[22].mxu1 %vm1370_vm13, %v10864_v50  ;;  %v9617_v6 = vld [vmem:[%s12703_s8 + $0x10] sm:$0xff] }
 0x182   : > { %v1364_v19 = vmul.f32 %v12777_v12, %v1106_v52  ;;  %v1064_v9 = vadd.f32 %v10816_v33, %v1014_v47  ;;  %v2278_v52 = vld [vmem:[#allocation2 + $0x18] sm:$0xff]  ;;  %v10922_v47 = vld [vmem:[#allocation2 + $0x2a] sm:$0xff] }
 0x183   : > { %v950_v43 = vpop.f32.mrb[78].mxu0  ;;  %v2346_v23 = vld [vmem:[#allocation2 + $0x111] sm:$0xff] }
 0x184   : > { %v10873_v55 = vld [vmem:[#allocation2 + $0x112] sm:$0xff]  ;;  %1408 = vst.msk [vmem:[#allocation2 + $0x128] sm:$0xff] %vm1370_vm13, %v1364_v19  ;;  %v1107_v7 = vmax.f32 %v1064_v9, 0.0  ;;  %v1015_v53 = vmul.f32 %v10806_v5, %v950_v43  ;;  %8801 = vmatprep.mubr.msk.f32.mxu0 %vm1370_vm13, %v2346_v23  ;;  %v8682_v62 = vpop.f32.mrb[79].mxu0  ;;  %v2280_v19 = vld [vmem:[#allocation2 + $0x28] sm:$0xff]  ;;  %v10936_v9 = vld [vmem:[#allocation2 + $0x3a] sm:$0xff] }
 0x185   : > { %8913 = vmatprep.mubr.msk.f32.mxu1 %vm1370_vm13, %v10873_v55  ;;  %v10931_v38 = vld [vmem:[#allocation2 + $0x32] sm:$0xff]  ;;  %v10941_v23 = vld [vmem:[#allocation2 + $0x42] sm:$0xff] }
 0x186   : > { %v1365_v60 = vmul.f32 %v12778_v25, %v1107_v7  ;;  %v1065_v63 = vadd.f32 %v10816_v33, %v1015_v53  ;;  %v2281_v43 = vld [vmem:[#allocation2 + $0x30] sm:$0xff]  ;;  %v2282_v7 = vld [vmem:[#allocation2 + $0x38] sm:$0xff]  ;;  %v2283_v62 = vld [vmem:[#allocation2 + $0x40] sm:$0xff] }
 0x187   : > { %v955_v54 = vpop.f32.mrb[80].mxu0  ;;  %v2347_v32 = vld [vmem:[#allocation2 + $0x119] sm:$0xff]  ;;  %v10946_v53 = vld [vmem:[#allocation2 + $0x4a] sm:$0xff] }
 0x188   : > { %v10882_v51 = vld [vmem:[#allocation2 + $0x11a] sm:$0xff]  ;;  %1409 = vst.msk [vmem:[#allocation2 + $0x130] sm:$0xff] %vm1370_vm13, %v1365_v60  ;;  %v1108_v15 = vmax.f32 %v1065_v63, 0.0  ;;  %v1016_v20 = vmul.f32 %v10806_v5, %v955_v54  ;;  %8802 = vmatmul.mubr.msk.f32.gmra.mrb[156].mxu0 %vm1370_vm13, %v2347_v32  ;;  %v8685_v42 = vpop.f32.mrb[81].mxu0  ;;  %v2276_v5 = vld [vmem:[#allocation2 + $0x8] sm:$0xff]  ;;  %v2285_v60 = vld [vmem:[#allocation2 + $0x50] sm:$0xff] }
 0x189   : > { %8914 = vmatmul.mubr.msk.f32.gmra.mrb[24].mxu1 %vm1370_vm13, %v10882_v51  ;;  %8806 = vmatprep.mubr.msk.f32.mxu0 %vm1370_vm13, %v2275_v24  ;;  %v2284_v25 = vld [vmem:[#allocation2 + $0x48] sm:$0xff]  ;;  %v2286_v63 = vld [vmem:[#allocation2 + $0x58] sm:$0xff]  ;;  %v2287_v54 = vld [vmem:[#allocation2 + $0x60] sm:$0xff] }
 0x18a   : > { %8918 = vmatprep.mubr.msk.f32.mxu1 %vm1370_vm13, %v10889_v21  ;;  %v1366_v56 = vmul.f32 %v12779_v34, %v1108_v15  ;;  %v1066_v22 = vadd.f32 %v10816_v33, %v1016_v20  ;;  %v10910_v33 = vld [vmem:[%s12706_s11] sm:$0xf]  ;;  %v6205_v34 = vld [vmem:[#allocation3 + $0x11] sm:$0xff] }
 0x18b   : > { %v960_v27 = vpop.f32.mrb[82].mxu0  ;;  %v6203_v32 = vld [vmem:[#allocation3 + $0x1] sm:$0xff]  ;;  %v6204_v42 = vld [vmem:[#allocation3 + $0x9] sm:$0xff] }
 0x18c   : > { %1410 = vst.msk [vmem:[#allocation2 + $0x138] sm:$0xff] %vm1370_vm13, %v1366_v56  ;;  %v1109_v13 = vmax.f32 %v1066_v22, 0.0  ;;  %8807 = vmatmul.mubr.msk.f32.vlgmr.msra.gmra.mrb[122].mxu0 %vm1370_vm13, %v2276_v5  ;;  %v8688_v18 = vpop.f32.mrb[83].mxu0  ;;  %v6275_v20 = vld [vmem:[#allocation3 + $0x2] sm:$0xff] }
 0x18d   : > { %8919 = vmatmul.mubr.msk.f32.vlgmr.msra.gmra.mrb[26].mxu1 %vm1370_vm13, %v10896_v31  ;;  %8809 = vmatprep.mubr.msk.f32.mxu0 %vm1370_vm13, %v2277_v49  ;;  %v6168_v24 = vld [vmem:[#allocation3 + $0x8] sm:$0xff]  ;;  %v2302_v56 = vld [vmem:[#allocation2 + $0xd8] sm:$0xff]  ;;  %v2304_v18 = vld [vmem:[#allocation2 + $0xe8] sm:$0xff] }
 0x18e   : > { %8973 = vmatpush3.msra.mxu1 %v10642_v29  ;;  %v1367_v4 = vmul.f32 %v12780_v17, %v1109_v13  ;;  %8921 = vmatprep.mubr.msk.f32.mxu1 %vm1370_vm13, %v10914_v10  ;;  %v2279_v29 = vld [vmem:[#allocation2 + $0x20] sm:$0xff]  ;;  %v6240_v22 = vmax.f32 %v6168_v24, %v6204_v42  ;;  %v6277_v13 = vld [vmem:[#allocation3 + $0x12] sm:$0xff]  ;;  %v11041_v42 = vld [vmem:[#allocation3 + $0x40] sm:$0xff] }
 0x18f   : > { %8861 = vmatpush3.msra.mxu0 %v9617_v6  ;;  %v965_v46 = vpop.f32.mrb[84].mxu0  ;;  %9028 = vmatprep.subr.mxu1 %v10905_v36  ;;  %v2303_v27 = vld [vmem:[#allocation2 + $0xe0] sm:$0xff]  ;;  %v6206_v49 = vld [vmem:[#allocation3 + $0x19] sm:$0xff] }
 0x190   : > { %9252 = vmatprep.subr.msk.mxu0 %vm685_vm0, %v10910_v33  ;;  %1411 = vst.msk [vmem:[#allocation2 + $0x140] sm:$0xff] %vm1370_vm13, %v1367_v4  ;;  %8810 = vmatmul.mubr.msk.f32.gmra.mrb[124].mxu0 %vm1370_vm13, %v2278_v52  ;;  %v8691_v12 = vpop.f32.mrb[85].mxu0  ;;  %v6385_v4 = vld [vmem:[#allocation3 + $0x13] sm:$0xff]  ;;  %v6171_v52 = vld [vmem:[#allocation3 + $0x20] sm:$0xff]  ;;  %v6388_v24 = vld [vmem:[#allocation3 + $0x2b] sm:$0xff] }
 0x191   : > { %8922 = vmatmul.mubr.msk.f32.gmra.mrb[28].mxu1 %vm1370_vm13, %v10922_v47  ;;  %8812 = vmatprep.mubr.msk.f32.mxu0 %vm1370_vm13, %v2279_v29  ;;  %v6207_v29 = vld [vmem:[#allocation3 + $0x21] sm:$0xff]  ;;  %v6457_v12 = vld [vmem:[#allocation3 + $0x14] sm:$0xff] }
 0x192   : > { %8924 = vmatprep.mubr.msk.f32.mxu1 %vm1370_vm13, %v10931_v38 }
 0x194   : > { %8813 = vmatmul.mubr.msk.f32.gmra.mrb[126].mxu0 %vm1370_vm13, %v2280_v19  ;;  %v6278_v19 = vld [vmem:[#allocation3 + $0x1a] sm:$0xff] }
 0x195   : > { %8925 = vmatmul.mubr.msk.f32.gmra.mrb[30].mxu1 %vm1370_vm13, %v10936_v9  ;;  %8815 = vmatprep.mubr.msk.f32.mxu0 %vm1370_vm13, %v2281_v43  ;;  %v6172_v43 = vld [vmem:[#allocation3 + $0x28] sm:$0xff] }
 0x196   : > { %8927 = vmatprep.mubr.msk.f32.mxu1 %vm1370_vm13, %v10941_v23 }
 0x198   : > { %8816 = vmatmul.mubr.msk.f32.gmra.mrb[128].mxu0 %vm1370_vm13, %v2282_v7  ;;  %v6208_v7 = vld [vmem:[#allocation3 + $0x29] sm:$0xff] }
 0x199   : > { %8928 = vmatmul.mubr.msk.f32.gmra.mrb[32].mxu1 %vm1370_vm13, %v10946_v53  ;;  %8818 = vmatprep.mubr.msk.f32.mxu0 %vm1370_vm13, %v2283_v62  ;;  %v2306_v62 = vld [vmem:[#allocation2 + $0xf8] sm:$0xff] }
 0x19a   : > { %8930 = vmatprep.mubr.msk.f32.mxu1 %vm1370_vm13, %v10624_v28  ;;  %v2288_v28 = vld [vmem:[#allocation2 + $0x68] sm:$0xff] }
 0x19c   : > { %8819 = vmatmul.mubr.msk.f32.gmra.mrb[130].mxu0 %vm1370_vm13, %v2284_v25 }
 0x19d   : > { %8931 = vmatmul.mubr.msk.f32.gmra.mrb[34].mxu1 %vm1370_vm13, %v10637_v39  ;;  %8821 = vmatprep.mubr.msk.f32.mxu0 %vm1370_vm13, %v2285_v60  ;;  %v2289_v39 = vld [vmem:[#allocation2 + $0x70] sm:$0xff] }
 0x19e   : > { %8933 = vmatprep.mubr.msk.f32.mxu1 %vm1370_vm13, %v10657_v59  ;;  %v2290_v59 = vld [vmem:[#allocation2 + $0x78] sm:$0xff] }
 0x1a0   : > { %8822 = vmatmul.mubr.msk.f32.gmra.mrb[132].mxu0 %vm1370_vm13, %v2286_v63  ;;  %v6386_v63 = vld [vmem:[#allocation3 + $0x1b] sm:$0xff] }
 0x1a1   : > { %8934 = vmatmul.mubr.msk.f32.gmra.mrb[0].mxu1 %vm1370_vm13, %v10670_v3  ;;  %8824 = vmatprep.mubr.msk.f32.mxu0 %vm1370_vm13, %v2287_v54  ;;  %v2291_v3 = vld [vmem:[#allocation2 + $0x80] sm:$0xff] }
 0x1a2   : > { %8936 = vmatprep.mubr.msk.f32.mxu1 %vm1370_vm13, %v10683_v11  ;;  %v2292_v11 = vld [vmem:[#allocation2 + $0x88] sm:$0xff]  ;;  %v6279_v54 = vld [vmem:[#allocation3 + $0x22] sm:$0xff] }
 0x1a4   : > { %8825 = vmatmul.mubr.msk.f32.gmra.mrb[134].mxu0 %vm1370_vm13, %v2288_v28  ;;  %v2307_v28 = vld [vmem:[#allocation2 + $0x100] sm:$0xff] }
 0x1a5   : > { %8937 = vmatmul.mubr.msk.f32.gmra.mrb[2].mxu1 %vm1370_vm13, %v10692_v35  ;;  %8827 = vmatprep.mubr.msk.f32.mxu0 %vm1370_vm13, %v2289_v39  ;;  %v2293_v35 = vld [vmem:[#allocation2 + $0x90] sm:$0xff] }
 0x1a6   : > { %8939 = vmatprep.mubr.msk.f32.mxu1 %vm1370_vm13, %v10701_v40  ;;  %v2294_v40 = vld [vmem:[#allocation2 + $0x98] sm:$0xff] }
 0x1a8   : > { %8828 = vmatmul.mubr.msk.f32.gmra.mrb[136].mxu0 %vm1370_vm13, %v2290_v59  ;;  %v6173_v59 = vld [vmem:[#allocation3 + $0x30] sm:$0xff] }
 0x1a9   : > { %8940 = vmatmul.mubr.msk.f32.gmra.mrb[4].mxu1 %vm1370_vm13, %v10710_v61  ;;  %8830 = vmatprep.mubr.msk.f32.mxu0 %vm1370_vm13, %v2291_v3  ;;  %v2295_v61 = vld [vmem:[#allocation2 + $0xa0] sm:$0xff] }
 0x1aa   : > { %8942 = vmatprep.mubr.msk.f32.mxu1 %vm1370_vm13, %v10719_v0  ;;  %v2296_v0 = vld [vmem:[#allocation2 + $0xa8] sm:$0xff]  ;;  %v6387_v3 = vld [vmem:[#allocation3 + $0x23] sm:$0xff] }
 0x1ac   : > { %8831 = vmatmul.mubr.msk.f32.gmra.mrb[138].mxu0 %vm1370_vm13, %v2292_v11 }
 0x1ad   : > { %8943 = vmatmul.mubr.msk.f32.gmra.mrb[6].mxu1 %vm1370_vm13, %v10728_v8  ;;  %8833 = vmatprep.mubr.msk.f32.mxu0 %vm1370_vm13, %v2293_v35  ;;  %v2297_v8 = vld [vmem:[#allocation2 + $0xb0] sm:$0xff]  ;;  %v6244_v35 = vmax.f32 %v6172_v43, %v6208_v7 }
 0x1ae   : > { %8945 = vmatprep.mubr.msk.f32.mxu1 %vm1370_vm13, %v10737_v41  ;;  %v2298_v41 = vld [vmem:[#allocation2 + $0xb8] sm:$0xff]  ;;  %v6389_v7 = vld [vmem:[#allocation3 + $0x33] sm:$0xff] }
 0x1b0   : > { %8834 = vmatmul.mubr.msk.f32.gmra.mrb[140].mxu0 %vm1370_vm13, %v2294_v40  ;;  %v11026_v40 = vld [vmem:[#allocation3 + $0x1c] sm:$0xff] }
 0x1b1   : > { %8946 = vmatmul.mubr.msk.f32.gmra.mrb[8].mxu1 %vm1370_vm13, %v10746_v16  ;;  %8836 = vmatprep.mubr.msk.f32.mxu0 %vm1370_vm13, %v2295_v61  ;;  %v2299_v16 = vld [vmem:[#allocation2 + $0xc0] sm:$0xff] }
 0x1b2   : > { %8948 = vmatprep.mubr.msk.f32.mxu1 %vm1370_vm13, %v10755_v58  ;;  %v6167_v58 = vld [vmem:[#allocation3] sm:$0xff]  ;;  %v6280_v61 = vld [vmem:[#allocation3 + $0x2a] sm:$0xff] }
 0x1b3   : > { %v6239_v15 = vmax.f32 %v6167_v58, %v6203_v32 }
 0x1b4   : > { %8837 = vmatmul.mubr.msk.f32.gmra.mrb[142].mxu0 %vm1370_vm13, %v2296_v0  ;;  %v11028_v0 = vld [vmem:[#allocation3 + $0x32] sm:$0xff] }
 0x1b5   : > { %8949 = vmatmul.mubr.msk.f32.gmra.mrb[10].mxu1 %vm1370_vm13, %v10764_v45  ;;  %8839 = vmatprep.mubr.msk.f32.mxu0 %vm1370_vm13, %v2297_v8  ;;  %v2300_v45 = vld [vmem:[#allocation2 + $0xc8] sm:$0xff] }
 0x1b6   : > { %8951 = vmatprep.mubr.msk.f32.mxu1 %vm1370_vm13, %v10773_v30  ;;  %v2301_v30 = vld [vmem:[#allocation2 + $0xd0] sm:$0xff]  ;;  %v2308_v8 = vld [vmem:[#allocation2 + $0x108] sm:$0xff] }
 0x1b8   : > { %8840 = vmatmul.mubr.msk.f32.gmra.mrb[144].mxu0 %vm1370_vm13, %v2298_v41  ;;  %v11030_v41 = vld [vmem:[#allocation3 + $0x24] sm:$0xff] }
 0x1b9   : > { %8952 = vmatmul.mubr.msk.f32.gmra.mrb[12].mxu1 %vm1370_vm13, %v10782_v44  ;;  %8842 = vmatprep.mubr.msk.f32.mxu0 %vm1370_vm13, %v2299_v16  ;;  %v6169_v44 = vld [vmem:[#allocation3 + $0x10] sm:$0xff] }
 0x1ba   : > { %8954 = vmatprep.mubr.msk.f32.mxu1 %vm1370_vm13, %v10791_v57  ;;  %v6311_v57 = vmax.f32 %v6239_v15, %v6275_v20  ;;  %v6241_v5 = vmax.f32 %v6169_v44, %v6205_v34  ;;  %v6210_v15 = vld [vmem:[#allocation3 + $0x39] sm:$0xff]  ;;  %v3517_v20 = vld [vmem:[#allocation2 + $0x122] sm:$0xff] }
 0x1bb   : > { %v11045_v34 = vld [vmem:[#allocation3 + $0x3a] sm:$0xff] }
 0x1bc   : > { %8843 = vmatmul.mubr.msk.f32.gmra.mrb[146].mxu0 %vm1370_vm13, %v2300_v45  ;;  %v6349_v17 = vmax.f32 %v6311_v57, %v6277_v13  ;;  %v6313_v46 = vmax.f32 %v6241_v5, %v6277_v13  ;;  %v6174_v45 = vld [vmem:[#allocation3 + $0x38] sm:$0xff]  ;;  %v6211_v57 = vld [vmem:[#allocation3 + $0x41] sm:$0xff]  ;;  %v11053_v13 = vld [vmem:[#allocation3 + $0x50] sm:$0xff] }
 0x1bd   : > { %8955 = vmatmul.mubr.msk.f32.gmra.mrb[14].mxu1 %vm1370_vm13, %v10800_v1  ;;  %8845 = vmatprep.mubr.msk.f32.mxu0 %vm1370_vm13, %v2301_v30  ;;  %v6276_v1 = vld [vmem:[#allocation3 + $0xa] sm:$0xff]  ;;  %v6246_v5 = vmax.f32 %v6174_v45, %v6210_v15  ;;  %v11107_v45 = vld [vmem:[#allocation3 + $0x5a] sm:$0xff] }
 0x1be   : > { %8957 = vmatprep.mubr.msk.f32.mxu1 %vm1370_vm13, %v10819_v37  ;;  %v6170_v37 = vld [vmem:[#allocation3 + $0x18] sm:$0xff]  ;;  %v6312_v6 = vmax.f32 %v6240_v22, %v6276_v1  ;;  %v6421_v25 = vmax.f32 %v6349_v17, %v6385_v4  ;;  %v6351_v39 = vmax.f32 %v6313_v46, %v6279_v54  ;;  %v6176_v22 = vld [vmem:[#allocation3 + $0x48] sm:$0xff]  ;;  %v2310_v17 = vld [vmem:[#allocation2 + $0x118] sm:$0xff] }
 0x1bf   : > { %v11051_v1 = vld [vmem:[#allocation3 + $0x25] sm:$0xff]  ;;  %v3518_v4 = vld [vmem:[#allocation2 + $0x12a] sm:$0xff] }
 0x1c0   : > { %8846 = vmatmul.mubr.msk.f32.gmra.mrb[148].mxu0 %vm1370_vm13, %v2302_v56  ;;  %v6350_v60 = vmax.f32 %v6312_v6, %v6278_v19  ;;  %v11039_v30 = vmax.f32 %v6351_v39, %v6387_v3  ;;  %v11047_v56 = vmax.f32 %v6244_v35, %v6280_v61  ;;  %v6283_v39 = vld [vmem:[#allocation3 + $0x42] sm:$0xff] }
 0x1c1   : > { %8958 = vmatmul.mubr.msk.f32.gmra.mrb[16].mxu1 %vm1370_vm13, %v10828_v48  ;;  %8848 = vmatprep.mubr.msk.f32.mxu0 %vm1370_vm13, %v2303_v27  ;;  %v2305_v48 = vld [vmem:[#allocation2 + $0xf0] sm:$0xff]  ;;  %v6212_v27 = vld [vmem:[#allocation3 + $0x49] sm:$0xff]  ;;  %v11109_v15 = vld [vmem:[#allocation3 + $0x60] sm:$0xff] }
 0x1c2   : > { %8960 = vmatprep.mubr.msk.f32.mxu1 %vm1370_vm13, %v10837_v26  ;;  %v6242_v26 = vmax.f32 %v6170_v37, %v6206_v49  ;;  %v11032_v16 = vmax.f32 %v6350_v60, %v6386_v63  ;;  %v6213_v37 = vld [vmem:[#allocation3 + $0x51] sm:$0xff]  ;;  %v6495_v43 = vmax.f32 %v11039_v30, %v11030_v41  ;;  %v6639_v35 = vld [vmem:[#allocation3 + $0x26] sm:$0xff] }
 0x1c3   : > { %v11055_v49 = vld [vmem:[#allocation3 + $0x58] sm:$0xff]  ;;  %v11117_v30 = vld [vmem:[#allocation3 + $0x2d] sm:$0xff] }
 0x1c4   : > { %8849 = vmatmul.mubr.msk.f32.gmra.mrb[150].mxu0 %vm1370_vm13, %v2304_v18  ;;  %v6314_v11 = vmax.f32 %v6242_v26, %v6278_v19  ;;  %v3056_v26 = vld [vmem:[#allocation2 + $0x2] sm:$0xff]  ;;  %v3057_v63 = vld [vmem:[#allocation2 + $0xa] sm:$0xff] }
 0x1c5   : > { %8961 = vmatmul.mubr.msk.f32.gmra.mrb[18].mxu1 %vm1370_vm13, %v10846_v14  ;;  %8851 = vmatprep.mubr.msk.f32.mxu0 %vm1370_vm13, %v2305_v48  ;;  %v6243_v14 = vmax.f32 %v6171_v52, %v6207_v29  ;;  %v6494_v48 = vmax.f32 %v11032_v16, %v11026_v40  ;;  %v6214_v29 = vld [vmem:[#allocation3 + $0x59] sm:$0xff]  ;;  %v11071_v19 = vld [vmem:[#allocation3 + $0x2c] sm:$0xff] }
 0x1c6   : > { %8963 = vmatprep.mubr.msk.f32.mxu1 %vm1370_vm13, %v10855_v2  ;;  %v6209_v2 = vld [vmem:[#allocation3 + $0x31] sm:$0xff]  ;;  %v6352_v44 = vmax.f32 %v6314_v11, %v6280_v61  ;;  %v3911_v11 = vld [vmem:[#allocation2 + $0x1b] sm:$0xff]  ;;  %v6390_v40 = vld [vmem:[#allocation3 + $0x3b] sm:$0xff]  ;;  %v11092_v61 = vmax.f32 %v6246_v5, %v11045_v34 }
 0x1c7   : > { %v11034_v58 = vmax.f32 %v6243_v14, %v6279_v54  ;;  %v6245_v32 = vmax.f32 %v6173_v59, %v6209_v2  ;;  %v11080_v54 = vld [vmem:[#allocation3 + $0x34] sm:$0xff]  ;;  %v11086_v59 = vld [vmem:[#allocation3 + $0x4a] sm:$0xff]  ;;  %v6249_v2 = vmax.f32 %v11053_v13, %v6213_v37  ;;  %v11102_v16 = vmax.f32 %v6494_v48, %v11071_v19 }
 0x1c8   : > { %8852 = vmatmul.mubr.msk.f32.gmra.mrb[152].mxu0 %vm1370_vm13, %v2306_v62  ;;  %v6247_v62 = vmax.f32 %v11041_v42, %v6211_v57  ;;  %v11082_v14 = vmax.f32 %v6352_v44, %v6388_v24  ;;  %v11120_v24 = vmax.f32 %v6495_v43, %v11080_v54  ;;  %v6391_v42 = vld [vmem:[#allocation3 + $0x43] sm:$0xff] }
 0x1c9   : > { %8964 = vmatmul.mubr.msk.f32.gmra.mrb[20].mxu1 %vm1370_vm13, %v10864_v50  ;;  %8854 = vmatprep.mubr.msk.f32.mxu0 %vm1370_vm13, %v2307_v28  ;;  %v6493_v50 = vmax.f32 %v6421_v25, %v6457_v12  ;;  %v6353_v46 = vmax.f32 %v11034_v58, %v11028_v0  ;;  %v11067_v52 = vmax.f32 %v6245_v32, %v11028_v0  ;;  %v3910_v12 = vld [vmem:[#allocation2 + $0x13] sm:$0xff]  ;;  %v11094_v0 = vld [vmem:[#allocation3 + $0x52] sm:$0xff]  ;;  %v11168_v43 = vld [vmem:[#allocation3 + $0x68] sm:$0xff] }
 0x1ca   : > { %8966 = vmatprep.mubr.msk.f32.mxu1 %vm1370_vm13, %v10873_v55  ;;  %v2309_v55 = vld [vmem:[#allocation2 + $0x110] sm:$0xff]  ;;  %v6248_v25 = vmax.f32 %v6176_v22, %v6212_v27  ;;  %v6354_v28 = vmax.f32 %v11047_v56, %v11045_v34  ;;  %v11122_v44 = vmax.f32 %v6247_v62, %v6283_v39  ;;  %v3912_v22 = vld [vmem:[#allocation2 + $0x23] sm:$0xff]  ;;  %v6496_v5 = vmax.f32 %v11082_v14, %v11071_v19  ;;  %v6287_v19 = vld [vmem:[#allocation3 + $0x62] sm:$0xff] }
 0x1cb   : > { %v11060_v6 = vmax.f32 %v6493_v50, %v11030_v41  ;;  %v11104_v58 = vmax.f32 %v6353_v46, %v6389_v7  ;;  %v6355_v32 = vmax.f32 %v11067_v52, %v6283_v39  ;;  %v7956_v56 = vld [vmem:[%s12703_s8 + $0x30] sm:$0xff]  ;;  %v11144_v37 = vmax.f32 %v6249_v2, %v11094_v0  ;;  %v11181_v14 = vld [vmem:[#allocation3 + $0x69] sm:$0xff] }
 0x1cc   : > { %8855 = vmatmul.mubr.msk.f32.gmra.mrb[154].mxu0 %vm1370_vm13, %v2308_v8  ;;  %v6250_v8 = vmax.f32 %v11055_v49, %v6214_v29  ;;  %v11125_v34 = vmax.f32 %v6248_v25, %v11086_v59  ;;  %v11135_v27 = vld [vmem:[#allocation3 + $0x35] sm:$0xff]  ;;  %v11141_v13 = vmax.f32 %v6354_v28, %v6390_v40  ;;  %v6604_v62 = vmax.f32 %v11102_v16, %v11117_v30 }
 0x1cd   : > { %8967 = vmatmul.mubr.msk.f32.gmra.mrb[22].mxu1 %vm1370_vm13, %v10882_v51  ;;  %8857 = vmatprep.mubr.msk.f32.mxu0 %vm1370_vm13, %v2309_v55  ;;  %v11049_v51 = vpop.f32.mrb[86].mxu0  ;;  %v6603_v50 = vmax.f32 %v11060_v6, %v11051_v1  ;;  %v11111_v55 = vld [vmem:[#allocation3 + $0x61] sm:$0xff]  ;;  %v6641_v25 = vld [vmem:[#allocation3 + $0x36] sm:$0xff]  ;;  %v6359_v40 = vmax.f32 %v11144_v37, %v6287_v19 }
 0x1ce   : > { %8969 = vmatprep.mubr.msk.f32.mxu1 %vm1370_vm13, %v3517_v20  ;;  %v11057_v18 = vpop.f32.mrb[87].mxu0  ;;  %v11137_v1 = vld [vmem:[#allocation3 + $0x3c] sm:$0xff]  ;;  %v11156_v6 = vmax.f32 %v6250_v8, %v11107_v45  ;;  %v6251_v48 = vmax.f32 %v11109_v15, %v11111_v55  ;;  %v11183_v28 = vld [vmem:[#allocation3 + $0x70] sm:$0xff] }
 0x1cf   : > { %v11076_v60 = vpop.f32.mrb[88].mxu0  ;;  %v3914_v52 = vld [vmem:[#allocation2 + $0x33] sm:$0xff]  ;;  %v11162_v29 = vmax.f32 %v6603_v50, %v6639_v35  ;;  %v6217_v39 = vld [vmem:[#allocation3 + $0x71] sm:$0xff]  ;;  %v11193_v2 = vmax.f32 %v6496_v5, %v11137_v1  ;;  %v11200_v50 = vld [vmem:[#allocation3 + $0x45] sm:$0xff] }
 0x1d0   : > { %8858 = vmatmul.mubr.msk.f32.gmra.mrb[156].mxu0 %vm1370_vm13, %v2310_v17  ;;  %v11089_v3 = vpop.f32.mrb[89].mxu0  ;;  %v6356_v17 = vmax.f32 %v11092_v61, %v11086_v59  ;;  %v6394_v35 = vld [vmem:[#allocation3 + $0x5b] sm:$0xff]  ;;  %v6288_v61 = vld [vmem:[#allocation3 + $0x6a] sm:$0xff] }
 0x1d1   : > { %8970 = vmatmul.mubr.msk.f32.gmra.mrb[24].mxu1 %vm1370_vm13, %v3518_v4  ;;  %8862 = vmatprep.mubr.msk.f32.mxu0 %vm1370_vm13, %v3056_v26  ;;  %v11097_v41 = vpop.f32.mrb[90].mxu0  ;;  %v6392_v4 = vld [vmem:[#allocation3 + $0x4b] sm:$0xff]  ;;  %v11198_v8 = vld [vmem:[#allocation3 + $0x3d] sm:$0xff] }
 0x1d2   : > { %8974 = vmatprep.mubr.msk.f32.mxu1 %vm1370_vm13, %v3910_v12  ;;  %v11113_v20 = vpop.f32.mrb[91].mxu0  ;;  %v6640_v26 = vld [vmem:[#allocation3 + $0x2e] sm:$0xff]  ;;  %v11166_v12 = vmax.f32 %v6355_v32, %v6391_v42  ;;  %v11204_v16 = vmax.f32 %v6356_v17, %v6392_v4  ;;  %v6360_v32 = vmax.f32 %v11156_v6, %v6288_v61  ;;  %v3915_v55 = vld [vmem:[#allocation2 + $0x3b] sm:$0xff]  ;;  %v6606_v4 = vmax.f32 %v11193_v2, %v11198_v8 }
 0x1d3   : > { %v11130_v57 = vpop.f32.mrb[92].mxu0  ;;  %v6642_v5 = vld [vmem:[#allocation3 + $0x3e] sm:$0xff]  ;;  %v11243_v6 = vld [vmem:[#allocation3 + $0x4d] sm:$0xff] }
 0x1d4   : > { %8863 = vmatmul.mubr.msk.f32.vlgmr.msra.gmra.mrb[122].mxu0 %vm1370_vm13, %v3057_v63  ;;  %v11146_v49 = vpop.f32.mrb[93].mxu0  ;;  %v6357_v63 = vmax.f32 %v11122_v44, %v11094_v0  ;;  %v6396_v44 = vld [vmem:[#allocation3 + $0x6b] sm:$0xff] }
 0x1d5   : > { %8975 = vmatmul.mubr.msk.f32.vlgmr.msra.gmra.mrb[26].mxu1 %vm1370_vm13, %v3911_v11  ;;  %8865 = vmatprep.mubr.msk.f32.mxu0 %vm1370_vm13, %v10889_v21  ;;  %v11151_v21 = vld [vmem:[#allocation3 + $0x44] sm:$0xff]  ;;  %v11160_v46 = vpop.f32.mrb[94].mxu0  ;;  %v6393_v11 = vld [vmem:[#allocation3 + $0x53] sm:$0xff] }
 0x1d6   : > { %9029 = vmatpush3.msra.mxu1 %v10905_v36  ;;  %8977 = vmatprep.mubr.msk.f32.mxu1 %vm1370_vm13, %v3912_v22  ;;  %v3913_v36 = vld [vmem:[#allocation2 + $0x2b] sm:$0xff]  ;;  %v11170_v7 = vpop.f32.mrb[95].mxu0  ;;  %v6499_v42 = vmax.f32 %v11166_v12, %v11151_v21  ;;  %v11230_v37 = vmax.f32 %v6357_v63, %v6393_v11  ;;  %v11263_v63 = vld [vmem:[#allocation3 + $0x80] sm:$0xff] }
 0x1d7   : > { %9253 = vmatpush3.msk.msra.mxu0 %vm685_vm0, %v10910_v33  ;;  %v6497_v33 = vmax.f32 %v11104_v58, %v11080_v54  ;;  %9084 = vmatprep.subr.mxu1 %v7956_v56  ;;  %v6358_v54 = vmax.f32 %v11125_v34, %v11107_v45  ;;  %v11185_v59 = vpop.f32.mrb[96].mxu0  ;;  %v6395_v58 = vld [vmem:[#allocation3 + $0x63] sm:$0xff]  ;;  %v11207_v45 = vmax.f32 %v6251_v48, %v6287_v19  ;;  %v11274_v2 = vld [vmem:[#allocation3 + $0x6c] sm:$0xff]  ;;  %vm7514_vm0 = vcmask 195584  }
 0x1d8   : > { %8866 = vmatmul.mubr.msk.f32.gmra.mrb[124].mxu0 %vm1370_vm13, %v10896_v31  ;;  %12781 = vst [vmem:[#allocation4_spill] sm:$0xff] %v11185_v59  ;;  %v6605_v31 = vmax.f32 %v11120_v24, %v11135_v27  ;;  %v11196_v0 = vpop.f32.mrb[97].mxu0  ;;  %v11214_v24 = vld [vmem:[#allocation3 + $0x4c] sm:$0xff]  ;;  %v6252_v34 = vmax.f32 %v11168_v43, %v11181_v14  ;;  %v6253_v56 = vmax.f32 %v11183_v28, %v6217_v39  ;;  %v11245_v48 = vld [vmem:[#allocation3 + $0x5c] sm:$0xff]  ;;  %v11258_v43 = vld [vmem:[#allocation3 + $0x64] sm:$0xff] }
 0x1d9   : > { %8978 = vmatmul.mubr.msk.f32.gmra.mrb[28].mxu1 %vm1370_vm13, %v3913_v36  ;;  %8868 = vmatprep.mubr.msk.f32.mxu0 %vm1370_vm13, %v10914_v10  ;;  %12782 = vst [vmem:[#allocation5_spill] sm:$0xff] %v11196_v0  ;;  %v6498_v10 = vmax.f32 %v11141_v13, %v11137_v1  ;;  %v11209_v15 = vpop.f32.mrb[98].mxu0  ;;  %v11212_v30 = vmax.f32 %v6497_v33, %v11151_v21  ;;  %v3916_v27 = vld [vmem:[#allocation2 + $0x43] sm:$0xff]  ;;  %v11228_v13 = vld [vmem:[#allocation3 + $0x54] sm:$0xff] }
 0x1da   : > { %8980 = vmatprep.mubr.msk.f32.mxu1 %vm1370_vm13, %v3914_v52  ;;  %12783 = vst [vmem:[#allocation6_spill] sm:$0xff] %v11209_v15  ;;  %v11221_v22 = vpop.f32.mrb[99].mxu0  ;;  %v11226_v1 = vmax.f32 %v6604_v62, %v6640_v26  ;;  %v11232_v36 = vmax.f32 %v6358_v54, %v6394_v35  ;;  %v6289_v21 = vld [vmem:[#allocation3 + $0x72] sm:$0xff]  ;;  %v11247_v52 = vmax.f32 %v6359_v40, %v6395_v58  ;;  %v11265_v54 = vld [vmem:[#allocation3 + $0x81] sm:$0xff] }
 0x1db   : > { %12784 = vst [vmem:[#allocation7_spill] sm:$0xff] %v11221_v22  ;;  %v11234_v17 = vpop.f32.mrb[100].mxu0  ;;  %v11249_v26 = vld [vmem:[#allocation3 + $0x78] sm:$0xff]  ;;  %v6500_v19 = vmax.f32 %v11204_v16, %v11214_v24  ;;  %v11260_v62 = vmax.f32 %v6360_v32, %v6396_v44  ;;  %v6607_v39 = vmax.f32 %v11212_v30, %v11200_v50  ;;  %v11276_v35 = vmax.f32 %v6252_v34, %v6288_v61  ;;  %v6643_v16 = vld [vmem:[#allocation3 + $0x46] sm:$0xff] }
 0x1dc   : > { %8869 = vmatmul.mubr.msk.f32.gmra.mrb[126].mxu0 %vm1370_vm13, %v10922_v47  ;;  %12785 = vst [vmem:[#allocation17_spill] sm:$0xff] %v11234_v17  ;;  %v11239_v47 = vmax.f32 %v6605_v31, %v6641_v25  ;;  %v6218_v33 = vld [vmem:[#allocation3 + $0x79] sm:$0xff]  ;;  %v11251_v12 = vpop.f32.mrb[101].mxu0  ;;  %v6361_v25 = vmax.f32 %v11207_v45, %v6289_v21  ;;  %v11272_v31 = vmax.f32 %v6499_v42, %v11228_v13  ;;  %v5203_v22 = vld [vmem:[#allocation2 + $0x85] sm:$0xff] }
 0x1dd   : > { %8981 = vmatmul.mubr.msk.f32.gmra.mrb[30].mxu1 %vm1370_vm13, %v3915_v55  ;;  %8871 = vmatprep.mubr.msk.f32.mxu0 %vm1370_vm13, %v10931_v38  ;;  %12786 = vst [vmem:[#allocation20_spill] sm:$0xff] %v11251_v12  ;;  %v11254_v38 = vmax.f32 %v6498_v10, %v11214_v24  ;;  %v11267_v14 = vpop.f32.mrb[102].mxu0  ;;  %v3917_v28 = vld [vmem:[#allocation2 + $0x4b] sm:$0xff]  ;;  %v11278_v40 = vmax.f32 %v6253_v56, %v6289_v21  ;;  %v3918_v10 = vld [vmem:[#allocation2 + $0x53] sm:$0xff]  ;;  %v11316_v21 = vld [vmem:[#allocation3 + $0x88] sm:$0xff] }
 0x1de   : > { %8983 = vmatprep.mubr.msk.f32.mxu1 %vm1370_vm13, %v3916_v27  ;;  %12787 = vst [vmem:[#allocation8_spill] sm:$0xff] %v11267_v14  ;;  %v6397_v11 = vld [vmem:[#allocation3 + $0x73] sm:$0xff]  ;;  %v11280_v8 = vpop.f32.mrb[103].mxu0  ;;  %v6501_v58 = vmax.f32 %v11230_v37, %v11228_v13  ;;  %v6502_v32 = vmax.f32 %v11232_v36, %v11245_v48  ;;  %v6254_v61 = vmax.f32 %v11249_v26, %v6218_v33  ;;  %v11297_v30 = vld [vmem:[#allocation3 + $0x5d] sm:$0xff]  ;;  %v3920_v33 = vld [vmem:[#allocation2 + $0x63] sm:$0xff] }
 0x1df   : > { %12788 = vst [vmem:[#allocation9_spill] sm:$0xff] %v11280_v8  ;;  %v6573_v50 = vld [vmem:[#allocation3 + $0x55] sm:$0xff]  ;;  %v11290_v45 = vpop.f32.mrb[104].mxu0  ;;  %v6503_v42 = vmax.f32 %v11247_v52, %v11258_v43  ;;  %v6255_v34 = vmax.f32 %v11263_v63, %v11265_v54  ;;  %v6504_v13 = vmax.f32 %v11260_v62, %v11274_v2  ;;  %v11314_v37 = vmax.f32 %v6361_v25, %v6397_v11  ;;  %v6291_v36 = vld [vmem:[#allocation3 + $0x82] sm:$0xff] }
 0x1e0   : > { %8872 = vmatmul.mubr.msk.f32.gmra.mrb[128].mxu0 %vm1370_vm13, %v10936_v9  ;;  %12789 = vst [vmem:[#allocation10_spill] sm:$0xff] %v11290_v45  ;;  %v11295_v9 = vmax.f32 %v6606_v4, %v6642_v5  ;;  %v6644_v55 = vld [vmem:[#allocation3 + $0x4e] sm:$0xff]  ;;  %v6290_v44 = vld [vmem:[#allocation3 + $0x7a] sm:$0xff]  ;;  %v11305_v56 = vpop.f32.mrb[105].mxu0  ;;  %v11310_v5 = vmax.f32 %v6500_v19, %v11245_v48  ;;  %v3919_v26 = vld [vmem:[#allocation2 + $0x5b] sm:$0xff]  ;;  %v11322_v63 = vmax.f32 %v6607_v39, %v6643_v16 }
 0x1e1   : > { %8984 = vmatmul.mubr.msk.f32.gmra.mrb[32].mxu1 %vm1370_vm13, %v3917_v28  ;;  %8874 = vmatprep.mubr.msk.f32.mxu0 %vm1370_vm13, %v10941_v23  ;;  %v11299_v24 = vld [vmem:[#allocation3 + $0x74] sm:$0xff]  ;;  %12790 = vst [vmem:[#allocation11_spill] sm:$0xff] %v11305_v56  ;;  %v6608_v23 = vmax.f32 %v11254_v38, %v11243_v6  ;;  %v11318_v4 = vld [vmem:[#allocation3 + $0x89] sm:$0xff]  ;;  %v11320_v52 = vpop.f32.mrb[106].mxu0  ;;  %v6609_v6 = vmax.f32 %v11272_v31, %v6573_v50 }
 0x1e2   : > { %8986 = vmatprep.mubr.msk.f32.mxu1 %vm1370_vm13, %v3918_v10  ;;  %v6645_v27 = vld [vmem:[#allocation3 + $0x56] sm:$0xff]  ;;  %12791 = vst [vmem:[#allocation12_spill] sm:$0xff] %v11320_v52  ;;  %v11325_v48 = vld [vmem:[#allocation3 + $0x65] sm:$0xff]  ;;  %v11327_v38 = vld [vmem:[#allocation3 + $0x6d] sm:$0xff]  ;;  %v6362_v19 = vmax.f32 %v11276_v35, %v6290_v44  ;;  %v6363_v25 = vmax.f32 %v11278_v40, %v6291_v36  ;;  %v11331_v54 = vpop.f32.mrb[107].mxu0  ;;  %v11337_v28 = vmax.f32 %v6501_v58, %v11258_v43 }
 0x1e3   : > { %v6398_v62 = vld [vmem:[#allocation3 + $0x7b] sm:$0xff]  ;;  %12792 = vst [vmem:[#allocation13_spill] sm:$0xff] %v11331_v54  ;;  %v11340_v39 = vmax.f32 %v6502_v32, %v11274_v2  ;;  %v6399_v31 = vld [vmem:[#allocation3 + $0x83] sm:$0xff]  ;;  %v11342_v11 = vmax.f32 %v6254_v61, %v6290_v44  ;;  %v6185_v35 = vld [vmem:[#allocation3 + $0x90] sm:$0xff]  ;;  %v11356_v50 = vmax.f32 %v6255_v34, %v6291_v36  ;;  %v6256_v58 = vmax.f32 %v11316_v21, %v11318_v4  ;;  %v11360_v32 = vpop.f32.mrb[108].mxu0 }
 0x1e4   : > { %8875 = vmatmul.mubr.msk.f32.gmra.mrb[130].mxu0 %vm1370_vm13, %v10946_v53  ;;  %v6221_v10 = vld [vmem:[#allocation3 + $0x91] sm:$0xff]  ;;  %v6646_v40 = vld [vmem:[#allocation3 + $0x5e] sm:$0xff]  ;;  %v11348_v53 = vmax.f32 %v6503_v42, %v11299_v24  ;;  %12793 = vst [vmem:[#allocation14_spill] sm:$0xff] %v11360_v32  ;;  %v11362_v44 = vmax.f32 %v6608_v23, %v6644_v55  ;;  %v6505_v34 = vmax.f32 %v11314_v37, %v11299_v24  ;;  %v6647_v32 = vld [vmem:[#allocation3 + $0x66] sm:$0xff] }
 0x1e5   : > { %8987 = vmatmul.mubr.msk.f32.gmra.mrb[34].mxu1 %vm1370_vm13, %v3919_v26  ;;  %9254 = vmatprep.mubr.msk.f32.mxu0 %vm555_vm6, %v11162_v29  ;;  %v11350_v16 = vld [vmem:[#allocation3 + $0x75] sm:$0xff]  ;;  %v11354_v2 = vld [vmem:[#allocation3 + $0x7d] sm:$0xff]  ;;  %v6610_v29 = vmax.f32 %v11310_v5, %v11297_v30  ;;  %v6292_v36 = vld [vmem:[#allocation3 + $0x8a] sm:$0xff]  ;;  %v11375_v4 = vmax.f32 %v6609_v6, %v6645_v27  ;;  %v11377_v23 = vmax.f32 %v6362_v19, %v6398_v62 }
 0x1e6   : > { %8989 = vmatprep.mubr.msk.f32.mxu1 %vm1370_vm13, %v3920_v33  ;;  %v11352_v43 = vld [vmem:[#allocation3 + $0x7c] sm:$0xff]  ;;  %v3921_v61 = vld [vmem:[#allocation2 + $0x6b] sm:$0xff]  ;;  %v11369_v26 = vld [vmem:[#allocation3 + $0x84] sm:$0xff]  ;;  %v11373_v33 = vpop.f32.mrb[109].mxu0  ;;  %v11379_v54 = vmax.f32 %v6363_v25, %v6399_v31  ;;  %v6257_v30 = vmax.f32 %v6185_v35, %v6221_v10  ;;  %v6611_v24 = vmax.f32 %v11337_v28, %v11325_v48  ;;  %v6612_v27 = vmax.f32 %v11340_v39, %v11327_v38 }
 0x1e7   : > { %v11367_v42 = vmax.f32 %v6504_v13, %v11352_v43  ;;  %12794 = vst [vmem:[#allocation15_spill] sm:$0xff] %v11373_v33  ;;  %v3922_v21 = vld [vmem:[#allocation2 + $0x73] sm:$0xff]  ;;  %v6648_v55 = vld [vmem:[#allocation3 + $0x6e] sm:$0xff]  ;;  %v11381_v52 = vpop.f32.mrb[110].mxu0  ;;  %v6364_v37 = vmax.f32 %v11342_v11, %v6292_v36  ;;  %v11399_v39 = vmax.f32 %v6256_v58, %v6292_v36  ;;  %v3923_v35 = vld [vmem:[#allocation2 + $0x7b] sm:$0xff]  ;;  %v11403_v10 = vmax.f32 %v6610_v29, %v6646_v40 }
 0x1e8   : > { %v6186_v5 = vld [vmem:[#allocation3 + $0x98] sm:$0xff]  ;;  %12795 = vst [vmem:[#allocation16_spill] sm:$0xff] %v11381_v52  ;;  %9255 = vmatmul.mubr.msk.f32.vlgmr.msra.gmra.mrb[158].mxu0 %vm555_vm6, %v11226_v1  ;;  %v6187_v19 = vld [vmem:[#allocation3 + $0xa0] sm:$0xff]  ;;  %v11391_v25 = vpop.f32.mrb[111].mxu0  ;;  %v6613_v1 = vmax.f32 %v11348_v53, %v11350_v16  ;;  %v6400_v28 = vld [vmem:[#allocation3 + $0x8b] sm:$0xff]  ;;  %v6507_v58 = vmax.f32 %v11379_v54, %v11369_v26 }
 0x1e9   : > { %v6222_v13 = vld [vmem:[#allocation3 + $0x99] sm:$0xff]  ;;  %8990 = vmatmul.mubr.msk.f32.gmra.mrb[0].mxu1 %vm1370_vm13, %v3921_v61  ;;  %v6223_v62 = vld [vmem:[#allocation3 + $0xa1] sm:$0xff]  ;;  %12796 = vst [vmem:[#allocation18_spill] sm:$0xff] %v11391_v25  ;;  %9257 = vmatprep.mubr.msk.f32.mxu0 %vm555_vm6, %v11239_v47  ;;  %v11401_v11 = vpop.f32.mrb[112].mxu0  ;;  %v6614_v61 = vmax.f32 %v11367_v42, %v11354_v2  ;;  %v11408_v47 = vmax.f32 %v6505_v34, %v11369_v26  ;;  %v6224_v42 = vld [vmem:[#allocation3 + $0xa9] sm:$0xff] }
 0x1ea   : > { %v6293_v6 = vld [vmem:[#allocation3 + $0x92] sm:$0xff]  ;;  %8992 = vmatprep.mubr.msk.f32.mxu1 %vm1370_vm13, %v3922_v21  ;;  %v6650_v48 = vld [vmem:[#allocation3 + $0x7e] sm:$0xff]  ;;  %12797 = vst [vmem:[#allocation19_spill] sm:$0xff] %v11401_v11  ;;  %v6258_v16 = vmax.f32 %v6186_v5, %v6222_v13  ;;  %v11412_v25 = vpop.f32.mrb[113].mxu0  ;;  %v6259_v36 = vmax.f32 %v6187_v19, %v6223_v62  ;;  %v6188_v2 = vld [vmem:[#allocation3 + $0xa8] sm:$0xff]  ;;  %v11425_v13 = vmax.f32 %v6611_v24, %v6647_v32 }
 0x1eb   : > { %v6649_v31 = vld [vmem:[#allocation3 + $0x76] sm:$0xff]  ;;  %v6365_v38 = vmax.f32 %v11356_v50, %v6293_v6  ;;  %v11410_v21 = vld [vmem:[#allocation3 + $0x85] sm:$0xff]  ;;  %12798 = vst [vmem:[#allocation21_spill] sm:$0xff] %v11412_v25  ;;  %v6506_v50 = vmax.f32 %v11377_v23, %v11352_v43  ;;  %v11418_v29 = vmax.f32 %v6257_v30, %v6293_v6  ;;  %v11420_v34 = vpop.f32.mrb[114].mxu0  ;;  %v11427_v43 = vmax.f32 %v6612_v27, %v6648_v55 }
 0x1ec   : > { %v6401_v53 = vld [vmem:[#allocation3 + $0x93] sm:$0xff]  ;;  %12799 = vst [vmem:[#allocation22_spill] sm:$0xff] %v11420_v34  ;;  %9258 = vmatmul.mubr.msk.f32.gmra.mrb[160].mxu0 %vm555_vm6, %v11295_v9  ;;  %v3924_v5 = vld [vmem:[#allocation2 + $0x83] sm:$0xff]  ;;  %v11429_v23 = vmax.f32 %v6364_v37, %v6400_v28  ;;  %v6295_v54 = vld [vmem:[#allocation3 + $0xa2] sm:$0xff]  ;;  %v11431_v26 = vpop.f32.mrb[115].mxu0  ;;  %v11436_v30 = vmax.f32 %v6613_v1, %v6649_v31  ;;  %v11445_v37 = vmax.f32 %v6614_v61, %v6650_v48 }
 0x1ed   : > { %v6294_v40 = vld [vmem:[#allocation3 + $0x9a] sm:$0xff]  ;;  %8993 = vmatmul.mubr.msk.f32.gmra.mrb[2].mxu1 %vm1370_vm13, %v3923_v35  ;;  %12800 = vst [vmem:[#allocation23_spill] sm:$0xff] %v11431_v26  ;;  %9260 = vmatprep.mubr.msk.f32.mxu0 %vm555_vm6, %v11322_v63  ;;  %v11438_v6 = vld [vmem:[#allocation3 + $0x8c] sm:$0xff]  ;;  %v11440_v9 = vmax.f32 %v6365_v38, %v6401_v53  ;;  %v11443_v27 = vpop.f32.mrb[116].mxu0  ;;  %v6260_v31 = vmax.f32 %v6188_v2, %v6224_v42  ;;  %v6403_v2 = vld [vmem:[#allocation3 + $0xa3] sm:$0xff] }
 0x1ee   : > { %8995 = vmatprep.mubr.msk.f32.mxu1 %vm1370_vm13, %v3924_v5  ;;  %v6366_v32 = vmax.f32 %v11399_v39, %v6294_v40  ;;  %v6189_v55 = vld [vmem:[#allocation3 + $0xb0] sm:$0xff]  ;;  %12801 = vst [vmem:[#allocation24_spill] sm:$0xff] %v11443_v27  ;;  %v6402_v63 = vld [vmem:[#allocation3 + $0x9b] sm:$0xff]  ;;  %v11451_v1 = vmax.f32 %v6258_v16, %v6294_v40  ;;  %v11453_v28 = vpop.f32.mrb[117].mxu0  ;;  %v11456_v39 = vmax.f32 %v6506_v50, %v11438_v6  ;;  %v7733_v16 = vld [vmem:[%s12698_s3] ss:$0 sm:$0xff] }
 0x1ef   : > { %v6225_v24 = vld [vmem:[#allocation3 + $0xb1] sm:$0xff]  ;;  %12802 = vst [vmem:[#allocation25_spill] sm:$0xff] %v11453_v28  ;;  %v6367_v48 = vmax.f32 %v11418_v29, %v6295_v54  ;;  %v11462_v53 = vmax.f32 %v6259_v36, %v6295_v54  ;;  %v8744_v40 = vpop.f32.mrb[118].mxu0  ;;  %v3926_v50 = vld [vmem:[#allocation2 + $0x93] sm:$0xff]  ;;  %v5202_v14 = vld [vmem:[#allocation2 + $0x7d] sm:$0xff] }
 0x1f0   : > { %v11449_v62 = vld [vmem:[#allocation3 + $0x94] sm:$0xff]  ;;  %v6296_v61 = vld [vmem:[#allocation3 + $0xaa] sm:$0xff]  ;;  %9261 = vmatmul.mubr.msk.f32.gmra.mrb[162].mxu0 %vm555_vm6, %v11362_v44  ;;  %v6261_v29 = vmax.f32 %v6189_v55, %v6225_v24  ;;  %v2193_v5 = vmul.f32 %v8744_v40, %v7733_v16  ;;  %v2134_v36 = vpop.f32.mrb[119].mxu0  ;;  %v6227_v27 = vld [vmem:[#allocation3 + $0xc1] sm:$0xff] }
 0x1f1   : > { %v3925_v38 = vld [vmem:[#allocation2 + $0x8b] sm:$0xff]  ;;  %v11459_v35 = vmax.f32 %v6507_v58, %v11449_v62  ;;  %v6508_v58 = vmax.f32 %v11429_v23, %v11438_v6  ;;  %9263 = vmatprep.mubr.msk.f32.mxu0 %vm555_vm6, %v11375_v4  ;;  %v6509_v54 = vmax.f32 %v11440_v9, %v11449_v62  ;;  %v7734_v23 = vld [vmem:[%s12699_s4] ss:$0 sm:$0xff]  ;;  %v2192_v6 = vmul.f32 %v7733_v16, %v2134_v36  ;;  %v8747_v55 = vpop.f32.mrb[120].mxu0  ;;  %v6191_v4 = vld [vmem:[#allocation3 + $0xc0] sm:$0xff] }
 0x1f2   : > { %8996 = vmatmul.mubr.msk.f32.gmra.mrb[4].mxu1 %vm1370_vm13, %v3925_v38  ;;  %v6297_v42 = vld [vmem:[#allocation3 + $0xb2] sm:$0xff]  ;;  %v11477_v38 = vmax.f32 %v6366_v32, %v6402_v63  ;;  %v6651_v24 = vld [vmem:[#allocation3 + $0x86] sm:$0xff]  ;;  %v11485_v28 = vmax.f32 %v6260_v31, %v6296_v61  ;;  %v11487_v9 = vadd.f32 %v7734_v23, %v2193_v5  ;;  %v2195_v32 = vmul.f32 %v8747_v55, %v7733_v16  ;;  %v2144_v62 = vpop.f32.mrb[121].mxu0  ;;  %v6474_v34 = vld [vmem:[#allocation3 + $0x9c] sm:$0xff] }
 0x1f3   : > { %8998 = vmatprep.mubr.msk.f32.mxu1 %vm1370_vm13, %v3926_v50  ;;  %v6190_v44 = vld [vmem:[#allocation3 + $0xb8] sm:$0xff]  ;;  %v11482_v40 = vld [vmem:[#allocation3 + $0x8d] sm:$0xff]  ;;  %v6368_v50 = vmax.f32 %v11451_v1, %v6296_v61  ;;  %v3927_v63 = vld [vmem:[#allocation2 + $0x9b] sm:$0xff]  ;;  %v11491_v25 = vmax.f32 %v6367_v48, %v6403_v2  ;;  %v6369_v11 = vmax.f32 %v11462_v53, %v6297_v42  ;;  %v11494_v52 = vadd.f32 %v7734_v23, %v2192_v6 }
 0x1f4   : > { %v6226_v19 = vld [vmem:[#allocation3 + $0xb9] sm:$0xff]  ;;  %12803 = vst [vmem:[#allocation26_spill] sm:$0xff] %v11487_v9  ;;  %v6404_v36 = vld [vmem:[#allocation3 + $0xab] sm:$0xff]  ;;  %v2194_v1 = vmul.f32 %v7733_v16, %v2144_v62  ;;  %9264 = vmatmul.mubr.msk.f32.gmra.mrb[164].mxu0 %vm555_vm6, %v11403_v10  ;;  %v11499_v55 = vmax.f32 %v6261_v29, %v6297_v42  ;;  %v11501_v33 = vadd.f32 %v7734_v23, %v2195_v32 }
 0x1f5   : > { %v11489_v26 = vld [vmem:[#allocation3 + $0x95] sm:$0xff]  ;;  %12804 = vst [vmem:[#allocation27_spill] sm:$0xff] %v11494_v52  ;;  %v3928_v31 = vld [vmem:[#allocation2 + $0xa3] sm:$0xff]  ;;  %v6262_v9 = vmax.f32 %v6190_v44, %v6226_v19  ;;  %9266 = vmatprep.mubr.msk.f32.mxu0 %vm555_vm6, %v11425_v13  ;;  %v11506_v53 = vmax.f32 %v6508_v58, %v6474_v34  ;;  %v11508_v16 = vld [vmem:[#allocation3 + $0x9d] sm:$0xff]  ;;  %v6263_v6 = vmax.f32 %v6191_v4, %v6227_v27 }
 0x1f6   : > { %8999 = vmatmul.mubr.msk.f32.gmra.mrb[6].mxu1 %vm1370_vm13, %v3927_v63  ;;  %v6475_v61 = vld [vmem:[#allocation3 + $0xa4] sm:$0xff]  ;;  %v6405_v5 = vld [vmem:[#allocation3 + $0xb3] sm:$0xff]  ;;  %12805 = vst [vmem:[#allocation28_spill] sm:$0xff] %v11501_v33  ;;  %v11512_v62 = vadd.f32 %v7734_v23, %v2194_v1  ;;  %v6616_v19 = vmax.f32 %v11456_v39, %v11482_v40  ;;  %v6510_v29 = vmax.f32 %v11477_v38, %v6474_v34  ;;  %v6406_v38 = vld [vmem:[#allocation3 + $0xbb] sm:$0xff] }
 0x1f7   : > { %9001 = vmatprep.mubr.msk.f32.mxu1 %vm1370_vm13, %v3928_v31  ;;  %v6652_v48 = vld [vmem:[#allocation3 + $0x8e] sm:$0xff]  ;;  %v6298_v10 = vld [vmem:[#allocation3 + $0xba] sm:$0xff]  ;;  %v11516_v42 = vld [vmem:[#allocation3 + $0xa5] sm:$0xff]  ;;  %v11519_v44 = vmax.f32 %v6368_v50, %v6404_v36  ;;  %v12807_v27 = vmax.f32 %v11408_v47, %v11410_v21  ;;  %v11525_v1 = vmax.f32 %v6509_v54, %v6475_v61  ;;  %v6511_v40 = vmax.f32 %v11491_v25, %v6475_v61 }
 0x1f8   : > { %v11510_v2 = vld [vmem:[#allocation3 + $0xac] sm:$0xff]  ;;  %12806 = vst [vmem:[#allocation29_spill] sm:$0xff] %v11512_v62  ;;  %v6370_v13 = vmax.f32 %v11485_v28, %v6298_v10  ;;  %v6299_v58 = vld [vmem:[#allocation3 + $0xc2] sm:$0xff]  ;;  %v6653_v4 = vld [vmem:[#allocation3 + $0x96] sm:$0xff]  ;;  %v11530_v34 = vmax.f32 %v6369_v11, %v6405_v5  ;;  %9267 = vmatmul.mubr.msk.f32.gmra.mrb[166].mxu0 %vm555_vm6, %v11427_v43  ;;  %v6617_v47 = vmax.f32 %v11459_v35, %v11489_v26 }
 0x1f9   : > { %v6192_v32 = vld [vmem:[#allocation3 + $0xc8] sm:$0xff]  ;;  %v3929_v31 = vld [vmem:[#allocation2 + $0xab] sm:$0xff]  ;;  %v6687_v23 = vmax.f32 %v12807_v27, %v6651_v24  ;;  %v3930_v28 = vld [vmem:[#allocation2 + $0xb3] sm:$0xff]  ;;  %v6371_v21 = vmax.f32 %v11499_v55, %v6299_v58  ;;  %v11538_v54 = vmax.f32 %v6262_v9, %v6298_v10  ;;  %9269 = vmatprep.mubr.msk.f32.mxu0 %vm555_vm6, %v11436_v30  ;;  %v6618_v25 = vmax.f32 %v11506_v53, %v11508_v16 }
 0x1fa   : > { %v6228_v63 = vld [vmem:[#allocation3 + $0xc9] sm:$0xff]  ;;  %v11527_v39 = vld [vmem:[#allocation3 + $0xb4] sm:$0xff]  ;;  %9002 = vmatmul.mubr.msk.f32.gmra.mrb[8].mxu1 %vm1370_vm13, %v3929_v31  ;;  %v6654_v11 = vld [vmem:[#allocation3 + $0x9e] sm:$0xff]  ;;  %v11547_v61 = vmax.f32 %v6263_v6, %v6299_v58  ;;  %v6688_v35 = vmax.f32 %v6616_v19, %v6652_v48  ;;  %v11550_v5 = vmax.f32 %v6510_v29, %v11510_v2  ;;  %v6512_v30 = vmax.f32 %v11519_v44, %v11510_v2 }
 0x1fb   : > { %v6193_v24 = vld [vmem:[#allocation3 + $0xd0] sm:$0xff]  ;;  %9004 = vmatprep.mubr.msk.f32.mxu1 %vm1370_vm13, %v3930_v28  ;;  %v6407_v36 = vld [vmem:[#allocation3 + $0xc3] sm:$0xff]  ;;  %v6264_v26 = vmax.f32 %v6192_v32, %v6228_v63  ;;  %v11558_v53 = vmax.f32 %v6370_v13, %v6406_v38  ;;  %v6619_v6 = vmax.f32 %v11525_v1, %v11516_v42  ;;  %v11563_v48 = vmax.f32 %v6511_v40, %v11527_v39  ;;  %v6194_v58 = vld [vmem:[#allocation3 + $0xd8] sm:$0xff] }
 0x1fc   : > { %v6229_v50 = vld [vmem:[#allocation3 + $0xd1] sm:$0xff]  ;;  %v6655_v9 = vld [vmem:[#allocation3 + $0xa6] sm:$0xff]  ;;  %v11554_v10 = vld [vmem:[#allocation3 + $0xbc] sm:$0xff]  ;;  %v6513_v19 = vmax.f32 %v11530_v34, %v11527_v39  ;;  %9270 = vmatmul.mubr.msk.f32.gmra.mrb[168].mxu0 %vm555_vm6, %v11445_v37  ;;  %v6689_v44 = vmax.f32 %v6617_v47, %v6653_v4  ;;  %v11572_v63 = vmax.f32 %v6371_v21, %v6407_v36  ;;  %v6690_v1 = vmax.f32 %v6618_v25, %v6654_v11 }
 0x1fd   : > { %v11545_v43 = vld [vmem:[#allocation3 + $0xad] sm:$0xff]  ;;  %v11552_v55 = vld [vmem:[#allocation3 + $0xb5] sm:$0xff]  ;;  %v3931_v31 = vld [vmem:[#allocation2 + $0xbb] sm:$0xff]  ;;  %v6265_v29 = vmax.f32 %v6193_v24, %v6229_v50  ;;  %9272 = vmatprep.mubr.msk.f32.mxu0 %vm555_vm6, %v6687_v23  ;;  %v6514_v23 = vmax.f32 %v11558_v53, %v11554_v10 }
 0x1fe   : > { %v6300_v16 = vld [vmem:[#allocation3 + $0xca] sm:$0xff]  ;;  %v6230_v32 = vld [vmem:[#allocation3 + $0xd9] sm:$0xff]  ;;  %9005 = vmatmul.mubr.msk.f32.gmra.mrb[10].mxu1 %vm1370_vm13, %v3931_v31  ;;  %v6231_v28 = vld [vmem:[#allocation3 + $0xe1] sm:$0xff]  ;;  %v6620_v47 = vmax.f32 %v11550_v5, %v11545_v43 }
 0x1ff   : > { %v3932_v2 = vld [vmem:[#allocation2 + $0xc3] sm:$0xff]  ;;  %v6372_v42 = vmax.f32 %v11538_v54, %v6300_v16  ;;  %v11577_v40 = vld [vmem:[#allocation3 + $0xbd] sm:$0xff]  ;;  %v11580_v38 = vmax.f32 %v6264_v26, %v6300_v16  ;;  %v11585_v54 = vmax.f32 %v6512_v30, %v11554_v10  ;;  %v6409_v50 = vld [vmem:[#allocation3 + $0xd3] sm:$0xff]  ;;  %v6266_v25 = vmax.f32 %v6194_v58, %v6230_v32 }
 0x200   : > { %v11570_v13 = vld [vmem:[#allocation3 + $0xc4] sm:$0xff]  ;;  %v6301_v27 = vld [vmem:[#allocation3 + $0xd2] sm:$0xff]  ;;  %9007 = vmatprep.mubr.msk.f32.mxu1 %vm1370_vm13, %v3932_v2  ;;  %v6691_v26 = vmax.f32 %v6619_v6, %v6655_v9  ;;  %v6621_v16 = vmax.f32 %v11563_v48, %v11552_v55  ;;  %v6302_v30 = vld [vmem:[#allocation3 + $0xda] sm:$0xff]  ;;  %9273 = vmatmul.mubr.msk.f32.gmra.mrb[170].mxu0 %vm555_vm6, %v6688_v35 }
 0x201   : > { %v6656_v39 = vld [vmem:[#allocation3 + $0xae] sm:$0xff]  ;;  %v6373_v37 = vmax.f32 %v11547_v61, %v6301_v27  ;;  %v6195_v4 = vld [vmem:[#allocation3 + $0xe0] sm:$0xff]  ;;  %v6657_v21 = vld [vmem:[#allocation3 + $0xb6] sm:$0xff]  ;;  %v11594_v43 = vmax.f32 %v6513_v19, %v11570_v13  ;;  %v6337_v31 = vmax.f32 %v6265_v29, %v6301_v27  ;;  %v6515_v53 = vmax.f32 %v11572_v63, %v11570_v13  ;;  %9275 = vmatprep.mubr.msk.f32.mxu0 %vm555_vm6, %v6689_v44 }
 0x202   : > { %v6408_v34 = vld [vmem:[#allocation3 + $0xcb] sm:$0xff]  ;;  %v3933_v61 = vld [vmem:[#allocation2 + $0xcb] sm:$0xff]  ;;  %v3934_v10 = vld [vmem:[#allocation2 + $0xd3] sm:$0xff]  ;;  %v6267_v9 = vmax.f32 %v6195_v4, %v6231_v28  ;;  %v6374_v35 = vmax.f32 %v11580_v38, %v6302_v30  ;;  %v6622_v27 = vmax.f32 %v11585_v54, %v11577_v40 }
 0x203   : > { %v11587_v24 = vld [vmem:[#allocation3 + $0xc5] sm:$0xff]  ;;  %9008 = vmatmul.mubr.msk.f32.gmra.mrb[12].mxu1 %vm1370_vm13, %v3933_v61  ;;  %v11602_v58 = vmax.f32 %v6372_v42, %v6408_v34  ;;  %v6197_v6 = vld [vmem:[#allocation3 + $0xf0] sm:$0xff]  ;;  %v11610_v32 = vmax.f32 %v6373_v37, %v6409_v50  ;;  %v6410_v2 = vld [vmem:[#allocation3 + $0xdb] sm:$0xff]  ;;  %v6692_v42 = vmax.f32 %v6620_v47, %v6656_v39  ;;  %v6338_v61 = vmax.f32 %v6266_v25, %v6302_v30 }
 0x204   : > { %v6196_v11 = vld [vmem:[#allocation3 + $0xe8] sm:$0xff]  ;;  %v6233_v55 = vld [vmem:[#allocation3 + $0xf1] sm:$0xff]  ;;  %9010 = vmatprep.mubr.msk.f32.mxu1 %vm1370_vm13, %v3934_v10  ;;  %v6658_v48 = vld [vmem:[#allocation3 + $0xbe] sm:$0xff]  ;;  %v6693_v37 = vmax.f32 %v6621_v16, %v6657_v21  ;;  %v6623_v38 = vmax.f32 %v11594_v43, %v11587_v24  ;;  %9276 = vmatmul.mubr.msk.f32.gmra.mrb[172].mxu0 %vm555_vm6, %v6690_v1  ;;  %v6446_v16 = vmax.f32 %v6374_v35, %v6410_v2 }
 0x205   : > { %v6232_v36 = vld [vmem:[#allocation3 + $0xe9] sm:$0xff]  ;;  %v11608_v29 = vld [vmem:[#allocation3 + $0xd4] sm:$0xff]  ;;  %v6269_v33 = vmax.f32 %v6197_v6, %v6233_v55  ;;  %v6199_v21 = vld [vmem:[#allocation3 + $0x100] sm:$0xff]  ;;  %9278 = vmatprep.mubr.msk.f32.mxu0 %vm555_vm6, %v6691_v26  ;;  %v6694_v30 = vmax.f32 %v6622_v27, %v6658_v48 }
 0x206   : > { %v11596_v5 = vld [vmem:[#allocation3 + $0xcc] sm:$0xff]  ;;  %v6303_v13 = vld [vmem:[#allocation3 + $0xe2] sm:$0xff]  ;;  %v6268_v63 = vmax.f32 %v6196_v11, %v6232_v36  ;;  %v6198_v11 = vld [vmem:[#allocation3 + $0xf8] sm:$0xff]  ;;  %v11623_v47 = vmax.f32 %v6515_v53, %v11608_v29  ;;  %v6517_v1 = vmax.f32 %v11610_v32, %v11608_v29 }
 0x207   : > { %v11606_v19 = vld [vmem:[#allocation3 + $0xcd] sm:$0xff]  ;;  %v6552_v4 = vmax.f32 %v6514_v23, %v11596_v5  ;;  %v6411_v44 = vld [vmem:[#allocation3 + $0xe3] sm:$0xff]  ;;  %v6375_v50 = vmax.f32 %v6337_v31, %v6303_v13  ;;  %v6234_v39 = vld [vmem:[#allocation3 + $0xf9] sm:$0xff]  ;;  %v6516_v54 = vmax.f32 %v11602_v58, %v11596_v5  ;;  %v11627_v23 = vmax.f32 %v6267_v9, %v6303_v13 }
 0x208   : > { %v6659_v34 = vld [vmem:[#allocation3 + $0xc6] sm:$0xff]  ;;  %v11616_v10 = vld [vmem:[#allocation3 + $0xf2] sm:$0xff]  ;;  %v6306_v9 = vld [vmem:[#allocation3 + $0xfa] sm:$0xff]  ;;  %v6270_v26 = vmax.f32 %v6198_v11, %v6234_v39  ;;  %9279 = vmatmul.mubr.msk.f32.gmra.mrb[174].mxu0 %vm555_vm6, %v6692_v42 }
 0x209   : > { %v6304_v28 = vld [vmem:[#allocation3 + $0xea] sm:$0xff]  ;;  %v6235_v25 = vld [vmem:[#allocation3 + $0x101] sm:$0xff]  ;;  %v6589_v36 = vld [vmem:[#allocation3 + $0xd5] sm:$0xff]  ;;  %v6624_v5 = vmax.f32 %v6552_v4, %v11606_v19  ;;  %v6695_v13 = vmax.f32 %v6623_v38, %v6659_v34  ;;  %v6447_v52 = vmax.f32 %v6375_v50, %v6411_v44  ;;  %v6341_v29 = vmax.f32 %v6269_v33, %v11616_v10  ;;  %9281 = vmatprep.mubr.msk.f32.mxu0 %vm555_vm6, %v6693_v37 }
 0x20a   : > { %v3935_v62 = vld [vmem:[#allocation2 + $0xdb] sm:$0xff]  ;;  %v3936_v40 = vld [vmem:[#allocation2 + $0xe3] sm:$0xff]  ;;  %v11635_v43 = vmax.f32 %v6268_v63, %v6304_v28  ;;  %v6376_v53 = vmax.f32 %v6338_v61, %v6304_v28  ;;  %v3937_v55 = vld [vmem:[#allocation2 + $0xeb] sm:$0xff]  ;;  %v6271_v32 = vmax.f32 %v6199_v21, %v6235_v25  ;;  %v6625_v19 = vmax.f32 %v11623_v47, %v6589_v36 }
 0x20b   : > { %9011 = vmatmul.mubr.msk.f32.gmra.mrb[14].mxu1 %vm1370_vm13, %v3935_v62  ;;  %v6660_v24 = vld [vmem:[#allocation3 + $0xce] sm:$0xff]  ;;  %v11631_v62 = vld [vmem:[#allocation3 + $0xdc] sm:$0xff]  ;;  %v11638_v31 = vld [vmem:[#allocation3 + $0xe4] sm:$0xff]  ;;  %v6377_v27 = vmax.f32 %v11627_v23, %v11616_v10 }
 0x20c   : > { %9013 = vmatprep.mubr.msk.f32.mxu1 %vm1370_vm13, %v3936_v40  ;;  %v6412_v58 = vld [vmem:[#allocation3 + $0xeb] sm:$0xff]  ;;  %v11640_v6 = vld [vmem:[#allocation3 + $0x102] sm:$0xff]  ;;  %v6661_v40 = vld [vmem:[#allocation3 + $0xd6] sm:$0xff]  ;;  %v6554_v63 = vmax.f32 %v6516_v54, %v11631_v62  ;;  %v6555_v44 = vmax.f32 %v6517_v1, %v11638_v31  ;;  %v6518_v42 = vmax.f32 %v6446_v16, %v11631_v62  ;;  %v6378_v38 = vmax.f32 %v11635_v43, %v6306_v9 }
 0x20d   : > { %v6200_v35 = vld [vmem:[#allocation3 + $0x108] sm:$0xff]  ;;  %v3938_v48 = vld [vmem:[#allocation2 + $0xf3] sm:$0xff]  ;;  %v6201_v34 = vld [vmem:[#allocation3 + $0x110] sm:$0xff]  ;;  %v6696_v50 = vmax.f32 %v6624_v5, %v6660_v24  ;;  %v6448_v39 = vmax.f32 %v6376_v53, %v6412_v58  ;;  %v6342_v54 = vmax.f32 %v6270_v26, %v6306_v9  ;;  %v6519_v37 = vmax.f32 %v6447_v52, %v11638_v31  ;;  %9282 = vmatmul.mubr.msk.f32.gmra.mrb[176].mxu0 %vm555_vm6, %v6694_v30 }
 0x20e   : > { %v6236_v2 = vld [vmem:[#allocation3 + $0x109] sm:$0xff]  ;;  %v6237_v4 = vld [vmem:[#allocation3 + $0x111] sm:$0xff]  ;;  %v6590_v33 = vld [vmem:[#allocation3 + $0xdd] sm:$0xff]  ;;  %v6379_v36 = vmax.f32 %v6341_v29, %v11640_v6  ;;  %v6343_v1 = vmax.f32 %v6271_v32, %v11640_v6  ;;  %v6697_v43 = vmax.f32 %v6625_v19, %v6661_v40  ;;  %9284 = vmatprep.mubr.msk.f32.mxu0 %vm555_vm6, %v6695_v13 }
 0x20f   : > { %9014 = vmatmul.mubr.msk.f32.gmra.mrb[16].mxu1 %vm1370_vm13, %v3937_v55  ;;  %v6591_v28 = vld [vmem:[#allocation3 + $0xe5] sm:$0xff]  ;;  %v6413_v61 = vld [vmem:[#allocation3 + $0xf3] sm:$0xff]  ;;  %v6414_v47 = vld [vmem:[#allocation3 + $0xfb] sm:$0xff]  ;;  %v6272_v23 = vmax.f32 %v6200_v35, %v6236_v2  ;;  %v6273_v55 = vmax.f32 %v6201_v34, %v6237_v4  ;;  %v6626_v5 = vmax.f32 %v6554_v63, %v6590_v33 }
 0x210   : > { %9016 = vmatprep.mubr.msk.f32.mxu1 %vm1370_vm13, %v3938_v48  ;;  %v6484_v11 = vld [vmem:[#allocation3 + $0xec] sm:$0xff]  ;;  %v3939_v21 = vld [vmem:[#allocation2 + $0xfb] sm:$0xff]  ;;  %v6202_v62 = vld [vmem:[#allocation3 + $0x118] sm:$0xff]  ;;  %v6449_v53 = vmax.f32 %v6377_v27, %v6413_v61  ;;  %v6627_v52 = vmax.f32 %v6555_v44, %v6591_v28  ;;  %v6450_v32 = vmax.f32 %v6378_v38, %v6414_v47 }
 0x211   : > { %v6308_v10 = vld [vmem:[#allocation3 + $0x10a] sm:$0xff]  ;;  %v6662_v25 = vld [vmem:[#allocation3 + $0xde] sm:$0xff]  ;;  %v6309_v9 = vld [vmem:[#allocation3 + $0x112] sm:$0xff]  ;;  %v6556_v6 = vmax.f32 %v6518_v42, %v6484_v11  ;;  %v6520_v48 = vmax.f32 %v6448_v39, %v6484_v11  ;;  %9285 = vmatmul.mubr.msk.f32.gmra.mrb[178].mxu0 %vm555_vm6, %v6696_v50 }
 0x212   : > { %v6238_v16 = vld [vmem:[#allocation3 + $0x119] sm:$0xff]  ;;  %v3940_v24 = vld [vmem:[#allocation2 + $0x103] sm:$0xff]  ;;  %v6415_v58 = vld [vmem:[#allocation3 + $0x103] sm:$0xff]  ;;  %v6380_v34 = vmax.f32 %v6342_v54, %v6308_v10  ;;  %v6344_v40 = vmax.f32 %v6272_v23, %v6308_v10  ;;  %v6381_v61 = vmax.f32 %v6343_v1, %v6309_v9  ;;  %v6345_v13 = vmax.f32 %v6273_v55, %v6309_v9  ;;  %9287 = vmatprep.mubr.msk.f32.mxu0 %vm555_vm6, %v6697_v43 }
 0x213   : > { %9017 = vmatmul.mubr.msk.f32.gmra.mrb[18].mxu1 %vm1370_vm13, %v3939_v21  ;;  %v6663_v31 = vld [vmem:[#allocation3 + $0xe6] sm:$0xff]  ;;  %v6485_v29 = vld [vmem:[#allocation3 + $0xf4] sm:$0xff]  ;;  %v6486_v2 = vld [vmem:[#allocation3 + $0xfc] sm:$0xff]  ;;  %v6274_v19 = vmax.f32 %v6202_v62, %v6238_v16  ;;  %v6451_v4 = vmax.f32 %v6379_v36, %v6415_v58  ;;  %v6698_v28 = vmax.f32 %v6626_v5, %v6662_v25 }
 0x214   : > { %9019 = vmatprep.mubr.msk.f32.mxu1 %vm1370_vm13, %v3940_v24  ;;  %v6592_v26 = vld [vmem:[#allocation3 + $0xed] sm:$0xff]  ;;  %v6593_v35 = vld [vmem:[#allocation3 + $0xf5] sm:$0xff]  ;;  %v6487_v30 = vld [vmem:[#allocation3 + $0x104] sm:$0xff]  ;;  %v6557_v27 = vmax.f32 %v6519_v37, %v6485_v29  ;;  %v6521_v42 = vmax.f32 %v6449_v53, %v6485_v29  ;;  %v6699_v39 = vmax.f32 %v6627_v52, %v6663_v31  ;;  %v6522_v54 = vmax.f32 %v6450_v32, %v6486_v2 }
 0x215   : > { %v3941_v63 = vld [vmem:[#allocation2 + $0x10b] sm:$0xff]  ;;  %v6416_v33 = vld [vmem:[#allocation3 + $0x10b] sm:$0xff]  ;;  %v3942_v44 = vld [vmem:[#allocation2 + $0x113] sm:$0xff]  ;;  %v6628_v47 = vmax.f32 %v6556_v6, %v6592_v26  ;;  %v6558_v37 = vmax.f32 %v6520_v48, %v6486_v2  ;;  %v6523_v24 = vmax.f32 %v6451_v4, %v6487_v30  ;;  %9288 = vmatmul.mubr.msk.f32.gmra.mrb[180].mxu0 %vm555_vm6, %v6698_v28 }
 0x216   : > { %v6310_v21 = vld [vmem:[#allocation3 + $0x11a] sm:$0xff]  ;;  %v6347_v11 = vld [vmem:[#allocation3 + $0x122] sm:$0xff]  ;;  %v6664_v10 = vld [vmem:[#allocation3 + $0xee] sm:$0xff]  ;;  %v6452_v55 = vmax.f32 %v6380_v34, %v6416_v33  ;;  %v6629_v25 = vmax.f32 %v6557_v27, %v6593_v35  ;;  %v6559_v52 = vmax.f32 %v6521_v42, %v6487_v30  ;;  %9290 = vmatprep.mubr.msk.f32.mxu0 %vm555_vm6, %v6699_v39 }
 0x217   : > { %9020 = vmatmul.mubr.msk.f32.gmra.mrb[20].mxu1 %vm1370_vm13, %v3941_v63  ;;  %v6417_v38 = vld [vmem:[#allocation3 + $0x113] sm:$0xff]  ;;  %v6594_v36 = vld [vmem:[#allocation3 + $0xfd] sm:$0xff]  ;;  %v6382_v62 = vmax.f32 %v6344_v40, %v6310_v21  ;;  %v6346_v50 = vmax.f32 %v6274_v19, %v6310_v21  ;;  %v6383_v58 = vmax.f32 %v6345_v13, %v6347_v11  ;;  %v6348_v9 = vld [vmem:[#allocation3 + $0x12a] sm:$0xff]  ;;  %v6700_v26 = vmax.f32 %v6628_v47, %v6664_v10 }
 0x218   : > { %9022 = vmatprep.mubr.msk.f32.mxu1 %vm1370_vm13, %v3942_v44  ;;  %v6665_v23 = vld [vmem:[#allocation3 + $0xf6] sm:$0xff]  ;;  %v6488_v1 = vld [vmem:[#allocation3 + $0x10c] sm:$0xff]  ;;  %v3943_v16 = vld [vmem:[#allocation2 + $0x11b] sm:$0xff]  ;;  %v6453_v5 = vmax.f32 %v6381_v61, %v6417_v38  ;;  %v6630_v35 = vmax.f32 %v6558_v37, %v6594_v36 }
 0x219   : > { %v6418_v53 = vld [vmem:[#allocation3 + $0x11b] sm:$0xff]  ;;  %v3944_v43 = vld [vmem:[#allocation2 + $0x123] sm:$0xff]  ;;  %v6419_v6 = vld [vmem:[#allocation3 + $0x123] sm:$0xff]  ;;  %v6560_v32 = vmax.f32 %v6522_v54, %v6488_v1  ;;  %v6524_v34 = vmax.f32 %v6452_v55, %v6488_v1  ;;  %v6384_v19 = vmax.f32 %v6346_v50, %v6348_v9  ;;  %v6701_v27 = vmax.f32 %v6629_v25, %v6665_v23  ;;  %9291 = vmatmul.mubr.msk.f32.gmra.mrb[182].mxu0 %vm555_vm6, %v6700_v26 }
 0x21a   : > { %v6489_v31 = vld [vmem:[#allocation3 + $0x114] sm:$0xff]  ;;  %v6595_v29 = vld [vmem:[#allocation3 + $0x105] sm:$0xff]  ;;  %v6454_v40 = vmax.f32 %v6382_v62, %v6418_v53  ;;  %v6490_v33 = vld [vmem:[#allocation3 + $0x11c] sm:$0xff]  ;;  %v6455_v61 = vmax.f32 %v6383_v58, %v6419_v6 }
 0x21b   : > { %9023 = vmatmul.mubr.msk.f32.gmra.mrb[22].mxu1 %vm1370_vm13, %v3943_v16  ;;  %v6666_v2 = vld [vmem:[#allocation3 + $0xfe] sm:$0xff]  ;;  %v6596_v48 = vld [vmem:[#allocation3 + $0x10d] sm:$0xff]  ;;  %v6561_v4 = vmax.f32 %v6523_v24, %v6489_v31  ;;  %v6525_v30 = vmax.f32 %v6453_v5, %v6489_v31  ;;  %v6631_v44 = vmax.f32 %v6559_v52, %v6595_v29  ;;  %v6597_v28 = vld [vmem:[#allocation3 + $0x115] sm:$0xff]  ;;  %9293 = vmatprep.mubr.msk.f32.mxu0 %vm555_vm6, %v6701_v27 }
 0x21c   : > { %9025 = vmatprep.mubr.msk.f32.mxu1 %vm1370_vm13, %v3944_v43  ;;  %v3945_v63 = vld [vmem:[#allocation2 + $0x12b] sm:$0xff]  ;;  %v6420_v21 = vld [vmem:[#allocation3 + $0x12b] sm:$0xff]  ;;  %v4337_v13 = vld [vmem:[#allocation2 + $0x14] sm:$0xff]  ;;  %v6632_v11 = vmax.f32 %v6560_v32, %v6596_v48  ;;  %v6702_v47 = vmax.f32 %v6630_v35, %v6666_v2  ;;  %v6562_v23 = vmax.f32 %v6524_v34, %v6490_v33  ;;  %v6526_v37 = vmax.f32 %v6454_v40, %v6490_v33 }
 0x21d   : > { %v6491_v42 = vld [vmem:[#allocation3 + $0x124] sm:$0xff]  ;;  %v11673_v10 = vld [vmem:[#allocation2 + $0x24] sm:$0xff]  ;;  %v6456_v36 = vmax.f32 %v6384_v19, %v6420_v21  ;;  %v6633_v1 = vmax.f32 %v6561_v4, %v6597_v28  ;;  %v6669_v5 = vld [vmem:[#allocation3 + $0x116] sm:$0xff] }
 0x21e   : > { %v6667_v38 = vld [vmem:[#allocation3 + $0x106] sm:$0xff]  ;;  %v6668_v54 = vld [vmem:[#allocation3 + $0x10e] sm:$0xff]  ;;  %v6598_v55 = vld [vmem:[#allocation3 + $0x11d] sm:$0xff]  ;;  %v6563_v62 = vmax.f32 %v6525_v30, %v6491_v42  ;;  %v6527_v16 = vmax.f32 %v6455_v61, %v6491_v42  ;;  %9294 = vmatmul.mubr.msk.f32.gmra.mrb[184].mxu0 %vm555_vm6, %v6702_v47 }
 0x21f   : > { %9026 = vmatmul.mubr.msk.f32.gmra.mrb[24].mxu1 %vm1370_vm13, %v3945_v63  ;;  %v4338_v39 = vld [vmem:[#allocation2 + $0x1c] sm:$0xff]  ;;  %v6492_v50 = vld [vmem:[#allocation3 + $0x12c] sm:$0xff]  ;;  %v6703_v24 = vmax.f32 %v6631_v44, %v6667_v38  ;;  %v6529_v58 = vld [vmem:[#allocation3 + $0x134] sm:$0xff]  ;;  %v6704_v43 = vmax.f32 %v6632_v11, %v6668_v54  ;;  %v6634_v31 = vmax.f32 %v6562_v23, %v6598_v55  ;;  %v6705_v29 = vmax.f32 %v6633_v1, %v6669_v5 }
 0x220   : > { %9030 = vmatprep.mubr.msk.f32.mxu1 %vm1370_vm13, %v4337_v13  ;;  %v11678_v25 = vld [vmem:[%s12703_s8 + $0x38] sm:$0xff]  ;;  %v9618_v9 = vld [vmem:[%s12703_s8 + $0x30] sm:$0xff]  ;;  %v6564_v6 = vmax.f32 %v6526_v37, %v6492_v50  ;;  %v6528_v26 = vmax.f32 %v6456_v36, %v6492_v50  ;;  %v6600_v2 = vld [vmem:[#allocation3 + $0x12d] sm:$0xff]  ;;  %v6565_v48 = vmax.f32 %v6527_v16, %v6529_v58 }
 0x221   : > { %v6599_v53 = vld [vmem:[#allocation3 + $0x125] sm:$0xff]  ;;  %9296 = vmatprep.mubr.msk.f32.mxu0 %vm555_vm6, %v6703_v24  ;;  %v11688_v52 = vld [vmem:[#allocation2 + $0x2c] sm:$0xff]  ;;  %v6530_v34 = vld [vmem:[#allocation3 + $0x13c] sm:$0xff] }
 0x222   : > { %v6670_v32 = vld [vmem:[#allocation3 + $0x11e] sm:$0xff]  ;;  %v6635_v35 = vmax.f32 %v6563_v62, %v6599_v53  ;;  %9297 = vmatmul.mubr.msk.f32.gmra.mrb[186].mxu0 %vm555_vm6, %v6704_v43  ;;  %v6671_v19 = vld [vmem:[#allocation3 + $0x126] sm:$0xff]  ;;  %v6601_v63 = vld [vmem:[#allocation3 + $0x135] sm:$0xff]  ;;  %v6636_v4 = vmax.f32 %v6564_v6, %v6600_v2  ;;  %v6566_v33 = vmax.f32 %v6528_v26, %v6530_v34 }
 0x223   : > { %9031 = vmatmul.mubr.msk.f32.vlgmr.msra.gmra.mrb[26].mxu1 %vm1370_vm13, %v4338_v39  ;;  %v11694_v40 = vld [vmem:[#allocation2 + $0x34] sm:$0xff]  ;;  %9299 = vmatprep.mubr.msk.f32.mxu0 %vm555_vm6, %v6705_v29  ;;  %v6706_v27 = vmax.f32 %v6634_v31, %v6670_v32  ;;  %v11699_v30 = vld [vmem:[#allocation2 + $0x3c] sm:$0xff]  ;;  %v6672_v21 = vld [vmem:[#allocation3 + $0x12e] sm:$0xff]  ;;  %v6637_v13 = vmax.f32 %v6565_v48, %v6601_v63 }
 0x224   : > { %9085 = vmatpush3.msra.mxu1 %v9618_v9  ;;  %9033 = vmatprep.mubr.msk.f32.mxu1 %vm1370_vm13, %v11673_v10  ;;  %v6707_v61 = vmax.f32 %v6635_v35, %v6671_v19  ;;  %v6602_v44 = vld [vmem:[#allocation3 + $0x13d] sm:$0xff]  ;;  %v11704_v28 = vld [vmem:[#allocation2 + $0x44] sm:$0xff]  ;;  %v6708_v38 = vmax.f32 %v6636_v4, %v6672_v21  ;;  %v11709_v39 = vld [vmem:[#allocation2 + $0x4c] sm:$0xff] }
 0x225   : > { %9140 = vmatprep.subr.mxu1 %v11678_v25  ;;  %v6673_v42 = vld [vmem:[#allocation3 + $0x136] sm:$0xff]  ;;  %v6638_v11 = vmax.f32 %v6566_v33, %v6602_v44  ;;  %v6674_v54 = vld [vmem:[#allocation3 + $0x13e] sm:$0xff]  ;;  %v11724_v1 = vld [vmem:[#allocation2 + $0x64] sm:$0xff] }
 0x226   : > { %9300 = vmatmul.mubr.msk.f32.gmra.mrb[188].mxu0 %vm555_vm6, %v6706_v27  ;;  %v6709_v47 = vmax.f32 %v6637_v13, %v6673_v42  ;;  %v11714_v23 = vld [vmem:[#allocation2 + $0x54] sm:$0xff]  ;;  %v11719_v36 = vld [vmem:[#allocation2 + $0x5c] sm:$0xff]  ;;  %v11728_v55 = vld [vmem:[#allocation2 + $0x6c] sm:$0xff] }
 0x227   : > { %9034 = vmatmul.mubr.msk.f32.gmra.mrb[28].mxu1 %vm1370_vm13, %v11688_v52  ;;  %9302 = vmatprep.mubr.msk.f32.mxu0 %vm555_vm6, %v6707_v61  ;;  %v6710_v37 = vmax.f32 %v6638_v11, %v6674_v54  ;;  %v11732_v62 = vld [vmem:[#allocation2 + $0x74] sm:$0xff]  ;;  %v11736_v50 = vld [vmem:[#allocation2 + $0x7c] sm:$0xff]  ;;  %v11740_v16 = vld [vmem:[#allocation2 + $0x84] sm:$0xff] }
 0x228   : > { %9036 = vmatprep.mubr.msk.f32.mxu1 %vm1370_vm13, %v11694_v40  ;;  %v11744_v24 = vld [vmem:[#allocation2 + $0x8c] sm:$0xff]  ;;  %v11748_v5 = vld [vmem:[#allocation2 + $0x94] sm:$0xff]  ;;  %v11752_v53 = vld [vmem:[#allocation2 + $0x9c] sm:$0xff] }
 0x229   : > { %v11756_v58 = vld [vmem:[#allocation2 + $0xa4] sm:$0xff]  ;;  %v11760_v9 = vld [vmem:[#allocation2 + $0xac] sm:$0xff]  ;;  %v11764_v43 = vld [vmem:[#allocation2 + $0xb4] sm:$0xff] }
 0x22a   : > { %9303 = vmatmul.mubr.msk.f32.gmra.mrb[190].mxu0 %vm555_vm6, %v6708_v38  ;;  %v11768_v31 = vld [vmem:[#allocation2 + $0xbc] sm:$0xff]  ;;  %v11772_v6 = vld [vmem:[#allocation2 + $0xc4] sm:$0xff]  ;;  %v11776_v26 = vld [vmem:[#allocation2 + $0xcc] sm:$0xff] }
 0x22b   : > { %9037 = vmatmul.mubr.msk.f32.gmra.mrb[30].mxu1 %vm1370_vm13, %v11699_v30  ;;  %9305 = vmatprep.mubr.msk.f32.mxu0 %vm555_vm6, %v6709_v47  ;;  %v11780_v29 = vld [vmem:[#allocation2 + $0xd4] sm:$0xff]  ;;  %v11784_v32 = vld [vmem:[#allocation2 + $0xdc] sm:$0xff]  ;;  %v11788_v35 = vld [vmem:[#allocation2 + $0xe4] sm:$0xff] }
 0x22c   : > { %9039 = vmatprep.mubr.msk.f32.mxu1 %vm1370_vm13, %v11704_v28  ;;  %v11792_v2 = vld [vmem:[#allocation2 + $0xec] sm:$0xff]  ;;  %v11796_v48 = vld [vmem:[#allocation2 + $0xf4] sm:$0xff]  ;;  %v11800_v34 = vld [vmem:[#allocation2 + $0xfc] sm:$0xff] }
 0x22d   : > { %v11804_v19 = vld [vmem:[#allocation2 + $0x104] sm:$0xff]  ;;  %v11808_v63 = vld [vmem:[#allocation2 + $0x10c] sm:$0xff]  ;;  %v11812_v27 = vld [vmem:[#allocation2 + $0x114] sm:$0xff] }
 0x22e   : > { %9306 = vmatmul.mubr.msk.f32.gmra.mrb[192].mxu0 %vm555_vm6, %v6710_v37  ;;  %v11816_v4 = vld [vmem:[#allocation2 + $0x11c] sm:$0xff]  ;;  %v11820_v33 = vld [vmem:[#allocation2 + $0x124] sm:$0xff]  ;;  %v11824_v61 = vld [vmem:[#allocation2 + $0x12c] sm:$0xff]  ;;  %vm7551_vm6 = vcmask 261120  }
 0x22f   : > { %9040 = vmatmul.mubr.msk.f32.gmra.mrb[32].mxu1 %vm1370_vm13, %v11709_v39  ;;  %v11833_v21 = vld [vmem:[%s12703_s8 + $0x40] sm:$0xff] }
 0x230   : > { %9042 = vmatprep.mubr.msk.f32.mxu1 %vm1370_vm13, %v11714_v23 }
 0x233   : > { %9043 = vmatmul.mubr.msk.f32.gmra.mrb[34].mxu1 %vm1370_vm13, %v11719_v36 }
 0x234   : > { %9045 = vmatprep.mubr.msk.f32.mxu1 %vm1370_vm13, %v11724_v1 }
 0x237   : > { %9046 = vmatmul.mubr.msk.f32.gmra.mrb[0].mxu1 %vm1370_vm13, %v11728_v55 }
 0x238   : > { %9048 = vmatprep.mubr.msk.f32.mxu1 %vm1370_vm13, %v11732_v62 }
 0x23b   : > { %9049 = vmatmul.mubr.msk.f32.gmra.mrb[2].mxu1 %vm1370_vm13, %v11736_v50 }
 0x23c   : > { %9051 = vmatprep.mubr.msk.f32.mxu1 %vm1370_vm13, %v11740_v16 }
 0x23f   : > { %9052 = vmatmul.mubr.msk.f32.gmra.mrb[4].mxu1 %vm1370_vm13, %v11744_v24 }
 0x240   : > { %9054 = vmatprep.mubr.msk.f32.mxu1 %vm1370_vm13, %v11748_v5 }
 0x243   : > { %9055 = vmatmul.mubr.msk.f32.gmra.mrb[6].mxu1 %vm1370_vm13, %v11752_v53 }
 0x244   : > { %9057 = vmatprep.mubr.msk.f32.mxu1 %vm1370_vm13, %v11756_v58 }
 0x247   : > { %9058 = vmatmul.mubr.msk.f32.gmra.mrb[8].mxu1 %vm1370_vm13, %v11760_v9 }
 0x248   : > { %9060 = vmatprep.mubr.msk.f32.mxu1 %vm1370_vm13, %v11764_v43 }
 0x24b   : > { %9061 = vmatmul.mubr.msk.f32.gmra.mrb[10].mxu1 %vm1370_vm13, %v11768_v31 }
 0x24c   : > { %9063 = vmatprep.mubr.msk.f32.mxu1 %vm1370_vm13, %v11772_v6 }
 0x24f   : > { %9064 = vmatmul.mubr.msk.f32.gmra.mrb[12].mxu1 %vm1370_vm13, %v11776_v26 }
 0x250   : > { %9066 = vmatprep.mubr.msk.f32.mxu1 %vm1370_vm13, %v11780_v29 }
 0x253   : > { %9067 = vmatmul.mubr.msk.f32.gmra.mrb[14].mxu1 %vm1370_vm13, %v11784_v32 }
 0x254   : > { %9069 = vmatprep.mubr.msk.f32.mxu1 %vm1370_vm13, %v11788_v35 }
 0x257   : > { %9070 = vmatmul.mubr.msk.f32.gmra.mrb[16].mxu1 %vm1370_vm13, %v11792_v2 }
 0x258   : > { %9072 = vmatprep.mubr.msk.f32.mxu1 %vm1370_vm13, %v11796_v48 }
 0x25b   : > { %9073 = vmatmul.mubr.msk.f32.gmra.mrb[18].mxu1 %vm1370_vm13, %v11800_v34 }
 0x25c   : > { %9075 = vmatprep.mubr.msk.f32.mxu1 %vm1370_vm13, %v11804_v19 }
 0x25f   : > { %9076 = vmatmul.mubr.msk.f32.gmra.mrb[20].mxu1 %vm1370_vm13, %v11808_v63 }
 0x260   : > { %9078 = vmatprep.mubr.msk.f32.mxu1 %vm1370_vm13, %v11812_v27 }
 0x263   : > { %9079 = vmatmul.mubr.msk.f32.gmra.mrb[22].mxu1 %vm1370_vm13, %v11816_v4 }
 0x264   : > { %9081 = vmatprep.mubr.msk.f32.mxu1 %vm1370_vm13, %v11820_v33 }
 0x267   : > { %9082 = vmatmul.mubr.msk.f32.gmra.mrb[24].mxu1 %vm1370_vm13, %v11824_v61 }
 0x268   : > { %9086 = vmatprep.mubr.msk.f32.mxu1 %vm1370_vm13, %v11673_v10 }
 0x26b   : > { %9087 = vmatmul.mubr.msk.f32.vlgmr.msra.gmra.mrb[26].mxu1 %vm1370_vm13, %v11688_v52 }
 0x26c   : > { %9141 = vmatpush3.msra.mxu1 %v11678_v25  ;;  %9089 = vmatprep.mubr.msk.f32.mxu1 %vm1370_vm13, %v11694_v40 }
 0x26d   : > { %9196 = vmatprep.subr.mxu1 %v11833_v21 }
 0x26f   : > { %9090 = vmatmul.mubr.msk.f32.gmra.mrb[28].mxu1 %vm1370_vm13, %v11699_v30 }
 0x270   : > { %9092 = vmatprep.mubr.msk.f32.mxu1 %vm1370_vm13, %v11704_v28 }
 0x273   : > { %9093 = vmatmul.mubr.msk.f32.gmra.mrb[30].mxu1 %vm1370_vm13, %v11709_v39  ;;  %v11853_v10 = vpop.f32.mrb[132].mxu0 }
 0x274   : > { %9095 = vmatprep.mubr.msk.f32.mxu1 %vm1370_vm13, %v11714_v23  ;;  %v11855_v25 = vpop.f32.mrb[133].mxu0 }
 0x277   : > { %9096 = vmatmul.mubr.msk.f32.gmra.mrb[32].mxu1 %vm1370_vm13, %v11719_v36  ;;  %v11861_v52 = vpop.f32.mrb[134].mxu0 }
 0x278   : > { %9098 = vmatprep.mubr.msk.f32.mxu1 %vm1370_vm13, %v11724_v1  ;;  %v11863_v40 = vpop.f32.mrb[135].mxu0 }
 0x27b   : > { %9099 = vmatmul.mubr.msk.f32.gmra.mrb[34].mxu1 %vm1370_vm13, %v11728_v55  ;;  %v11869_v30 = vpop.f32.mrb[136].mxu0 }
 0x27c   : > { %9101 = vmatprep.mubr.msk.f32.mxu1 %vm1370_vm13, %v11732_v62  ;;  %v11871_v13 = vpop.f32.mrb[137].mxu0 }
 0x27f   : > { %9102 = vmatmul.mubr.msk.f32.gmra.mrb[0].mxu1 %vm1370_vm13, %v11736_v50  ;;  %v11877_v44 = vpop.f32.mrb[138].mxu0 }
 0x280   : > { %9104 = vmatprep.mubr.msk.f32.mxu1 %vm1370_vm13, %v11740_v16  ;;  %v11879_v28 = vpop.f32.mrb[139].mxu0 }
 0x283   : > { %9105 = vmatmul.mubr.msk.f32.gmra.mrb[2].mxu1 %vm1370_vm13, %v11744_v24  ;;  %v11885_v42 = vpop.f32.mrb[140].mxu0 }
 0x284   : > { %9107 = vmatprep.mubr.msk.f32.mxu1 %vm1370_vm13, %v11748_v5  ;;  %v11887_v38 = vpop.f32.mrb[141].mxu0 }
 0x287   : > { %9108 = vmatmul.mubr.msk.f32.gmra.mrb[4].mxu1 %vm1370_vm13, %v11752_v53  ;;  %v11893_v11 = vpop.f32.mrb[142].mxu0 }
 0x288   : > { %9110 = vmatprep.mubr.msk.f32.mxu1 %vm1370_vm13, %v11756_v58  ;;  %v11895_v39 = vpop.f32.mrb[143].mxu0 }
 0x28b   : > { %9111 = vmatmul.mubr.msk.f32.gmra.mrb[6].mxu1 %vm1370_vm13, %v11760_v9  ;;  %v11901_v47 = vpop.f32.mrb[144].mxu0  ;;  %v4798_v9 = vld [vmem:[#allocation2 + $0x134] sm:$0xff] }
 0x28c   : > { %9113 = vmatprep.mubr.msk.f32.mxu1 %vm1370_vm13, %v11764_v43  ;;  %v11903_v54 = vpop.f32.mrb[145].mxu0 }
 0x28f   : > { %9114 = vmatmul.mubr.msk.f32.gmra.mrb[8].mxu1 %vm1370_vm13, %v11768_v31  ;;  %v11909_v23 = vpop.f32.mrb[146].mxu0  ;;  %v4799_v31 = vld [vmem:[#allocation2 + $0x13c] sm:$0xff] }
 0x290   : > { %9116 = vmatprep.mubr.msk.f32.mxu1 %vm1370_vm13, %v11772_v6  ;;  %v11911_v37 = vpop.f32.mrb[147].mxu0 }
 0x293   : > { %9117 = vmatmul.mubr.msk.f32.gmra.mrb[10].mxu1 %vm1370_vm13, %v11776_v26  ;;  %v11917_v36 = vpop.f32.mrb[148].mxu0  ;;  %v5191_v26 = vld [vmem:[#allocation2 + $0x25] sm:$0xff] }
 0x294   : > { %9119 = vmatprep.mubr.msk.f32.mxu1 %vm1370_vm13, %v11780_v29  ;;  %v11919_v1 = vpop.f32.mrb[149].mxu0 }
 0x297   : > { %9120 = vmatmul.mubr.msk.f32.gmra.mrb[12].mxu1 %vm1370_vm13, %v11784_v32  ;;  %v11925_v55 = vpop.f32.mrb[150].mxu0  ;;  %v5192_v32 = vld [vmem:[#allocation2 + $0x2d] sm:$0xff] }
 0x298   : > { %9122 = vmatprep.mubr.msk.f32.mxu1 %vm1370_vm13, %v11788_v35  ;;  %v11927_v62 = vpop.f32.mrb[151].mxu0 }
 0x29b   : > { %9123 = vmatmul.mubr.msk.f32.gmra.mrb[14].mxu1 %vm1370_vm13, %v11792_v2  ;;  %v11933_v50 = vpop.f32.mrb[152].mxu0  ;;  %v5193_v2 = vld [vmem:[#allocation2 + $0x35] sm:$0xff] }
 0x29c   : > { %9125 = vmatprep.mubr.msk.f32.mxu1 %vm1370_vm13, %v11796_v48  ;;  %v11935_v16 = vpop.f32.mrb[153].mxu0 }
 0x29f   : > { %9126 = vmatmul.mubr.msk.f32.gmra.mrb[16].mxu1 %vm1370_vm13, %v11800_v34  ;;  %v11941_v24 = vpop.f32.mrb[154].mxu0  ;;  %v5194_v34 = vld [vmem:[#allocation2 + $0x3d] sm:$0xff] }
 0x2a0   : > { %9128 = vmatprep.mubr.msk.f32.mxu1 %vm1370_vm13, %v11804_v19  ;;  %v11943_v5 = vpop.f32.mrb[155].mxu0 }
 0x2a3   : > { %9129 = vmatmul.mubr.msk.f32.gmra.mrb[18].mxu1 %vm1370_vm13, %v11808_v63  ;;  %v11949_v53 = vpop.f32.mrb[156].mxu0  ;;  %v5195_v63 = vld [vmem:[#allocation2 + $0x45] sm:$0xff] }
 0x2a4   : > { %9131 = vmatprep.mubr.msk.f32.mxu1 %vm1370_vm13, %v11812_v27  ;;  %v11951_v58 = vpop.f32.mrb[157].mxu0 }
 0x2a7   : > { %9132 = vmatmul.mubr.msk.f32.gmra.mrb[20].mxu1 %vm1370_vm13, %v11816_v4  ;;  %v11956_v43 = vpop.f32.mrb[122].mxu0  ;;  %v5196_v4 = vld [vmem:[#allocation2 + $0x4d] sm:$0xff] }
 0x2a8   : > { %9134 = vmatprep.mubr.msk.f32.mxu1 %vm1370_vm13, %v11820_v33  ;;  %v11958_v6 = vpop.f32.mrb[123].mxu0 }
 0x2ab   : > { %9135 = vmatmul.mubr.msk.f32.gmra.mrb[22].mxu1 %vm1370_vm13, %v11824_v61  ;;  %v11962_v29 = vpop.f32.mrb[124].mxu0  ;;  %v5197_v61 = vld [vmem:[#allocation2 + $0x55] sm:$0xff] }
 0x2ac   : > { %9137 = vmatprep.mubr.msk.f32.mxu1 %vm1370_vm13, %v4798_v9  ;;  %v11964_v35 = vpop.f32.mrb[125].mxu0  ;;  %v5198_v9 = vld [vmem:[#allocation2 + $0x5d] sm:$0xff] }
 0x2af   : > { %9138 = vmatmul.mubr.msk.f32.gmra.mrb[24].mxu1 %vm1370_vm13, %v4799_v31  ;;  %v11969_v48 = vpop.f32.mrb[126].mxu0 }
 0x2b0   : > { %9142 = vmatprep.mubr.msk.f32.mxu1 %vm1370_vm13, %v5191_v26  ;;  %v11971_v19 = vpop.f32.mrb[127].mxu0  ;;  %v5199_v26 = vld [vmem:[#allocation2 + $0x65] sm:$0xff] }
 0x2b3   : > { %9143 = vmatmul.mubr.msk.f32.vlgmr.msra.gmra.mrb[26].mxu1 %vm1370_vm13, %v5192_v32  ;;  %v11975_v27 = vpop.f32.mrb[128].mxu0  ;;  %v11990_v32 = vld [vmem:[%s12707_s12] ss:$0 sm:$0xff] }
 0x2b4   : > { %9197 = vmatpush3.msra.mxu1 %v11833_v21  ;;  %9145 = vmatprep.mubr.msk.f32.mxu1 %vm1370_vm13, %v5193_v2  ;;  %v11977_v33 = vpop.f32.mrb[129].mxu0 }
 0x2b7   : > { %9146 = vmatmul.mubr.msk.f32.gmra.mrb[28].mxu1 %vm1370_vm13, %v5194_v34  ;;  %v11981_v21 = vpop.f32.mrb[130].mxu0  ;;  %v11995_v34 = vld [vmem:[%s12708_s13] ss:$0 sm:$0xff] }
 0x2b8   : > { %9148 = vmatprep.mubr.msk.f32.mxu1 %vm1370_vm13, %v5195_v63  ;;  %v11983_v31 = vpop.f32.mrb[131].mxu0  ;;  %v5200_v63 = vld [vmem:[#allocation2 + $0x6d] sm:$0xff] }
 0x2bb   : > { %9149 = vmatmul.mubr.msk.f32.gmra.mrb[30].mxu1 %vm1370_vm13, %v5196_v4  ;;  %v9256_v2 = vpop.f32.mrb[158].mxu0 }
 0x2bc   : > { %9151 = vmatprep.mubr.msk.f32.mxu1 %vm1370_vm13, %v5197_v61  ;;  %v7076_v4 = vmul.f32 %v9256_v2, %v11990_v32  ;;  %v6889_v61 = vpop.f32.mrb[159].mxu0 }
 0x2be   : > { %v7119_v56 = vadd.f32 %v11995_v34, %v7076_v4 }
 0x2bf   : > { %9152 = vmatmul.mubr.msk.f32.gmra.mrb[32].mxu1 %vm1370_vm13, %v5198_v9  ;;  %v5201_v9 = vld [vmem:[#allocation2 + $0x75] sm:$0xff]  ;;  %v9259_v8 = vpop.f32.mrb[160].mxu0 }
 0x2c0   : > { %9154 = vmatprep.mubr.msk.f32.mxu1 %vm1370_vm13, %v5199_v26  ;;  %v7075_v26 = vmul.f32 %v11990_v32, %v6889_v61  ;;  %v7155_v12 = vmax.f32 %v7119_v56, 0.0  ;;  %v7078_v17 = vmul.f32 %v9259_v8, %v11990_v32  ;;  %v6899_v2 = vpop.f32.mrb[161].mxu0  ;;  %v5204_v8 = vld [vmem:[#allocation2 + $0x8d] sm:$0xff] }
 0x2c1   : > { %v7077_v15 = vmul.f32 %v11990_v32, %v6899_v2 }
 0x2c2   : > { %v7118_v45 = vadd.f32 %v11995_v34, %v7075_v26  ;;  %v7121_v61 = vadd.f32 %v11995_v34, %v7078_v17  ;;  %7372 = vrot.lane.b32.xlu1 %v7155_v12, %s9634_s28  ;;  %v5205_v26 = vld [vmem:[#allocation2 + $0x95] sm:$0xff] }
 0x2c3   : > { %9155 = vmatmul.mubr.msk.f32.gmra.mrb[34].mxu1 %vm1370_vm13, %v5200_v63  ;;  %v7120_v4 = vadd.f32 %v11995_v34, %v7077_v15  ;;  %v9262_v56 = vpop.f32.mrb[162].mxu0 }
 0x2c4   : > { %9157 = vmatprep.mubr.msk.f32.mxu1 %vm1370_vm13, %v5201_v9  ;;  %v7154_v63 = vmax.f32 %v7118_v45, 0.0  ;;  %v7157_v9 = vmax.f32 %v7121_v61, 0.0  ;;  %v6909_v45 = vpop.f32.mrb[163].mxu0 }
 0x2c5   : > { %v7156_v2 = vmax.f32 %v7120_v4, 0.0 }
 0x2c6   : > { %7370 = vrot.lane.b32.xlu0 %v7154_v63, %s9634_s28  ;;  %7376 = vrot.lane.b32.xlu1 %v7157_v9, %s9634_s28  ;;  %v5206_v63 = vld [vmem:[#allocation2 + $0x9d] sm:$0xff] }
 0x2c7   : > { %9158 = vmatmul.mubr.msk.f32.gmra.mrb[0].mxu1 %vm1370_vm13, %v5202_v14  ;;  %v7080_v14 = vmul.f32 %v9262_v56, %v11990_v32  ;;  %v9265_v12 = vpop.f32.mrb[164].mxu0 }
 0x2c8   : > { %9160 = vmatprep.mubr.msk.f32.mxu1 %vm1370_vm13, %v5203_v22  ;;  %v7079_v22 = vmul.f32 %v11990_v32, %v6909_v45  ;;  %v7082_v56 = vmul.f32 %v9265_v12, %v11990_v32  ;;  %v6919_v4 = vpop.f32.mrb[165].mxu0 }
 0x2c9   : > { %v7123_v17 = vadd.f32 %v11995_v34, %v7080_v14 }
 0x2ca   : > { %v7122_v15 = vadd.f32 %v11995_v34, %v7079_v22  ;;  %7374 = vrot.lane.b32.xlu0 %v7156_v2, %s9634_s28  ;;  %v7125_v9 = vadd.f32 %v11995_v34, %v7082_v56  ;;  %v5208_v22 = vld [vmem:[#allocation2 + $0xad] sm:$0xff] }
 0x2cb   : > { %9161 = vmatmul.mubr.msk.f32.gmra.mrb[2].mxu1 %vm1370_vm13, %v5204_v8  ;;  %v7159_v61 = vmax.f32 %v7123_v17, 0.0  ;;  %v5207_v8 = vld [vmem:[#allocation2 + $0xa5] sm:$0xff]  ;;  %v9268_v2 = vpop.f32.mrb[166].mxu0 }
 0x2cc   : > { %9163 = vmatprep.mubr.msk.f32.mxu1 %vm1370_vm13, %v5205_v26  ;;  %v7158_v45 = vmax.f32 %v7122_v15, 0.0  ;;  %v7081_v26 = vmul.f32 %v11990_v32, %v6919_v4  ;;  %v7161_v17 = vmax.f32 %v7125_v9, 0.0  ;;  %v7084_v12 = vmul.f32 %v9268_v2, %v11990_v32  ;;  %v6929_v15 = vpop.f32.mrb[167].mxu0 }
 0x2cd   : > { %7380 = vrot.lane.b32.xlu1 %v7159_v61, %s9634_s28 }
 0x2ce   : > { %v7124_v14 = vadd.f32 %v11995_v34, %v7081_v26  ;;  %7378 = vrot.lane.b32.xlu0 %v7158_v45, %s9634_s28  ;;  %v7127_v61 = vadd.f32 %v11995_v34, %v7084_v12  ;;  %v5210_v26 = vld [vmem:[#allocation2 + $0xbd] sm:$0xff] }
 0x2cf   : > { %9164 = vmatmul.mubr.msk.f32.gmra.mrb[4].mxu1 %vm1370_vm13, %v5206_v63  ;;  %v5209_v63 = vld [vmem:[#allocation2 + $0xb5] sm:$0xff]  ;;  %v9271_v45 = vpop.f32.mrb[168].mxu0 }
 0x2d0   : > { %9166 = vmatprep.mubr.msk.f32.mxu1 %vm1370_vm13, %v5207_v8  ;;  %v7160_v4 = vmax.f32 %v7124_v14, 0.0  ;;  %v7083_v8 = vmul.f32 %v11990_v32, %v6929_v15  ;;  %v7163_v9 = vmax.f32 %v7127_v61, 0.0  ;;  %v7086_v2 = vmul.f32 %v9271_v45, %v11990_v32  ;;  %v6939_v14 = vpop.f32.mrb[169].mxu0 }
 0x2d1   : > { %7384 = vrot.lane.b32.xlu1 %v7161_v17, %s9634_s28 }
 0x2d2   : > { %v7126_v56 = vadd.f32 %v11995_v34, %v7083_v8  ;;  %7382 = vrot.lane.b32.xlu0 %v7160_v4, %s9634_s28  ;;  %v7129_v17 = vadd.f32 %v11995_v34, %v7086_v2  ;;  %v5212_v8 = vld [vmem:[#allocation2 + $0xcd] sm:$0xff] }
 0x2d3   : > { %9167 = vmatmul.mubr.msk.f32.gmra.mrb[6].mxu1 %vm1370_vm13, %v5208_v22  ;;  %v5211_v22 = vld [vmem:[#allocation2 + $0xc5] sm:$0xff]  ;;  %v9274_v4 = vpop.f32.mrb[170].mxu0 }
 0x2d4   : > { %9169 = vmatprep.mubr.msk.f32.mxu1 %vm1370_vm13, %v5209_v63  ;;  %v7162_v15 = vmax.f32 %v7126_v56, 0.0  ;;  %v7085_v63 = vmul.f32 %v11990_v32, %v6939_v14  ;;  %v7165_v61 = vmax.f32 %v7129_v17, 0.0  ;;  %v7088_v45 = vmul.f32 %v9274_v4, %v11990_v32  ;;  %v6949_v56 = vpop.f32.mrb[171].mxu0 }
 0x2d5   : > { %7388 = vrot.lane.b32.xlu1 %v7163_v9, %s9634_s28 }
 0x2d6   : > { %v7128_v12 = vadd.f32 %v11995_v34, %v7085_v63  ;;  %7386 = vrot.lane.b32.xlu0 %v7162_v15, %s9634_s28  ;;  %v7131_v9 = vadd.f32 %v11995_v34, %v7088_v45  ;;  %v5214_v63 = vld [vmem:[#allocation2 + $0xdd] sm:$0xff] }
 0x2d7   : > { %9170 = vmatmul.mubr.msk.f32.gmra.mrb[8].mxu1 %vm1370_vm13, %v5210_v26  ;;  %v5213_v26 = vld [vmem:[#allocation2 + $0xd5] sm:$0xff]  ;;  %v9277_v15 = vpop.f32.mrb[172].mxu0 }
 0x2d8   : > { %9172 = vmatprep.mubr.msk.f32.mxu1 %vm1370_vm13, %v5211_v22  ;;  %v7164_v14 = vmax.f32 %v7128_v12, 0.0  ;;  %v7087_v22 = vmul.f32 %v11990_v32, %v6949_v56  ;;  %v7167_v17 = vmax.f32 %v7131_v9, 0.0  ;;  %v7090_v4 = vmul.f32 %v9277_v15, %v11990_v32  ;;  %v6959_v12 = vpop.f32.mrb[173].mxu0 }
 0x2d9   : > { %7392 = vrot.lane.b32.xlu1 %v7165_v61, %s9634_s28 }
 0x2da   : > { %v7130_v2 = vadd.f32 %v11995_v34, %v7087_v22  ;;  %7390 = vrot.lane.b32.xlu0 %v7164_v14, %s9634_s28  ;;  %v7133_v61 = vadd.f32 %v11995_v34, %v7090_v4  ;;  %v5216_v22 = vld [vmem:[#allocation2 + $0xed] sm:$0xff] }
 0x2db   : > { %9173 = vmatmul.mubr.msk.f32.gmra.mrb[10].mxu1 %vm1370_vm13, %v5212_v8  ;;  %v5215_v8 = vld [vmem:[#allocation2 + $0xe5] sm:$0xff]  ;;  %v9280_v14 = vpop.f32.mrb[174].mxu0 }
 0x2dc   : > { %9175 = vmatprep.mubr.msk.f32.mxu1 %vm1370_vm13, %v5213_v26  ;;  %v7166_v56 = vmax.f32 %v7130_v2, 0.0  ;;  %v7089_v26 = vmul.f32 %v11990_v32, %v6959_v12  ;;  %v7169_v9 = vmax.f32 %v7133_v61, 0.0  ;;  %v7092_v15 = vmul.f32 %v9280_v14, %v11990_v32  ;;  %v6969_v2 = vpop.f32.mrb[175].mxu0 }
 0x2dd   : > { %7396 = vrot.lane.b32.xlu1 %v7167_v17, %s9634_s28 }
 0x2de   : > { %v7132_v45 = vadd.f32 %v11995_v34, %v7089_v26  ;;  %7394 = vrot.lane.b32.xlu0 %v7166_v56, %s9634_s28  ;;  %v7135_v17 = vadd.f32 %v11995_v34, %v7092_v15  ;;  %v5218_v26 = vld [vmem:[#allocation2 + $0xfd] sm:$0xff] }
 0x2df   : > { %9176 = vmatmul.mubr.msk.f32.gmra.mrb[12].mxu1 %vm1370_vm13, %v5214_v63  ;;  %v5217_v63 = vld [vmem:[#allocation2 + $0xf5] sm:$0xff] }
 0x2e0   : > { %9178 = vmatprep.mubr.msk.f32.mxu1 %vm1370_vm13, %v5215_v8  ;;  %v7168_v12 = vmax.f32 %v7132_v45, 0.0  ;;  %v7091_v8 = vmul.f32 %v11990_v32, %v6969_v2  ;;  %v9283_v56 = vpop.f32.mrb[176].mxu0  ;;  %v7171_v61 = vmax.f32 %v7135_v17, 0.0 }
 0x2e1   : > { %7400 = vrot.lane.b32.xlu1 %v7169_v9, %s9634_s28  ;;  %v7094_v14 = vmul.f32 %v9283_v56, %v11990_v32  ;;  %v6979_v45 = vpop.f32.mrb[177].mxu0 }
 0x2e2   : > { %v7134_v4 = vadd.f32 %v11995_v34, %v7091_v8  ;;  %7398 = vrot.lane.b32.xlu0 %v7168_v12, %s9634_s28  ;;  %v5220_v8 = vld [vmem:[#allocation2 + $0x10d] sm:$0xff] }
 0x2e3   : > { %9179 = vmatmul.mubr.msk.f32.gmra.mrb[14].mxu1 %vm1370_vm13, %v5216_v22  ;;  %v5219_v22 = vld [vmem:[#allocation2 + $0x105] sm:$0xff]  ;;  %v7137_v9 = vadd.f32 %v11995_v34, %v7094_v14 }
 0x2e4   : > { %9181 = vmatprep.mubr.msk.f32.mxu1 %vm1370_vm13, %v5217_v63  ;;  %v7170_v2 = vmax.f32 %v7134_v4, 0.0  ;;  %v7093_v63 = vmul.f32 %v11990_v32, %v6979_v45  ;;  %v9286_v12 = vpop.f32.mrb[178].mxu0 }
 0x2e5   : > { %7404 = vrot.lane.b32.xlu1 %v7171_v61, %s9634_s28  ;;  %v7173_v17 = vmax.f32 %v7137_v9, 0.0  ;;  %v7096_v56 = vmul.f32 %v9286_v12, %v11990_v32  ;;  %v6989_v4 = vpop.f32.mrb[179].mxu0 }
 0x2e6   : > { %v7136_v15 = vadd.f32 %v11995_v34, %v7093_v63  ;;  %7402 = vrot.lane.b32.xlu0 %v7170_v2, %s9634_s28  ;;  %v5222_v63 = vld [vmem:[#allocation2 + $0x11d] sm:$0xff] }
 0x2e7   : > { %9182 = vmatmul.mubr.msk.f32.gmra.mrb[16].mxu1 %vm1370_vm13, %v5218_v26  ;;  %v5221_v26 = vld [vmem:[#allocation2 + $0x115] sm:$0xff]  ;;  %v7139_v61 = vadd.f32 %v11995_v34, %v7096_v56 }
 0x2e8   : > { %9184 = vmatprep.mubr.msk.f32.mxu1 %vm1370_vm13, %v5219_v22  ;;  %v7172_v45 = vmax.f32 %v7136_v15, 0.0  ;;  %v7095_v22 = vmul.f32 %v11990_v32, %v6989_v4  ;;  %v9289_v2 = vpop.f32.mrb[180].mxu0 }
 0x2e9   : > { %7408 = vrot.lane.b32.xlu1 %v7173_v17, %s9634_s28  ;;  %v7175_v9 = vmax.f32 %v7139_v61, 0.0  ;;  %v7098_v12 = vmul.f32 %v9289_v2, %v11990_v32  ;;  %v6999_v15 = vpop.f32.mrb[181].mxu0 }
 0x2ea   : > { %v7138_v14 = vadd.f32 %v11995_v34, %v7095_v22  ;;  %7406 = vrot.lane.b32.xlu0 %v7172_v45, %s9634_s28  ;;  %v5224_v22 = vld [vmem:[#allocation2 + $0x12d] sm:$0xff] }
 0x2eb   : > { %9185 = vmatmul.mubr.msk.f32.gmra.mrb[18].mxu1 %vm1370_vm13, %v5220_v8  ;;  %v5223_v8 = vld [vmem:[#allocation2 + $0x125] sm:$0xff]  ;;  %v7141_v17 = vadd.f32 %v11995_v34, %v7098_v12 }
 0x2ec   : > { %9187 = vmatprep.mubr.msk.f32.mxu1 %vm1370_vm13, %v5221_v26  ;;  %v7174_v4 = vmax.f32 %v7138_v14, 0.0  ;;  %v7097_v26 = vmul.f32 %v11990_v32, %v6999_v15  ;;  %v9292_v45 = vpop.f32.mrb[182].mxu0 }
 0x2ed   : > { %7412 = vrot.lane.b32.xlu1 %v7175_v9, %s9634_s28  ;;  %v7177_v61 = vmax.f32 %v7141_v17, 0.0  ;;  %v7100_v2 = vmul.f32 %v9292_v45, %v11990_v32  ;;  %v7009_v14 = vpop.f32.mrb[183].mxu0 }
 0x2ee   : > { %v7140_v56 = vadd.f32 %v11995_v34, %v7097_v26  ;;  %7410 = vrot.lane.b32.xlu0 %v7174_v4, %s9634_s28  ;;  %v5226_v26 = vld [vmem:[#allocation2 + $0x13d] sm:$0xff] }
 0x2ef   : > { %9188 = vmatmul.mubr.msk.f32.gmra.mrb[20].mxu1 %vm1370_vm13, %v5222_v63  ;;  %v5225_v63 = vld [vmem:[#allocation2 + $0x135] sm:$0xff]  ;;  %v7143_v9 = vadd.f32 %v11995_v34, %v7100_v2 }
 0x2f0   : > { %9190 = vmatprep.mubr.msk.f32.mxu1 %vm1370_vm13, %v5223_v8  ;;  %v7176_v15 = vmax.f32 %v7140_v56, 0.0  ;;  %v7099_v8 = vmul.f32 %v11990_v32, %v7009_v14 }
 0x2f1   : > { %7416 = vrot.lane.b32.xlu1 %v7177_v61, %s9634_s28  ;;  %v9295_v4 = vpop.f32.mrb[184].mxu0  ;;  %v7179_v17 = vmax.f32 %v7143_v9, 0.0 }
 0x2f2   : > { %v7142_v12 = vadd.f32 %v11995_v34, %v7099_v8  ;;  %7414 = vrot.lane.b32.xlu0 %v7176_v15, %s9634_s28  ;;  %v7102_v45 = vmul.f32 %v9295_v4, %v11990_v32  ;;  %v7019_v56 = vpop.f32.mrb[185].mxu0  ;;  %v5619_v8 = vld [vmem:[#allocation2 + $0x2e] sm:$0xff] }
 0x2f3   : > { %9191 = vmatmul.mubr.msk.f32.gmra.mrb[22].mxu1 %vm1370_vm13, %v5224_v22  ;;  %v5618_v22 = vld [vmem:[#allocation2 + $0x26] sm:$0xff] }
 0x2f4   : > { %9193 = vmatprep.mubr.msk.f32.mxu1 %vm1370_vm13, %v5225_v63  ;;  %v7178_v14 = vmax.f32 %v7142_v12, 0.0  ;;  %v7101_v63 = vmul.f32 %v11990_v32, %v7019_v56  ;;  %v7145_v61 = vadd.f32 %v11995_v34, %v7102_v45 }
 0x2f5   : > { %7420 = vrot.lane.b32.xlu1 %v7179_v17, %s9634_s28  ;;  %v9298_v15 = vpop.f32.mrb[186].mxu0 }
 0x2f6   : > { %v7144_v2 = vadd.f32 %v11995_v34, %v7101_v63  ;;  %7418 = vrot.lane.b32.xlu0 %v7178_v14, %s9634_s28  ;;  %v7181_v9 = vmax.f32 %v7145_v61, 0.0  ;;  %v7104_v4 = vmul.f32 %v9298_v15, %v11990_v32  ;;  %v7029_v12 = vpop.f32.mrb[187].mxu0  ;;  %v5621_v63 = vld [vmem:[#allocation2 + $0x3e] sm:$0xff] }
 0x2f7   : > { %9194 = vmatmul.mubr.msk.f32.gmra.mrb[24].mxu1 %vm1370_vm13, %v5226_v26  ;;  %v5620_v26 = vld [vmem:[#allocation2 + $0x36] sm:$0xff] }
 0x2f8   : > { %9198 = vmatprep.mubr.msk.f32.mxu1 %vm1370_vm13, %v5618_v22  ;;  %v7180_v56 = vmax.f32 %v7144_v2, 0.0  ;;  %v7103_v22 = vmul.f32 %v11990_v32, %v7029_v12  ;;  %v7147_v17 = vadd.f32 %v11995_v34, %v7104_v4 }
 0x2f9   : > { %7424 = vrot.lane.b32.xlu1 %v7181_v9, %s9634_s28  ;;  %v9301_v14 = vpop.f32.mrb[188].mxu0 }
 0x2fa   : > { %v7146_v45 = vadd.f32 %v11995_v34, %v7103_v22  ;;  %7422 = vrot.lane.b32.xlu0 %v7180_v56, %s9634_s28  ;;  %v7183_v61 = vmax.f32 %v7147_v17, 0.0  ;;  %v7106_v15 = vmul.f32 %v9301_v14, %v11990_v32  ;;  %v7039_v2 = vpop.f32.mrb[189].mxu0  ;;  %v5623_v22 = vld [vmem:[#allocation2 + $0x4e] sm:$0xff] }
 0x2fb   : > { %9199 = vmatmul.mubr.msk.f32.vlgmr.msra.gmra.mrb[26].mxu1 %vm1370_vm13, %v5619_v8  ;;  %v5622_v8 = vld [vmem:[#allocation2 + $0x46] sm:$0xff] }
 0x2fc   : > { %9201 = vmatprep.mubr.msk.f32.mxu1 %vm1370_vm13, %v5620_v26  ;;  %v7182_v12 = vmax.f32 %v7146_v45, 0.0  ;;  %v7105_v26 = vmul.f32 %v11990_v32, %v7039_v2  ;;  %v7149_v9 = vadd.f32 %v11995_v34, %v7106_v15 }
 0x2fd   : > { %7428 = vrot.lane.b32.xlu1 %v7183_v61, %s9634_s28  ;;  %v9304_v56 = vpop.f32.mrb[190].mxu0 }
 0x2fe   : > { %v7148_v4 = vadd.f32 %v11995_v34, %v7105_v26  ;;  %7426 = vrot.lane.b32.xlu0 %v7182_v12, %s9634_s28  ;;  %v7185_v17 = vmax.f32 %v7149_v9, 0.0  ;;  %v7108_v14 = vmul.f32 %v9304_v56, %v11990_v32  ;;  %v7049_v45 = vpop.f32.mrb[191].mxu0  ;;  %v5625_v26 = vld [vmem:[#allocation2 + $0x5e] sm:$0xff] }
 0x2ff   : > { %9202 = vmatmul.mubr.msk.f32.gmra.mrb[28].mxu1 %vm1370_vm13, %v5621_v63  ;;  %v5624_v63 = vld [vmem:[#allocation2 + $0x56] sm:$0xff] }
 0x300   : > { %9204 = vmatprep.mubr.msk.f32.mxu1 %vm1370_vm13, %v5622_v8  ;;  %v7184_v2 = vmax.f32 %v7148_v4, 0.0  ;;  %v7107_v8 = vmul.f32 %v11990_v32, %v7049_v45  ;;  %v7151_v61 = vadd.f32 %v11995_v34, %v7108_v14  ;;  %v5626_v4 = vld [vmem:[#allocation2 + $0x66] sm:$0xff]  ;;  %v5631_v45 = vld [vmem:[#allocation2 + $0x8e] sm:$0xff] }
 0x301   : > { %7432 = vrot.lane.b32.xlu1 %v7185_v17, %s9634_s28  ;;  %v12131_v12 = vpop.f32.mrb[192].mxu0  ;;  %v5629_v17 = vld [vmem:[#allocation2 + $0x7e] sm:$0xff]  ;;  %v5630_v14 = vld [vmem:[#allocation2 + $0x86] sm:$0xff] }
 0x302   : > { %v7150_v15 = vadd.f32 %v11995_v34, %v7107_v8  ;;  %7430 = vrot.lane.b32.xlu0 %v7184_v2, %s9634_s28  ;;  %v7187_v9 = vmax.f32 %v7151_v61, 0.0  ;;  %v12134_v56 = vpop.f32.mrb[193].mxu0  ;;  %v5628_v34 = vld [vmem:[#allocation2 + $0x76] sm:$0xff]  ;;  %v5633_v2 = vld [vmem:[#allocation2 + $0x9e] sm:$0xff]  ;;  %v5634_v8 = vld [vmem:[#allocation2 + $0xa6] sm:$0xff] }
 0x303   : > { %9205 = vmatmul.mubr.msk.f32.gmra.mrb[30].mxu1 %vm1370_vm13, %v5623_v22  ;;  %v5627_v22 = vld [vmem:[#allocation2 + $0x6e] sm:$0xff] }
 0x304   : > { %9207 = vmatprep.mubr.msk.f32.mxu1 %vm1370_vm13, %v5624_v63  ;;  %v7186_v32 = vmax.f32 %v7150_v15, 0.0  ;;  %v5632_v63 = vld [vmem:[#allocation2 + $0x96] sm:$0xff]  ;;  %v5635_v61 = vld [vmem:[#allocation2 + $0xae] sm:$0xff] }
 0x305   : > { %7436 = vrot.lane.b32.xlu1 %v7187_v9, %s9634_s28  ;;  %v5636_v15 = vld [vmem:[#allocation2 + $0xb6] sm:$0xff]  ;;  %v5638_v9 = vld [vmem:[#allocation2 + $0xc6] sm:$0xff] }
 0x306   : > { %7434 = vrot.lane.b32.xlu0 %v7186_v32, %s9634_s28  ;;  %v5640_v32 = vld [vmem:[#allocation2 + $0xd6] sm:$0xff] }
 0x307   : > { %9208 = vmatmul.mubr.msk.f32.gmra.mrb[32].mxu1 %vm1370_vm13, %v5625_v26  ;;  %v5637_v26 = vld [vmem:[#allocation2 + $0xbe] sm:$0xff] }
 0x308   : > { %9210 = vmatprep.mubr.msk.f32.mxu1 %vm1370_vm13, %v5626_v4  ;;  %v5639_v4 = vld [vmem:[#allocation2 + $0xce] sm:$0xff] }
 0x30b   : > { %9211 = vmatmul.mubr.msk.f32.gmra.mrb[34].mxu1 %vm1370_vm13, %v5627_v22  ;;  %v5641_v22 = vld [vmem:[#allocation2 + $0xde] sm:$0xff] }
 0x30c   : > { %9213 = vmatprep.mubr.msk.f32.mxu1 %vm1370_vm13, %v5628_v34  ;;  %v5642_v34 = vld [vmem:[#allocation2 + $0xe6] sm:$0xff] }
 0x30f   : > { %9214 = vmatmul.mubr.msk.f32.gmra.mrb[0].mxu1 %vm1370_vm13, %v5629_v17  ;;  %v5643_v17 = vld [vmem:[#allocation2 + $0xee] sm:$0xff] }
 0x310   : > { %9216 = vmatprep.mubr.msk.f32.mxu1 %vm1370_vm13, %v5630_v14  ;;  %v5644_v14 = vld [vmem:[#allocation2 + $0xf6] sm:$0xff] }
 0x313   : > { %9217 = vmatmul.mubr.msk.f32.gmra.mrb[2].mxu1 %vm1370_vm13, %v5631_v45  ;;  %v5645_v45 = vld [vmem:[#allocation2 + $0xfe] sm:$0xff] }
 0x314   : > { %9219 = vmatprep.mubr.msk.f32.mxu1 %vm1370_vm13, %v5632_v63  ;;  %v5646_v63 = vld [vmem:[#allocation2 + $0x106] sm:$0xff] }
 0x317   : > { %9220 = vmatmul.mubr.msk.f32.gmra.mrb[4].mxu1 %vm1370_vm13, %v5633_v2  ;;  %v5647_v2 = vld [vmem:[#allocation2 + $0x10e] sm:$0xff] }
 0x318   : > { %9222 = vmatprep.mubr.msk.f32.mxu1 %vm1370_vm13, %v5634_v8  ;;  %v5648_v8 = vld [vmem:[#allocation2 + $0x116] sm:$0xff] }
 0x31b   : > { %9223 = vmatmul.mubr.msk.f32.gmra.mrb[6].mxu1 %vm1370_vm13, %v5635_v61  ;;  %v5649_v61 = vld [vmem:[#allocation2 + $0x11e] sm:$0xff] }
 0x31c   : > { %9225 = vmatprep.mubr.msk.f32.mxu1 %vm1370_vm13, %v5636_v15  ;;  %v5650_v15 = vld [vmem:[#allocation2 + $0x126] sm:$0xff] }
 0x31f   : > { %9226 = vmatmul.mubr.msk.f32.gmra.mrb[8].mxu1 %vm1370_vm13, %v5637_v26  ;;  %v5651_v26 = vld [vmem:[#allocation2 + $0x12e] sm:$0xff] }
 0x320   : > { %9228 = vmatprep.mubr.msk.f32.mxu1 %vm1370_vm13, %v5638_v9  ;;  %v5652_v9 = vld [vmem:[#allocation2 + $0x136] sm:$0xff] }
 0x323   : > { %9229 = vmatmul.mubr.msk.f32.gmra.mrb[10].mxu1 %vm1370_vm13, %v5639_v4  ;;  %v5653_v4 = vld [vmem:[#allocation2 + $0x13e] sm:$0xff] }
 0x324   : > { %9231 = vmatprep.mubr.msk.f32.mxu1 %vm1370_vm13, %v5640_v32 }
 0x327   : > { %9232 = vmatmul.mubr.msk.f32.gmra.mrb[12].mxu1 %vm1370_vm13, %v5641_v22  ;;  %v12169_v22 = vld [vmem:[%s12704_s9] ss:$0 sm:$0xff] }
 0x328   : > { %9234 = vmatprep.mubr.msk.f32.mxu1 %vm1370_vm13, %v5642_v34 }
 0x32b   : > { %9235 = vmatmul.mubr.msk.f32.gmra.mrb[14].mxu1 %vm1370_vm13, %v5643_v17 }
 0x32c   : > { %9237 = vmatprep.mubr.msk.f32.mxu1 %vm1370_vm13, %v5644_v14  ;;  %v12175_v14 = vld [vmem:[%s12705_s10] ss:$0 sm:$0xff] }
 0x32f   : > { %9238 = vmatmul.mubr.msk.f32.gmra.mrb[16].mxu1 %vm1370_vm13, %v5645_v45 }
 0x330   : > { %9240 = vmatprep.mubr.msk.f32.mxu1 %vm1370_vm13, %v5646_v63 }
 0x333   : > { %9241 = vmatmul.mubr.msk.f32.gmra.mrb[18].mxu1 %vm1370_vm13, %v5647_v2 }
 0x334   : > { %9243 = vmatprep.mubr.msk.f32.mxu1 %vm1370_vm13, %v5648_v8 }
 0x337   : > { %9244 = vmatmul.mubr.msk.f32.gmra.mrb[20].mxu1 %vm1370_vm13, %v5649_v61 }
 0x338   : > { %9246 = vmatprep.mubr.msk.f32.mxu1 %vm1370_vm13, %v5650_v15 }
 0x33b   : > { %9247 = vmatmul.mubr.msk.f32.gmra.mrb[22].mxu1 %vm1370_vm13, %v5651_v26 }
 0x33c   : > { %9249 = vmatprep.mubr.msk.f32.mxu1 %vm1370_vm13, %v5652_v9 }
 0x33f   : > { %9250 = vmatmul.mubr.msk.f32.gmra.mrb[24].mxu1 %vm1370_vm13, %v5653_v4 }
 0x3ce   : > { %v9200_v32 = vpop.f32.mrb[26].mxu1 }
 0x3cf   : > { %v9310_v34 = vadd.f32 %v9200_v32, %v11956_v43  ;;  %v5830_v17 = vpop.f32.mrb[27].mxu1 }
 0x3d0   : > { %v9311_v45 = vadd.f32 %v5830_v17, %v11958_v6 }
 0x3d1   : > { %v6053_v63 = vmul.f32 %v9310_v34, %v12169_v22 }
 0x3d2   : > { %v6052_v2 = vmul.f32 %v9311_v45, %v12169_v22  ;;  %v9203_v8 = vpop.f32.mrb[28].mxu1 }
 0x3d3   : > { %v6096_v61 = vadd.f32 %v12175_v14, %v6053_v63  ;;  %v9312_v15 = vadd.f32 %v9203_v8, %v11962_v29  ;;  %v5840_v26 = vpop.f32.mrb[29].mxu1 }
 0x3d4   : > { %v6095_v43 = vadd.f32 %v12175_v14, %v6052_v2  ;;  %v9313_v9 = vadd.f32 %v5840_v26, %v11964_v35 }
 0x3d5   : > { %v6132_v4 = vmax.f32 %v6096_v61, 0.0  ;;  %v6055_v32 = vmul.f32 %v9312_v15, %v12169_v22 }
 0x3d6   : > { %v6131_v0 = vmax.f32 %v6095_v43, 0.0  ;;  %v6054_v6 = vmul.f32 %v9313_v9, %v12169_v22  ;;  %v9206_v17 = vpop.f32.mrb[30].mxu1 }
 0x3d7   : > { %v6098_v34 = vadd.f32 %v12175_v14, %v6055_v32  ;;  %v9314_v45 = vadd.f32 %v9206_v17, %v11969_v48  ;;  %v5850_v59 = vpop.f32.mrb[31].mxu1  ;;  %7228 = vrot.lane.b32.xlu1 %v6132_v4, %s9635_s19 }
 0x3d8   : > { %v6097_v29 = vadd.f32 %v12175_v14, %v6054_v6  ;;  %v9315_v63 = vadd.f32 %v5850_v59, %v11971_v19  ;;  %7226 = vrot.lane.b32.xlu0 %v6131_v0, %s9635_s19 }
 0x3d9   : > { %v6134_v35 = vmax.f32 %v6098_v34, 0.0  ;;  %v6057_v2 = vmul.f32 %v9314_v45, %v12169_v22 }
 0x3da   : > { %v6133_v8 = vmax.f32 %v6097_v29, 0.0  ;;  %v6056_v61 = vmul.f32 %v9315_v63, %v12169_v22  ;;  %v9209_v15 = vpop.f32.mrb[32].mxu1 }
 0x3db   : > { %v6100_v26 = vadd.f32 %v12175_v14, %v6057_v2  ;;  %v9316_v48 = vadd.f32 %v9209_v15, %v11975_v27  ;;  %v5860_v43 = vpop.f32.mrb[33].mxu1  ;;  %7232 = vrot.lane.b32.xlu1 %v6134_v35, %s9635_s19 }
 0x3dc   : > { %v6099_v9 = vadd.f32 %v12175_v14, %v6056_v61  ;;  %v9317_v59 = vadd.f32 %v5860_v43, %v11977_v33  ;;  %7230 = vrot.lane.b32.xlu0 %v6133_v8, %s9635_s19 }
 0x3dd   : > { %v6136_v0 = vmax.f32 %v6100_v26, 0.0  ;;  %v6059_v19 = vmul.f32 %v9316_v48, %v12169_v22  ;;  %v12216_v48 = vpop.permute.xlu1 %7372 }
 0x3de   : > { %v6135_v4 = vmax.f32 %v6099_v9, 0.0  ;;  %v6058_v32 = vmul.f32 %v9317_v59, %v12169_v22  ;;  %v9212_v6 = vpop.f32.mrb[34].mxu1  ;;  %v12219_v59 = vpop.permute.xlu0 %7370 }
 0x3df   : > { %v6102_v17 = vadd.f32 %v12175_v14, %v6059_v19  ;;  %v9318_v27 = vadd.f32 %v9212_v6, %v11981_v21  ;;  %v5870_v34 = vpop.f32.mrb[35].mxu1  ;;  %7236 = vrot.lane.b32.xlu1 %v6136_v0, %s9635_s19 }
 0x3e0   : > { %v6101_v45 = vadd.f32 %v12175_v14, %v6058_v32  ;;  %v9319_v33 = vadd.f32 %v5870_v34, %v11983_v31  ;;  %7234 = vrot.lane.b32.xlu0 %v6135_v4, %s9635_s19 }
 0x3e1   : > { %v6138_v29 = vmax.f32 %v6102_v17, 0.0  ;;  %v6061_v63 = vmul.f32 %v9318_v27, %v12169_v22 }
 0x3e2   : > { %v6137_v35 = vmax.f32 %v6101_v45, 0.0  ;;  %v6060_v2 = vmul.f32 %v9319_v33, %v12169_v22  ;;  %v9215_v8 = vpop.f32.mrb[0].mxu1 }
 0x3e3   : > { %v6104_v61 = vadd.f32 %v12175_v14, %v6061_v63  ;;  %v9320_v21 = vadd.f32 %v9215_v8, %v11853_v10  ;;  %v5880_v15 = vpop.f32.mrb[1].mxu1  ;;  %7240 = vrot.lane.b32.xlu1 %v6138_v29, %s9635_s19  ;;  %v12230_v63 = vpop.permute.xlu1 %7376 }
 0x3e4   : > { %v6103_v26 = vadd.f32 %v12175_v14, %v6060_v2  ;;  %v9321_v31 = vadd.f32 %v5880_v15, %v11855_v25  ;;  %7238 = vrot.lane.b32.xlu0 %v6137_v35, %s9635_s19  ;;  %v12235_v8 = vpop.permute.xlu0 %7374 }
 0x3e5   : > { %v6140_v43 = vmax.f32 %v6104_v61, 0.0  ;;  %v6063_v9 = vmul.f32 %v9320_v21, %v12169_v22 }
 0x3e6   : > { %v6139_v0 = vmax.f32 %v6103_v26, 0.0  ;;  %v6062_v19 = vmul.f32 %v9321_v31, %v12169_v22  ;;  %v9218_v10 = vpop.f32.mrb[2].mxu1 }
 0x3e7   : > { %v6106_v4 = vadd.f32 %v12175_v14, %v6063_v9  ;;  %v9322_v32 = vadd.f32 %v9218_v10, %v11861_v52  ;;  %v5890_v6 = vpop.f32.mrb[3].mxu1  ;;  %7244 = vrot.lane.b32.xlu1 %v6140_v43, %s9635_s19  ;;  %v12248_v10 = vpop.permute.xlu1 %7380 }
 0x3e8   : > { %v6105_v25 = vadd.f32 %v12175_v14, %v6062_v19  ;;  %v9323_v17 = vadd.f32 %v5890_v6, %v11863_v40  ;;  %7242 = vrot.lane.b32.xlu0 %v6139_v0, %s9635_s19  ;;  %v12251_v6 = vpop.permute.xlu0 %7378 }
 0x3e9   : > { %v6142_v27 = vmax.f32 %v6106_v4, 0.0  ;;  %v6065_v34 = vmul.f32 %v9322_v32, %v12169_v22 }
 0x3ea   : > { %v6141_v45 = vmax.f32 %v6105_v25, 0.0  ;;  %v6064_v33 = vmul.f32 %v9323_v17, %v12169_v22  ;;  %v9221_v29 = vpop.f32.mrb[4].mxu1 }
 0x3eb   : > { %v6108_v52 = vadd.f32 %v12175_v14, %v6065_v34  ;;  %v9324_v35 = vadd.f32 %v9221_v29, %v11869_v30  ;;  %v5900_v2 = vpop.f32.mrb[5].mxu1  ;;  %7248 = vrot.lane.b32.xlu1 %v6142_v27, %s9635_s19 }
 0x3ec   : > { %v6107_v40 = vadd.f32 %v12175_v14, %v6064_v33  ;;  %v9325_v61 = vadd.f32 %v5900_v2, %v11871_v13  ;;  %7246 = vrot.lane.b32.xlu0 %v6141_v45, %s9635_s19 }
 0x3ed   : > { %v6144_v21 = vmax.f32 %v6108_v52, 0.0  ;;  %v6067_v15 = vmul.f32 %v9324_v35, %v12169_v22 }
 0x3ee   : > { %v6143_v26 = vmax.f32 %v6107_v40, 0.0  ;;  %v6066_v31 = vmul.f32 %v9325_v61, %v12169_v22  ;;  %v9224_v43 = vpop.f32.mrb[6].mxu1  ;;  %v12262_v61 = vpop.permute.xlu1 %7384 }
 0x3ef   : > { %v6110_v30 = vadd.f32 %v12175_v14, %v6067_v15  ;;  %v9326_v9 = vadd.f32 %v9224_v43, %v11877_v44  ;;  %v5910_v0 = vpop.f32.mrb[7].mxu1  ;;  %7252 = vrot.lane.b32.xlu1 %v6144_v21, %s9635_s19 }
 0x3f0   : > { %v6109_v19 = vadd.f32 %v12175_v14, %v6066_v31  ;;  %v9327_v13 = vadd.f32 %v5910_v0, %v11879_v28  ;;  %7250 = vrot.lane.b32.xlu0 %v6143_v26, %s9635_s19  ;;  %v12267_v26 = vpop.permute.xlu0 %7382 }
 0x3f1   : > { %v6146_v4 = vmax.f32 %v6110_v30, 0.0  ;;  %v6069_v32 = vmul.f32 %v9326_v9, %v12169_v22 }
 0x3f2   : > { %v6145_v25 = vmax.f32 %v6109_v19, 0.0  ;;  %v6068_v17 = vmul.f32 %v9327_v13, %v12169_v22  ;;  %v9227_v44 = vpop.f32.mrb[8].mxu1 }
 0x3f3   : > { %v6112_v27 = vadd.f32 %v12175_v14, %v6069_v32  ;;  %v9328_v34 = vadd.f32 %v9227_v44, %v11885_v42  ;;  %v5920_v45 = vpop.f32.mrb[9].mxu1  ;;  %7256 = vrot.lane.b32.xlu1 %v6146_v4, %s9635_s19 }
 0x3f4   : > { %v6111_v28 = vadd.f32 %v12175_v14, %v6068_v17  ;;  %v9329_v33 = vadd.f32 %v5920_v45, %v11887_v38  ;;  %7254 = vrot.lane.b32.xlu0 %v6145_v25, %s9635_s19  ;;  %v12280_v25 = vpop.permute.xlu1 %7388 }
 0x3f5   : > { %v6148_v29 = vmax.f32 %v6112_v27, 0.0  ;;  %v6071_v52 = vmul.f32 %v9328_v34, %v12169_v22  ;;  %v12283_v27 = vpop.permute.xlu0 %7386 }
 0x3f6   : > { %v6147_v35 = vmax.f32 %v6111_v28, 0.0  ;;  %v6070_v2 = vmul.f32 %v9329_v33, %v12169_v22  ;;  %v9230_v40 = vpop.f32.mrb[10].mxu1 }
 0x3f7   : > { %v6114_v42 = vadd.f32 %v12175_v14, %v6071_v52  ;;  %v9330_v21 = vadd.f32 %v9230_v40, %v11893_v11  ;;  %v5930_v15 = vpop.f32.mrb[11].mxu1  ;;  %7260 = vrot.lane.b32.xlu1 %v6148_v29, %s9635_s19 }
 0x3f8   : > { %v6113_v38 = vadd.f32 %v12175_v14, %v6070_v2  ;;  %v9331_v31 = vadd.f32 %v5930_v15, %v11895_v39  ;;  %7258 = vrot.lane.b32.xlu0 %v6147_v35, %s9635_s19  ;;  %v12294_v15 = vpop.permute.xlu1 %7392 }
 0x3f9   : > { %v6150_v43 = vmax.f32 %v6114_v42, 0.0  ;;  %v6073_v30 = vmul.f32 %v9330_v21, %v12169_v22 }
 0x3fa   : > { %v6149_v9 = vmax.f32 %v6113_v38, 0.0  ;;  %v6072_v0 = vmul.f32 %v9331_v31, %v12169_v22  ;;  %v9233_v19 = vpop.f32.mrb[12].mxu1 }
 0x3fb   : > { %v6116_v11 = vadd.f32 %v12175_v14, %v6073_v30  ;;  %v9332_v13 = vadd.f32 %v9233_v19, %v11901_v47  ;;  %v5940_v4 = vpop.f32.mrb[13].mxu1  ;;  %7264 = vrot.lane.b32.xlu1 %v6150_v43, %s9635_s19  ;;  %v12299_v43 = vpop.permute.xlu0 %7390 }
 0x3fc   : > { %v6115_v32 = vadd.f32 %v12175_v14, %v6072_v0  ;;  %v9333_v39 = vadd.f32 %v5940_v4, %v11903_v54  ;;  %7262 = vrot.lane.b32.xlu0 %v6149_v9, %s9635_s19 }
 0x3fd   : > { %v6152_v17 = vmax.f32 %v6116_v11, 0.0  ;;  %v6075_v44 = vmul.f32 %v9332_v13, %v12169_v22 }
 0x3fe   : > { %v6151_v34 = vmax.f32 %v6115_v32, 0.0  ;;  %v6074_v45 = vmul.f32 %v9333_v39, %v12169_v22  ;;  %v9236_v47 = vpop.f32.mrb[14].mxu1 }
 0x3ff   : > { %v6118_v28 = vadd.f32 %v12175_v14, %v6075_v44  ;;  %v9334_v33 = vadd.f32 %v9236_v47, %v11909_v23  ;;  %v5950_v29 = vpop.f32.mrb[15].mxu1  ;;  %7268 = vrot.lane.b32.xlu1 %v6152_v17, %s9635_s19  ;;  %v12312_v17 = vpop.permute.xlu1 %7396 }
 0x400   : > { %v6117_v54 = vadd.f32 %v12175_v14, %v6074_v45  ;;  %v9335_v52 = vadd.f32 %v5950_v29, %v11911_v37  ;;  %7266 = vrot.lane.b32.xlu0 %v6151_v34, %s9635_s19  ;;  %v12315_v45 = vpop.permute.xlu0 %7394 }
 0x401   : > { %v6154_v35 = vmax.f32 %v6118_v28, 0.0  ;;  %v6077_v2 = vmul.f32 %v9334_v33, %v12169_v22 }
 0x402   : > { %v6153_v40 = vmax.f32 %v6117_v54, 0.0  ;;  %v6076_v42 = vmul.f32 %v9335_v52, %v12169_v22  ;;  %v9239_v21 = vpop.f32.mrb[16].mxu1 }
 0x403   : > { %v6120_v23 = vadd.f32 %v12175_v14, %v6077_v2  ;;  %v9336_v38 = vadd.f32 %v9239_v21, %v11917_v36  ;;  %v5960_v31 = vpop.f32.mrb[17].mxu1  ;;  %7272 = vrot.lane.b32.xlu1 %v6154_v35, %s9635_s19 }
 0x404   : > { %v6119_v37 = vadd.f32 %v12175_v14, %v6076_v42  ;;  %v9337_v30 = vadd.f32 %v5960_v31, %v11919_v1  ;;  %7270 = vrot.lane.b32.xlu0 %v6153_v40, %s9635_s19 }
 0x405   : > { %v6156_v9 = vmax.f32 %v6120_v23, 0.0  ;;  %v6079_v0 = vmul.f32 %v9336_v38, %v12169_v22  ;;  %v12326_v23 = vpop.permute.xlu1 %7400 }
 0x406   : > { %v6155_v19 = vmax.f32 %v6119_v37, 0.0  ;;  %v6078_v11 = vmul.f32 %v9337_v30, %v12169_v22  ;;  %v9242_v13 = vpop.f32.mrb[18].mxu1  ;;  %v12331_v37 = vpop.permute.xlu0 %7398 }
 0x407   : > { %v6122_v36 = vadd.f32 %v12175_v14, %v6079_v0  ;;  %v9338_v4 = vadd.f32 %v9242_v13, %v11925_v55  ;;  %v5970_v32 = vpop.f32.mrb[19].mxu1  ;;  %7276 = vrot.lane.b32.xlu1 %v6156_v9, %s9635_s19 }
 0x408   : > { %v6121_v39 = vadd.f32 %v12175_v14, %v6078_v11  ;;  %v9339_v1 = vadd.f32 %v5970_v32, %v11927_v62  ;;  %7274 = vrot.lane.b32.xlu0 %v6155_v19, %s9635_s19 }
 0x409   : > { %v6158_v44 = vmax.f32 %v6122_v36, 0.0  ;;  %v6081_v34 = vmul.f32 %v9338_v4, %v12169_v22 }
 0x40a   : > { %v6157_v47 = vmax.f32 %v6121_v39, 0.0  ;;  %v6080_v28 = vmul.f32 %v9339_v1, %v12169_v22  ;;  %v9245_v55 = vpop.f32.mrb[20].mxu1  ;;  %v9619_v39 = vld [vmem:[%s12707_s12] ss:$0 sm:$0xff] }
 0x40b   : > { %v6124_v33 = vadd.f32 %v12175_v14, %v6081_v34  ;;  %v9340_v29 = vadd.f32 %v9245_v55, %v11933_v50  ;;  %v5980_v54 = vpop.f32.mrb[21].mxu1  ;;  %7280 = vrot.lane.b32.xlu1 %v6158_v44, %s9635_s19  ;;  %v7110_v1 = vmul.f32 %v9619_v39, %v12131_v12  ;;  %v12348_v44 = vpop.permute.xlu1 %7404  ;;  %v9620_v12 = vld [vmem:[%s12708_s13] ss:$0 sm:$0xff] }
 0x40c   : > { %v6123_v62 = vadd.f32 %v12175_v14, %v6080_v28  ;;  %v9341_v52 = vadd.f32 %v5980_v54, %v11935_v16  ;;  %7278 = vrot.lane.b32.xlu0 %v6157_v47, %s9635_s19  ;;  %v7109_v47 = vmul.f32 %v9619_v39, %v12134_v56  ;;  %v12352_v28 = vpop.permute.xlu0 %7402 }
 0x40d   : > { %v6160_v35 = vmax.f32 %v6124_v33, 0.0  ;;  %v6083_v2 = vmul.f32 %v9340_v29, %v12169_v22  ;;  %v7153_v54 = vadd.f32 %v9620_v12, %v7110_v1 }
 0x40e   : > { %v6159_v40 = vmax.f32 %v6123_v62, 0.0  ;;  %v6082_v42 = vmul.f32 %v9341_v52, %v12169_v22  ;;  %v9248_v21 = vpop.f32.mrb[22].mxu1  ;;  %v7152_v56 = vadd.f32 %v9620_v12, %v7109_v47 }
 0x40f   : > { %v6126_v50 = vadd.f32 %v12175_v14, %v6083_v2  ;;  %v9342_v38 = vadd.f32 %v9248_v21, %v11941_v24  ;;  %v5990_v31 = vpop.f32.mrb[23].mxu1  ;;  %7284 = vrot.lane.b32.xlu1 %v6160_v35, %s9635_s19  ;;  %v12362_v35 = vpop.permute.xlu1 %7408  ;;  %v7189_v2 = vmax.f32 %v7153_v54, 0.0 }
 0x410   : > { %v6125_v16 = vadd.f32 %v12175_v14, %v6082_v42  ;;  %v9343_v30 = vadd.f32 %v5990_v31, %v11943_v5  ;;  %7282 = vrot.lane.b32.xlu0 %v6159_v40, %s9635_s19 }
 0x411   : > { %v6162_v9 = vmax.f32 %v6126_v50, 0.0  ;;  %v6085_v0 = vmul.f32 %v9342_v38, %v12169_v22 }
 0x412   : > { %v6161_v19 = vmax.f32 %v6125_v16, 0.0  ;;  %v6084_v11 = vmul.f32 %v9343_v30, %v12169_v22  ;;  %v9251_v13 = vpop.f32.mrb[24].mxu1 }
 0x413   : > { %v6128_v24 = vadd.f32 %v12175_v14, %v6085_v0  ;;  %v9344_v36 = vadd.f32 %v9251_v13, %v11949_v53  ;;  %v6000_v4 = vpop.f32.mrb[25].mxu1  ;;  %7288 = vrot.lane.b32.xlu1 %v6162_v9, %s9635_s19  ;;  %v12370_v40 = vpop.permute.xlu1 %7412 }
 0x414   : > { %v6127_v32 = vadd.f32 %v12175_v14, %v6084_v11  ;;  %v9345_v5 = vadd.f32 %v6000_v4, %v11951_v58  ;;  %7286 = vrot.lane.b32.xlu0 %v6161_v19, %s9635_s19  ;;  %v12395_v11 = vld [vmem:[%s12698_s3] ss:$0 sm:$0xff] }
 0x415   : > { %v6164_v34 = vmax.f32 %v6128_v24, 0.0  ;;  %v6087_v53 = vmul.f32 %v9344_v36, %v12169_v22  ;;  %v2161_v13 = vmul.f32 %v12395_v11, %v11049_v51  ;;  %v2160_v36 = vmul.f32 %v12395_v11, %v11057_v18  ;;  %v12406_v4 = vld [vmem:[%s12699_s4] ss:$0 sm:$0xff] }
 0x416   : > { %v6163_v55 = vmax.f32 %v6127_v32, 0.0  ;;  %v6086_v58 = vmul.f32 %v9345_v5, %v12169_v22  ;;  %v12365_v22 = vpop.permute.xlu0 %7406  ;;  %v2163_v5 = vmul.f32 %v12395_v11, %v11076_v60  ;;  %v2162_v51 = vmul.f32 %v12395_v11, %v11089_v3 }
 0x417   : > { %v6130_v33 = vadd.f32 %v12175_v14, %v6087_v53  ;;  %7292 = vrot.lane.b32.xlu1 %v6164_v34, %s9635_s19  ;;  %v12374_v21 = vpop.permute.xlu1 %7416  ;;  %v2204_v32 = vadd.f32 %v12406_v4, %v2161_v13  ;;  %v2203_v39 = vadd.f32 %v12406_v4, %v2160_v36  ;;  %v2165_v47 = vmul.f32 %v12395_v11, %v11097_v41 }
 0x418   : > { %v6129_v29 = vadd.f32 %v12175_v14, %v6086_v58  ;;  %7290 = vrot.lane.b32.xlu0 %v6163_v55, %s9635_s19  ;;  %v7188_v14 = vmax.f32 %v7152_v56, 0.0  ;;  %v2206_v53 = vadd.f32 %v12406_v4, %v2163_v5  ;;  %v2205_v60 = vadd.f32 %v12406_v4, %v2162_v51 }
 0x419   : > { %v6166_v62 = vmax.f32 %v6130_v33, 0.0  ;;  %v2240_v18 = vmax.f32 %v2204_v32, 0.0  ;;  %v2239_v55 = vmax.f32 %v2203_v39, 0.0  ;;  %v2164_v58 = vmul.f32 %v12395_v11, %v11113_v20 }
 0x41a   : > { %v6165_v52 = vmax.f32 %v6129_v29, 0.0  ;;  %v12372_v42 = vpop.permute.xlu0 %7410  ;;  %v2242_v54 = vmax.f32 %v2206_v53, 0.0  ;;  %v2208_v20 = vadd.f32 %v12406_v4, %v2165_v47  ;;  %v2169_v39 = vmul.f32 %v12395_v11, %v11160_v46 }
 0x41b   : > { %7296 = vrot.lane.b32.xlu1 %v6166_v62, %s9635_s19  ;;  %v12378_v38 = vpop.permute.xlu1 %7420  ;;  %v2167_v62 = vmul.f32 %v12395_v11, %v11130_v57 }
 0x41c   : > { %7294 = vrot.lane.b32.xlu0 %v6165_v52, %s9635_s19  ;;  %v2241_v52 = vmax.f32 %v2205_v60, 0.0  ;;  %v2244_v5 = vmax.f32 %v2208_v20, 0.0 }
 0x41e   : > { %v12376_v50 = vpop.permute.xlu0 %7414 }
 0x41f   : > { %7440 = vrot.lane.b32.xlu1 %v7189_v2, %s9634_s28  ;;  %v12382_v16 = vpop.permute.xlu1 %7424  ;;  %v2207_v2 = vadd.f32 %v12406_v4, %v2164_v58 }
 0x420   : > { %7438 = vrot.lane.b32.xlu0 %v7188_v14, %s9634_s28  ;;  %s9599_s28 = smul.u32 288, %s12835_s30 }
 0x421   : > { %v2243_v51 = vmax.f32 %v2207_v2, 0.0 }
 0x422   : > { %v12380_v31 = vpop.permute.xlu0 %7418  ;;  %s12428_s17 = scalar_lea.vmem %s12709_s14, %s9599_s28 }
 0x423   : > { %v12386_v9 = vpop.permute.xlu1 %7428 }
 0x426   : > { %v12384_v30 = vpop.permute.xlu0 %7422 }
 0x427   : > { %v12390_v19 = vpop.permute.xlu1 %7432 }
 0x42a   : > { %v12388_v0 = vpop.permute.xlu0 %7426 }
 0x42b   : > { %v12414_v1 = vpop.permute.xlu1 %7436 }
 0x42e   : > { %v12399_v24 = vpop.permute.xlu0 %7430 }
 0x432   : > { %v12417_v34 = vpop.permute.xlu0 %7434 }
 0x449   : > { %v7229_v3 = vpop.permute.xlu1 %7228 }
 0x44a   : > { %v7479_v33 = vsel %vm1370_vm13, %v2240_v18, %v7229_v3  ;;  %v7227_v29 = vpop.permute.xlu0 %7226  ;;  %v12808_v3 = vld [vmem:[#allocation4_spill] sm:$0xff] }
 0x44b   : > { %v7516_v41 = vsel %vm7514_vm0, %v7479_v33, %v12216_v48  ;;  %v7478_v12 = vsel %vm1370_vm13, %v2239_v55, %v7227_v29  ;;  %v2166_v48 = vmul.f32 %v12395_v11, %v11146_v49  ;;  %v2171_v33 = vmul.f32 %v12395_v11, %v12808_v3 }
 0x44c   : > { %7553 = vst.msk [vmem:[%s12428_s17 + $0x8] sm:$0xff] %vm7551_vm6, %v7516_v41  ;;  %v7515_v56 = vsel %vm7514_vm0, %v7478_v12, %v12219_v59  ;;  %v2210_v59 = vadd.f32 %v12406_v4, %v2167_v62  ;;  %v12809_v12 = vld [vmem:[#allocation5_spill] sm:$0xff] }
 0x44d   : > { %7552 = vst.msk [vmem:[%s12428_s17] sm:$0xff] %vm7551_vm6, %v7515_v56  ;;  %v7233_v14 = vpop.permute.xlu1 %7232  ;;  %v2209_v18 = vadd.f32 %v12406_v4, %v2166_v48  ;;  %v12810_v48 = vld [vmem:[#allocation6_spill] sm:$0xff] }
 0x44e   : > { %v7481_v13 = vsel %vm1370_vm13, %v2242_v54, %v7233_v14  ;;  %v7231_v36 = vpop.permute.xlu0 %7230  ;;  %v2246_v58 = vmax.f32 %v2210_v59, 0.0  ;;  %v2173_v14 = vmul.f32 %v12395_v11, %v12810_v48 }
 0x44f   : > { %v7518_v57 = vsel %vm7514_vm0, %v7481_v13, %v12230_v63  ;;  %v7480_v32 = vsel %vm1370_vm13, %v2241_v52, %v7231_v36  ;;  %v2168_v63 = vmul.f32 %v12395_v11, %v11170_v7  ;;  %v2245_v29 = vmax.f32 %v2209_v18, 0.0 }
 0x450   : > { %7555 = vst.msk [vmem:[%s12428_s17 + $0x18] sm:$0xff] %vm7551_vm6, %v7518_v57  ;;  %v7517_v49 = vsel %vm7514_vm0, %v7480_v32, %v12235_v8  ;;  %v2212_v8 = vadd.f32 %v12406_v4, %v2169_v39  ;;  %v12811_v32 = vld [vmem:[#allocation7_spill] sm:$0xff] }
 0x451   : > { %7554 = vst.msk [vmem:[%s12428_s17 + $0x10] sm:$0xff] %vm7551_vm6, %v7517_v49  ;;  %v7237_v53 = vpop.permute.xlu1 %7236  ;;  %v2211_v41 = vadd.f32 %v12406_v4, %v2168_v63  ;;  %v12812_v63 = vld [vmem:[#allocation17_spill] sm:$0xff] }
 0x452   : > { %v7483_v47 = vsel %vm1370_vm13, %v2244_v5, %v7237_v53  ;;  %v7235_v55 = vpop.permute.xlu0 %7234  ;;  %v2248_v2 = vmax.f32 %v2212_v8, 0.0  ;;  %v2175_v53 = vmul.f32 %v12395_v11, %v12812_v63  ;;  %v12818_v63 = vld [vmem:[#allocation12_spill] sm:$0xff] }
 0x453   : > { %v7520_v46 = vsel %vm7514_vm0, %v7483_v47, %v12248_v10  ;;  %v7482_v60 = vsel %vm1370_vm13, %v2243_v51, %v7235_v55  ;;  %v2170_v10 = vmul.f32 %v12395_v11, %v12809_v12  ;;  %v2247_v36 = vmax.f32 %v2211_v41, 0.0  ;;  %v12814_v41 = vld [vmem:[#allocation8_spill] sm:$0xff] }
 0x454   : > { %7557 = vst.msk [vmem:[%s12428_s17 + $0x28] sm:$0xff] %vm7551_vm6, %v7520_v46  ;;  %v7519_v7 = vsel %vm7514_vm0, %v7482_v60, %v12251_v6  ;;  %v2214_v6 = vadd.f32 %v12406_v4, %v2171_v33  ;;  %v12813_v60 = vld [vmem:[#allocation20_spill] sm:$0xff]  ;;  %v2177_v12 = vmul.f32 %v12395_v11, %v12814_v41 }
 0x455   : > { %7556 = vst.msk [vmem:[%s12428_s17 + $0x20] sm:$0xff] %vm7551_vm6, %v7519_v7  ;;  %v7241_v54 = vpop.permute.xlu1 %7240  ;;  %v2213_v57 = vadd.f32 %v12406_v4, %v2170_v10 }
 0x456   : > { %v7485_v20 = vsel %vm1370_vm13, %v2246_v58, %v7241_v54  ;;  %v7239_v62 = vpop.permute.xlu0 %7238  ;;  %v2250_v18 = vmax.f32 %v2214_v6, 0.0 }
 0x457   : > { %v7522_v56 = vsel %vm7514_vm0, %v7485_v20, %v12262_v61  ;;  %v7484_v52 = vsel %vm1370_vm13, %v2245_v29, %v7239_v62  ;;  %v2172_v61 = vmul.f32 %v12395_v11, %v12811_v32  ;;  %v2249_v55 = vmax.f32 %v2213_v57, 0.0  ;;  %v12815_v62 = vld [vmem:[#allocation9_spill] sm:$0xff] }
 0x458   : > { %7559 = vst.msk [vmem:[%s12428_s17 + $0x38] sm:$0xff] %vm7551_vm6, %v7522_v56  ;;  %v7521_v13 = vsel %vm7514_vm0, %v7484_v52, %v12267_v26  ;;  %v2216_v26 = vadd.f32 %v12406_v4, %v2173_v14 }
 0x459   : > { %7558 = vst.msk [vmem:[%s12428_s17 + $0x30] sm:$0xff] %vm7551_vm6, %v7521_v13  ;;  %v7245_v5 = vpop.permute.xlu1 %7244  ;;  %v2215_v46 = vadd.f32 %v12406_v4, %v2172_v61  ;;  %v12816_v13 = vld [vmem:[#allocation10_spill] sm:$0xff] }
 0x45a   : > { %v7487_v59 = vsel %vm1370_vm13, %v2248_v2, %v7245_v5  ;;  %v7243_v39 = vpop.permute.xlu0 %7242  ;;  %v2252_v29 = vmax.f32 %v2216_v26, 0.0  ;;  %v12817_v5 = vld [vmem:[#allocation11_spill] sm:$0xff] }
 0x45b   : > { %v7524_v49 = vsel %vm7514_vm0, %v7487_v59, %v12280_v25  ;;  %v7486_v51 = vsel %vm1370_vm13, %v2247_v36, %v7243_v39  ;;  %v2174_v25 = vmul.f32 %v12395_v11, %v12813_v60  ;;  %v2251_v54 = vmax.f32 %v2215_v46, 0.0  ;;  %v12819_v60 = vld [vmem:[#allocation13_spill] sm:$0xff] }
 0x45c   : > { %7561 = vst.msk [vmem:[%s12428_s17 + $0x48] sm:$0xff] %vm7551_vm6, %v7524_v49  ;;  %v7523_v47 = vsel %vm7514_vm0, %v7486_v51, %v12283_v27  ;;  %v2218_v27 = vadd.f32 %v12406_v4, %v2175_v53  ;;  %v2179_v36 = vmul.f32 %v12395_v11, %v12816_v13  ;;  %v2181_v53 = vmul.f32 %v12395_v11, %v12818_v63 }
 0x45d   : > { %7560 = vst.msk [vmem:[%s12428_s17 + $0x40] sm:$0xff] %vm7551_vm6, %v7523_v47  ;;  %v7249_v58 = vpop.permute.xlu1 %7248  ;;  %v2217_v20 = vadd.f32 %v12406_v4, %v2174_v25 }
 0x45e   : > { %v7489_v8 = vsel %vm1370_vm13, %v2250_v18, %v7249_v58  ;;  %v7247_v3 = vpop.permute.xlu0 %7246  ;;  %v2254_v14 = vmax.f32 %v2218_v27, 0.0 }
 0x45f   : > { %v7526_v33 = vsel %vm7514_vm0, %v7489_v8, %v12294_v15  ;;  %v7488_v7 = vsel %vm1370_vm13, %v2249_v55, %v7247_v3  ;;  %v2176_v15 = vmul.f32 %v12395_v11, %v12815_v62  ;;  %v2253_v32 = vmax.f32 %v2217_v20, 0.0 }
 0x460   : > { %7563 = vst.msk [vmem:[%s12428_s17 + $0x58] sm:$0xff] %vm7551_vm6, %v7526_v33  ;;  %v7525_v10 = vsel %vm7514_vm0, %v7488_v7, %v12299_v43  ;;  %v2220_v43 = vadd.f32 %v12406_v4, %v2177_v12 }
 0x461   : > { %7562 = vst.msk [vmem:[%s12428_s17 + $0x50] sm:$0xff] %vm7551_vm6, %v7525_v10  ;;  %v7253_v56 = vpop.permute.xlu1 %7252  ;;  %v2219_v61 = vadd.f32 %v12406_v4, %v2176_v15 }
 0x462   : > { %v7491_v52 = vsel %vm1370_vm13, %v2252_v29, %v7253_v56  ;;  %v7251_v2 = vpop.permute.xlu0 %7250  ;;  %v2256_v26 = vmax.f32 %v2220_v43, 0.0  ;;  %v12820_v29 = vld [vmem:[#allocation14_spill] sm:$0xff] }
 0x463   : > { %v7528_v6 = vsel %vm7514_vm0, %v7491_v52, %v12312_v17  ;;  %v7490_v48 = vsel %vm1370_vm13, %v2251_v54, %v7251_v2  ;;  %v2178_v17 = vmul.f32 %v12395_v11, %v12817_v5  ;;  %v2255_v55 = vmax.f32 %v2219_v61, 0.0  ;;  %v12821_v54 = vld [vmem:[#allocation15_spill] sm:$0xff] }
 0x464   : > { %7565 = vst.msk [vmem:[%s12428_s17 + $0x68] sm:$0xff] %vm7551_vm6, %v7528_v6  ;;  %v7527_v57 = vsel %vm7514_vm0, %v7490_v48, %v12315_v45  ;;  %v2222_v45 = vadd.f32 %v12406_v4, %v2179_v36  ;;  %v2183_v27 = vmul.f32 %v12395_v11, %v12820_v29  ;;  %v12822_v6 = vld [vmem:[#allocation16_spill] sm:$0xff]  ;;  %v12823_v36 = vld [vmem:[#allocation18_spill] sm:$0xff] }
 0x465   : > { %7564 = vst.msk [vmem:[%s12428_s17 + $0x60] sm:$0xff] %vm7551_vm6, %v7527_v57  ;;  %v7257_v59 = vpop.permute.xlu1 %7256  ;;  %v2221_v46 = vadd.f32 %v12406_v4, %v2178_v17  ;;  %v2185_v48 = vmul.f32 %v12395_v11, %v12822_v6 }
 0x466   : > { %v7493_v39 = vsel %vm1370_vm13, %v2254_v14, %v7257_v59  ;;  %v7255_v49 = vpop.permute.xlu0 %7254  ;;  %v2258_v7 = vmax.f32 %v2222_v45, 0.0  ;;  %v12825_v45 = vld [vmem:[#allocation21_spill] sm:$0xff] }
 0x467   : > { %v7530_v51 = vsel %vm7514_vm0, %v7493_v39, %v12326_v23  ;;  %v7492_v18 = vsel %vm1370_vm13, %v2253_v32, %v7255_v49  ;;  %v2180_v23 = vmul.f32 %v12395_v11, %v12819_v60  ;;  %v2257_v12 = vmax.f32 %v2221_v46, 0.0  ;;  %v12824_v39 = vld [vmem:[#allocation19_spill] sm:$0xff] }
 0x468   : > { %7567 = vst.msk [vmem:[%s12428_s17 + $0x78] sm:$0xff] %vm7551_vm6, %v7530_v51  ;;  %v7529_v47 = vsel %vm7514_vm0, %v7492_v18, %v12331_v37  ;;  %v2224_v37 = vadd.f32 %v12406_v4, %v2181_v53  ;;  %v2187_v49 = vmul.f32 %v12395_v11, %v12824_v39 }
 0x469   : > { %7566 = vst.msk [vmem:[%s12428_s17 + $0x70] sm:$0xff] %vm7551_vm6, %v7529_v47  ;;  %v7261_v25 = vpop.permute.xlu1 %7260  ;;  %v2223_v10 = vadd.f32 %v12406_v4, %v2180_v23  ;;  %v12826_v23 = vld [vmem:[#allocation22_spill] sm:$0xff] }
 0x46a   : > { %v7495_v58 = vsel %vm1370_vm13, %v2256_v26, %v7261_v25  ;;  %v7259_v8 = vpop.permute.xlu0 %7258  ;;  %v2260_v2 = vmax.f32 %v2224_v37, 0.0  ;;  %v2189_v25 = vmul.f32 %v12395_v11, %v12826_v23 }
 0x46b   : > { %v7532_v3 = vsel %vm7514_vm0, %v7495_v58, %v12348_v44  ;;  %v7494_v33 = vsel %vm1370_vm13, %v2255_v55, %v7259_v8  ;;  %v2182_v44 = vmul.f32 %v12395_v11, %v12821_v54  ;;  %v2259_v43 = vmax.f32 %v2223_v10, 0.0  ;;  %v12828_v10 = vld [vmem:[#allocation24_spill] sm:$0xff] }
 0x46c   : > { %7569 = vst.msk [vmem:[%s12428_s17 + $0x88] sm:$0xff] %vm7551_vm6, %v7532_v3  ;;  %v7531_v41 = vsel %vm7514_vm0, %v7494_v33, %v12352_v28  ;;  %v2226_v28 = vadd.f32 %v12406_v4, %v2183_v27  ;;  %v12827_v33 = vld [vmem:[#allocation23_spill] sm:$0xff]  ;;  %v2191_v54 = vmul.f32 %v12395_v11, %v12828_v10 }
 0x46d   : > { %7568 = vst.msk [vmem:[%s12428_s17 + $0x80] sm:$0xff] %vm7551_vm6, %v7531_v41  ;;  %v7265_v20 = vpop.permute.xlu1 %7264  ;;  %v2225_v13 = vadd.f32 %v12406_v4, %v2182_v44 }
 0x46e   : > { %v7497_v62 = vsel %vm1370_vm13, %v2258_v7, %v7265_v20  ;;  %v7263_v15 = vpop.permute.xlu0 %7262  ;;  %v2262_v59 = vmax.f32 %v2226_v28, 0.0 }
 0x46f   : > { %v7534_v56 = vsel %vm7514_vm0, %v7497_v62, %v12362_v35  ;;  %v7496_v52 = vsel %vm1370_vm13, %v2257_v12, %v7263_v15  ;;  %v2184_v35 = vmul.f32 %v12395_v11, %v12823_v36  ;;  %v2261_v18 = vmax.f32 %v2225_v13, 0.0  ;;  %v12829_v15 = vld [vmem:[#allocation25_spill] sm:$0xff] }
 0x470   : > { %7571 = vst.msk [vmem:[%s12428_s17 + $0x98] sm:$0xff] %vm7551_vm6, %v7534_v56  ;;  %v7533_v14 = vsel %vm7514_vm0, %v7496_v52, %v12365_v22  ;;  %v2228_v22 = vadd.f32 %v12406_v4, %v2185_v48  ;;  %v2234_v48 = vadd.f32 %v12406_v4, %v2191_v54 }
 0x471   : > { %7570 = vst.msk [vmem:[%s12428_s17 + $0x90] sm:$0xff] %vm7551_vm6, %v7533_v14  ;;  %v7269_v57 = vpop.permute.xlu1 %7268  ;;  %v2227_v26 = vadd.f32 %v12406_v4, %v2184_v35 }
 0x472   : > { %v7499_v32 = vsel %vm1370_vm13, %v2260_v2, %v7269_v57  ;;  %v7267_v61 = vpop.permute.xlu0 %7266  ;;  %v2264_v60 = vmax.f32 %v2228_v22, 0.0  ;;  %v12830_v22 = vld [vmem:[#allocation26_spill] sm:$0xff] }
 0x473   : > { %v7536_v5 = vsel %vm7514_vm0, %v7499_v32, %v12370_v40  ;;  %v7498_v17 = vsel %vm1370_vm13, %v2259_v43, %v7267_v61  ;;  %v2186_v40 = vmul.f32 %v12395_v11, %v12825_v45  ;;  %v2263_v8 = vmax.f32 %v2227_v26, 0.0 }
 0x474   : > { %7573 = vst.msk [vmem:[%s12428_s17 + $0xa8] sm:$0xff] %vm7551_vm6, %v7536_v5  ;;  %v7535_v51 = vsel %vm7514_vm0, %v7498_v17, %v12372_v42  ;;  %v2230_v42 = vadd.f32 %v12406_v4, %v2187_v49  ;;  %v2270_v32 = vmax.f32 %v2234_v48, 0.0  ;;  %v2272_v39 = vmax.f32 %v12830_v22, 0.0  ;;  %v12831_v49 = vld [vmem:[#allocation27_spill] sm:$0xff] }
 0x475   : > { %7572 = vst.msk [vmem:[%s12428_s17 + $0xa0] sm:$0xff] %vm7551_vm6, %v7535_v51  ;;  %v7273_v63 = vpop.permute.xlu1 %7272  ;;  %v2229_v3 = vadd.f32 %v12406_v4, %v2186_v40  ;;  %v2271_v51 = vmax.f32 %v12831_v49, 0.0 }
 0x476   : > { %v7501_v53 = vsel %vm1370_vm13, %v2262_v59, %v7273_v63  ;;  %v7271_v47 = vpop.permute.xlu0 %7270  ;;  %v2266_v12 = vmax.f32 %v2230_v42, 0.0 }
 0x477   : > { %v7538_v55 = vsel %vm7514_vm0, %v7501_v53, %v12374_v21  ;;  %v7500_v46 = vsel %vm1370_vm13, %v2261_v18, %v7271_v47  ;;  %v2188_v21 = vmul.f32 %v12395_v11, %v12827_v33  ;;  %v2265_v20 = vmax.f32 %v2229_v3, 0.0  ;;  %v12832_v47 = vld [vmem:[#allocation28_spill] sm:$0xff] }
 0x478   : > { %7575 = vst.msk [vmem:[%s12428_s17 + $0xb8] sm:$0xff] %vm7551_vm6, %v7538_v55  ;;  %v7537_v58 = vsel %vm7514_vm0, %v7500_v46, %v12376_v50  ;;  %v2232_v50 = vadd.f32 %v12406_v4, %v2189_v25  ;;  %v2274_v55 = vmax.f32 %v12832_v47, 0.0  ;;  %v12833_v46 = vld [vmem:[#allocation29_spill] sm:$0xff] }
 0x479   : > { %7574 = vst.msk [vmem:[%s12428_s17 + $0xb0] sm:$0xff] %vm7551_vm6, %v7537_v58  ;;  %v7277_v7 = vpop.permute.xlu1 %7276  ;;  %v2231_v62 = vadd.f32 %v12406_v4, %v2188_v21 }
 0x47a   : > { %v7503_v37 = vsel %vm1370_vm13, %v2264_v60, %v7277_v7  ;;  %v7275_v29 = vpop.permute.xlu0 %7274  ;;  %v2273_v60 = vmax.f32 %v12833_v46, 0.0 }
 0x47b   : > { %v7540_v27 = vsel %vm7514_vm0, %v7503_v37, %v12378_v38  ;;  %v7502_v41 = vsel %vm1370_vm13, %v2263_v8, %v7275_v29  ;;  %v2190_v38 = vmul.f32 %v12395_v11, %v12829_v15  ;;  %v2267_v14 = vmax.f32 %v2231_v62, 0.0 }
 0x47c   : > { %7577 = vst.msk [vmem:[%s12428_s17 + $0xc8] sm:$0xff] %vm7551_vm6, %v7540_v27  ;;  %v7539_v44 = vsel %vm7514_vm0, %v7502_v41, %v12380_v31  ;;  %v2268_v31 = vmax.f32 %v2232_v50, 0.0 }
 0x47d   : > { %7576 = vst.msk [vmem:[%s12428_s17 + $0xc0] sm:$0xff] %vm7551_vm6, %v7539_v44  ;;  %v7281_v56 = vpop.permute.xlu1 %7280  ;;  %v2233_v43 = vadd.f32 %v12406_v4, %v2190_v38 }
 0x47e   : > { %v7505_v52 = vsel %vm1370_vm13, %v2266_v12, %v7281_v56  ;;  %v7279_v2 = vpop.permute.xlu0 %7278 }
 0x47f   : > { %v7542_v28 = vsel %vm7514_vm0, %v7505_v52, %v12382_v16  ;;  %v7504_v6 = vsel %vm1370_vm13, %v2265_v20, %v7279_v2  ;;  %v2269_v4 = vmax.f32 %v2233_v43, 0.0 }
 0x480   : > { %7579 = vst.msk [vmem:[%s12428_s17 + $0xd8] sm:$0xff] %vm7551_vm6, %v7542_v28  ;;  %v7541_v11 = vsel %vm7514_vm0, %v7504_v6, %v12384_v30 }
 0x481   : > { %7578 = vst.msk [vmem:[%s12428_s17 + $0xd0] sm:$0xff] %vm7551_vm6, %v7541_v11  ;;  %v7285_v13 = vpop.permute.xlu1 %7284 }
 0x482   : > { %v7507_v16 = vsel %vm1370_vm13, %v2268_v31, %v7285_v13  ;;  %v7283_v36 = vpop.permute.xlu0 %7282 }
 0x483   : > { %v7544_v35 = vsel %vm7514_vm0, %v7507_v16, %v12386_v9  ;;  %v7506_v57 = vsel %vm1370_vm13, %v2267_v14, %v7283_v36 }
 0x484   : > { %7581 = vst.msk [vmem:[%s12428_s17 + $0xe8] sm:$0xff] %vm7551_vm6, %v7544_v35  ;;  %v7543_v30 = vsel %vm7514_vm0, %v7506_v57, %v12388_v0 }
 0x485   : > { %7580 = vst.msk [vmem:[%s12428_s17 + $0xe0] sm:$0xff] %vm7551_vm6, %v7543_v30  ;;  %v7289_v61 = vpop.permute.xlu1 %7288 }
 0x486   : > { %v7509_v5 = vsel %vm1370_vm13, %v2270_v32, %v7289_v61  ;;  %v7287_v17 = vpop.permute.xlu0 %7286 }
 0x487   : > { %v7546_v9 = vsel %vm7514_vm0, %v7509_v5, %v12390_v19  ;;  %v7508_v59 = vsel %vm1370_vm13, %v2269_v4, %v7287_v17 }
 0x488   : > { %7583 = vst.msk [vmem:[%s12428_s17 + $0xf8] sm:$0xff] %vm7551_vm6, %v7546_v9  ;;  %v7545_v0 = vsel %vm7514_vm0, %v7508_v59, %v12399_v24 }
 0x489   : > { %7582 = vst.msk [vmem:[%s12428_s17 + $0xf0] sm:$0xff] %vm7551_vm6, %v7545_v0  ;;  %v7293_v18 = vpop.permute.xlu1 %7292 }
 0x48a   : > { %v7511_v26 = vsel %vm1370_vm13, %v2272_v39, %v7293_v18  ;;  %v7291_v45 = vpop.permute.xlu0 %7290 }
 0x48b   : > { %v7548_v19 = vsel %vm7514_vm0, %v7511_v26, %v12414_v1  ;;  %v7510_v40 = vsel %vm1370_vm13, %v2271_v51, %v7291_v45 }
 0x48c   : > { %7585 = vst.msk [vmem:[%s12428_s17 + $0x108] sm:$0xff] %vm7551_vm6, %v7548_v19  ;;  %v7547_v24 = vsel %vm7514_vm0, %v7510_v40, %v12417_v34 }
 0x48d   : > { %7584 = vst.msk [vmem:[%s12428_s17 + $0x100] sm:$0xff] %vm7551_vm6, %v7547_v24  ;;  %v7297_v63 = vpop.permute.xlu1 %7296 }
 0x48e   : > { %v7295_v53 = vpop.permute.xlu0 %7294  ;;  %v7513_v42 = vsel %vm1370_vm13, %v2274_v55, %v7297_v63 }
 0x48f   : > { %v7512_v1 = vsel %vm1370_vm13, %v2273_v60, %v7295_v53 }
 0x491   : > { %v7441_v23 = vpop.permute.xlu1 %7440 }
 0x492   : > { %v7550_v25 = vsel %vm7514_vm0, %v7513_v42, %v7441_v23  ;;  %v7439_v58 = vpop.permute.xlu0 %7438 }
 0x493   : > { %7587 = vst.msk [vmem:[%s12428_s17 + $0x118] sm:$0xff] %vm7551_vm6, %v7550_v25  ;;  %v7549_v34 = vsel %vm7514_vm0, %v7512_v1, %v7439_v58 }
 0x494   : > { %7586 = vst.msk [vmem:[%s12428_s17 + $0x110] sm:$0xff] %vm7551_vm6, %v7549_v34 }
 0x495 PF: > { %s24_s29 = sadd.s32 1, %s9629_s29  }
 0x496   : > { %p21_p4 = scmp.ge.s32.totalorder %s24_s29, 4  }
 0x498   :  { %23 = sbr.rel (!%p21_p4) target bundleno = 1 (0x1), region = 114 }

</bundles_post_ra>
